<compile_context>
chip_gen: v7x
topology: tpu7x:2x2x1
jax: 0.10.0
libtpu: 0.0.40
codegen_flags: <defaults>
</compile_context>

<pallas_src>
import math

import numpy as np
import jax
import jax.numpy as jnp
from jax import lax
from jax.experimental import pallas as pl
from jax.experimental.pallas import tpu as pltpu

B_J0 = 0.01
BETA = 1.8   # isAdapt=1
DT = 1.0
R_M = 1.0


def _round_up(x, m):
    return ((x + m - 1) // m) * m


def _pad_to(a, shape):
    pads = [(0, s - d) for d, s in zip(a.shape, shape)]
    return jnp.pad(a, pads)


# ----------------------------- Pallas kernel ---------------------------------
def _rhythm_alif_kernel(
    xp_ref, m1_ref, m2_ref, m3_ref,
    wh1_ref, bh1_ref, w2_ref, b2_ref, wi3_ref, bi3_ref,
    a1_ref, ro1_ref, a2_ref, ro2_ref, a3_ref, ro3_ref,
    init1_ref, init2_ref, init3_ref,
    spk_out_ref,
    mem1_s, spk1_s, b1_s, mem2_s, spk2_s, b2_s, mem3_s, spk3_s, b3_s,
):
    c = pl.program_id(1)          # time-chunk index (grid = (batch_blocks, time_chunks))
    Tc = spk_out_ref.shape[0]
    Bb = spk_out_ref.shape[1]

    # Initialize the carried recurrent state at the first chunk of each batch block.
    @pl.when(c == 0)
    def _():
        i1 = init1_ref[...]; i2 = init2_ref[...]; i3 = init3_ref[...]
        mem1_s[...] = i1; spk1_s[...] = i1; b1_s[...] = jnp.full_like(i1, B_J0)
        mem2_s[...] = i2; spk2_s[...] = i2; b2_s[...] = jnp.full_like(i2, B_J0)
        mem3_s[...] = i3; spk3_s[...] = i3; b3_s[...] = jnp.full_like(i3, B_J0)

    # Time-invariant operands: read once per invocation (their block index never
    # changes across the grid so they are not re-DMA'd either).
    wh1 = wh1_ref[...]
    w2 = w2_ref[...]
    wi3 = wi3_ref[...]
    mxu_dtype = wh1.dtype         # f32 default, bf16 optional (wrapper decides)

    # Hoist loop-invariant broadcasts (JAX does not CSE broadcast_in_dim inside
    # the unrolled loop) and precompute (1 - ro) once.
    def bc(ref):
        return jnp.broadcast_to(ref[...], (Bb, ref.shape[-1]))

    bh1 = bc(bh1_ref); b2c = bc(b2_ref); bi3 = bc(bi3_ref)
    a1 = bc(a1_ref); ro1 = bc(ro1_ref); omr1 = 1.0 - ro1
    a2 = bc(a2_ref); ro2 = bc(ro2_ref); omr2 = 1.0 - ro2
    a3 = bc(a3_ref); ro3 = bc(ro3_ref); omr3 = 1.0 - ro3

    def alif(inp, mem, spk, b, alpha, ro, omr, mask):
        # Matches torch mem_update_adp_skip exactly: b / threshold always update,
        # mem reverts to pre_mem where mask==0, spike is gated by mask.
        b_new = ro * b + omr * spk
        Bth = B_J0 + BETA * b_new
        mem_new = mem * alpha + R_M * inp - Bth * spk * DT
        mem_new = jnp.where(mask == 0.0, mem, mem_new)
        spk_new = (mem_new - Bth > 0.0).astype(jnp.float32) * mask
        return mem_new, spk_new, b_new

    def step(t, carry):
        mem1, spk1, b1, mem2, spk2, b2, mem3, spk3, b3 = carry
        mask1 = m1_ref[pl.ds(t, 1), :]   # (1, r1) broadcast over batch
        mask2 = m2_ref[pl.ds(t, 1), :]
        mask3 = m3_ref[pl.ds(t, 1), :]

        # layer 1 (input projection x@Wi1+bi1 hoisted to wrapper -> xp_ref[t])
        h1 = (xp_ref[t]
              + jnp.dot(spk1.astype(mxu_dtype), wh1,
                        preferred_element_type=jnp.float32) + bh1)
        mem1, spk1, b1 = alif(h1, mem1, spk1, b1, a1, ro1, omr1, mask1)

        # layer 2: the two original dots K-fused into one (r1+r2, r2) matmul
        s12 = jnp.concatenate([spk1, spk2], axis=-1).astype(mxu_dtype)
        h2 = jnp.dot(s12, w2, preferred_element_type=jnp.float32) + b2c
        mem2, spk2, b2 = alif(h2, mem2, spk2, b2, a2, ro2, omr2, mask2)

        # layer 3 (feedforward only)
        h3 = jnp.dot(spk2.astype(mxu_dtype), wi3,
                     preferred_element_type=jnp.float32) + bi3
        mem3, spk3, b3 = alif(h3, mem3, spk3, b3, a3, ro3, omr3, mask3)

        # Readout is hoisted to the wrapper: store only the lane-dense spike row.
        spk_out_ref[t] = spk3
        return (mem1, spk1, b1, mem2, spk2, b2, mem3, spk3, b3)

    carry0 = (mem1_s[...], spk1_s[...], b1_s[...],
              mem2_s[...], spk2_s[...], b2_s[...],
              mem3_s[...], spk3_s[...], b3_s[...])

    # Shape-aware unroll: keep the 9-array carry + temporaries inside the vreg file.
    state_vregs = (Bb * (a1.shape[-1] + a2.shape[-1] + a3.shape[-1]) * 3) // 1024
    if state_vregs <= 12:
        unroll = Tc if Tc <= 16 else 8
    elif state_vregs <= 32:
        unroll = 4
    else:
        unroll = 2
    carry = lax.fori_loop(0, Tc, step, carry0, unroll=min(unroll, Tc))

    # Persist state across time chunks (and expose nothing else: reference model
    # also discards final states).
    mem1, spk1, b1, mem2, spk2, b2, mem3, spk3, b3 = carry
    mem1_s[...] = mem1; spk1_s[...] = spk1; b1_s[...] = b1
    mem2_s[...] = mem2; spk2_s[...] = spk2; b2_s[...] = b2
    mem3_s[...] = mem3; spk3_s[...] = spk3; b3_s[...] = b3


# ------------------------------- wrapper --------------------------------------
def rhythm_alif_forward(x_bct, masks, params, init_states, task="duration",
                        mxu_dtype=jnp.float32, time_chunk=128):
    """x_bct: (B, input_size, T) like PyTorch. Returns per task like the module."""
    B, in_dim, T = x_bct.shape
    mask1, mask2, mask3 = masks              # (r, T) each
    r1, r2, r3 = mask1.shape[0], mask2.shape[0], mask3.shape[0]
    p = params

    hi = jax.lax.Precision.HIGHEST           # keep wrapper matmuls f32-exact

    # ---- hardware-friendly padded shapes (lane = 128, sublane = 8) ----
    r1p, r2p, r3p = (_round_up(r, 128) for r in (r1, r2, r3))
    B_pad = _round_up(B, 8)
    n_b = 2 if (B_pad >= 16 and B_pad % 16 == 0) else 1   # batch-parallel blocks (v7x 2 TCs)
    B_block = B_pad // n_b

    # ---- time chunking (bounds resident VMEM on v7x; pipelines chunk DMA) ----
    T8 = _round_up(T, 8)
    Tc = T8 if T8 <= time_chunk else _round_up(time_chunk, 8)
    T_pad = _round_up(T8, Tc)
    n_c = T_pad // Tc

    x_tbc = jnp.transpose(x_bct, (2, 0, 1)).astype(jnp.float32)        # (T, B, in)
    # Hoisted, time-batched layer-1 input projection (no recurrent dependence).
    xp = (jnp.dot(x_tbc.reshape(T * B, in_dim), p["wi1"], precision=hi)
          + p["bi1"]).reshape(T, B, r1)
    xp = _pad_to(xp, (T_pad, B_pad, r1p))

    # Masks: (T, r), zero-padded -> pad neurons / pad timesteps never spike.
    m1 = _pad_to(jnp.transpose(mask1), (T_pad, r1p))
    m2 = _pad_to(jnp.transpose(mask2), (T_pad, r2p))
    m3 = _pad_to(jnp.transpose(mask3), (T_pad, r3p))

    # Weights: padded, layer-2 K-fused, optional bf16 MXU operands.
    wh1 = _pad_to(p["wh1"], (r1p, r1p)).astype(mxu_dtype)
    w2 = jnp.concatenate(
        [_pad_to(p["wi2"], (r1p, r2p)), _pad_to(p["wh2"], (r2p, r2p))], axis=0
    ).astype(mxu_dtype)                                                 # (r1p+r2p, r2p)
    wi3 = _pad_to(p["wi3"], (r2p, r3p)).astype(mxu_dtype)
    bh1 = _pad_to(p["bh1"], (1, r1p))
    b2s = _pad_to(p["bi2"] + p["bh2"], (1, r2p))                        # pre-summed biases
    bi3 = _pad_to(p["bi3"], (1, r3p))

    # Precomputed time-invariant decay factors (no per-step jnp.exp in the kernel).
    a1 = _pad_to(jnp.exp(-DT / p["tau_m1"]), (1, r1p))
    ro1 = _pad_to(jnp.exp(-DT / p["tau_adp1"]), (1, r1p))
    a2 = _pad_to(jnp.exp(-DT / p["tau_m2"]), (1, r2p))
    ro2 = _pad_to(jnp.exp(-DT / p["tau_adp2"]), (1, r2p))
    a3 = _pad_to(jnp.exp(-DT / p["tau_m3"]), (1, r3p))
    ro3 = _pad_to(jnp.exp(-DT / p["tau_adp3"]), (1, r3p))

    init1 = _pad_to(init_states[0].astype(jnp.float32), (B_pad, r1p))
    init2 = _pad_to(init_states[1].astype(jnp.float32), (B_pad, r2p))
    init3 = _pad_to(init_states[2].astype(jnp.float32), (B_pad, r3p))

    inputs = (xp, m1, m2, m3, wh1, bh1, w2, b2s, wi3, bi3,
              a1, ro1, a2, ro2, a3, ro3, init1, init2, init3)

    def inv(arr):   # grid-invariant, fully resident operand (block index never changes)
        return pl.BlockSpec(arr.shape, lambda b, c: (0,) * arr.ndim)

    in_specs = [
        pl.BlockSpec((Tc, B_block, r1p), lambda b, c: (c, b, 0)),   # xp chunk
        pl.BlockSpec((Tc, r1p), lambda b, c: (c, 0)),               # mask1 chunk
        pl.BlockSpec((Tc, r2p), lambda b, c: (c, 0)),               # mask2 chunk
        pl.BlockSpec((Tc, r3p), lambda b, c: (c, 0)),               # mask3 chunk
        inv(wh1), inv(bh1), inv(w2), inv(b2s), inv(wi3), inv(bi3),
        inv(a1), inv(ro1), inv(a2), inv(ro2), inv(a3), inv(ro3),
        pl.BlockSpec((B_block, r1p), lambda b, c: (b, 0)),          # init states
        pl.BlockSpec((B_block, r2p), lambda b, c: (b, 0)),
        pl.BlockSpec((B_block, r3p), lambda b, c: (b, 0)),
    ]
    out_spec = pl.BlockSpec((Tc, B_block, r3p), lambda b, c: (c, b, 0))

    scratch = (
        [pltpu.VMEM((B_block, r1p), jnp.float32)] * 3     # mem1, spk1, b1
        + [pltpu.VMEM((B_block, r2p), jnp.float32)] * 3   # mem2, spk2, b2
        + [pltpu.VMEM((B_block, r3p), jnp.float32)] * 3   # mem3, spk3, b3
    )

    # Scoped-VMEM sizing: streamed chunks double-buffered + resident invariants + scratch.
    streamed_bytes = 4 * Tc * (B_block * (r1p + r3p) + r1p + r2p + r3p)
    resident_bytes = sum(int(np.prod(a.shape)) * a.dtype.itemsize for a in inputs[4:])
    scratch_bytes = 4 * 3 * B_block * (r1p + r2p + r3p)
    vmem_limit = int(min(64 << 20,
                         max(16 << 20,
                             2 * streamed_bytes + 2 * resident_bytes
                             + scratch_bytes + (4 << 20))))

    spk3_seq = pl.pallas_call(
        _rhythm_alif_kernel,
        out_shape=jax.ShapeDtypeStruct((T_pad, B_pad, r3p), jnp.float32),
        grid_spec=pltpu.PrefetchScalarGridSpec(
            num_scalar_prefetch=0,
            grid=(n_b, n_c),
            in_specs=in_specs,
            out_specs=out_spec,
            scratch_shapes=scratch,
        ),
        compiler_params=pltpu.CompilerParams(
            dimension_semantics=("parallel", "arbitrary"),
            vmem_limit_bytes=vmem_limit,
        ),
    )(*inputs)

    # ---- readout (hoisted out of the recurrence) ----
    wo = p["wo"]; bo = p["bo"]
    if task in ("duration", "interval"):
        # Only the last timestep is consumed: skip (T-1)/T of the readout work.
        spk_last = spk3_seq[T - 1, :B, :r3]                              # (B, r3)
        return jax.nn.sigmoid(jnp.dot(spk_last, wo, precision=hi) + bo)  # (B, out)
    spk3 = spk3_seq[:T, :B, :r3]                                         # (T, B, r3)
    out = jax.nn.sigmoid(
        jnp.einsum("tbr,ro->bot", spk3, wo, precision=hi)
        + bo[0][None, :, None])                                          # (B, out, T)
    return out


# --------------------------- parameter / mask setup ---------------------------
def create_general_mask(dim, c_min, c_max, min_dc, max_dc, phase_shift_max, T):
    mask = []
    dc_steps = np.linspace(min_dc, max_dc, dim)
    cycles = np.linspace(c_min, c_max, dim)
    phase_shifts = np.linspace(0, int(phase_shift_max * c_max), dim)
    for cycle, dc, phase_shift in zip(cycles, dc_steps, phase_shifts):
        cycle = int(np.round(cycle))
        on_length = int(np.round(dc * cycle))
        off_length = cycle - on_length
        pattern = [1] * on_length + [0] * off_length
        phase_shift = int(np.round(phase_shift))
        pattern = pattern[-phase_shift:] + pattern[:-phase_shift]
        full_pattern = pattern * (T // cycle) + pattern[: T % cycle]
        mask.append(full_pattern)
    return jnp.asarray(np.array(mask, dtype=np.float32))   # (dim, T)


def _xavier(key, shape):
    fan_in, fan_out = shape
    lim = math.sqrt(6.0 / (fan_in + fan_out))
    return jax.random.uniform(key, shape, jnp.float32, -lim, lim)


def init_params(key, input_size, hidden_dims, output_size):
    r1, r2, r3 = hidden_dims
    ks = jax.random.split(key, 12)
    # weights stored as (in_features, out_features) for x @ W
    # TODO(synk): h2h_* use xavier here instead of torch orthogonal init (synthetic weights).
    params = {
        "wi1": _xavier(ks[0], (input_size, r1)), "bi1": jnp.zeros((1, r1), jnp.float32),
        "wh1": _xavier(ks[1], (r1, r1)),         "bh1": jnp.zeros((1, r1), jnp.float32),
        "wi2": _xavier(ks[2], (r1, r2)),         "bi2": jnp.zeros((1, r2), jnp.float32),
        "wh2": _xavier(ks[3], (r2, r2)),         "bh2": jnp.zeros((1, r2), jnp.float32),
        "wi3": _xavier(ks[4], (r2, r3)),         "bi3": jnp.zeros((1, r3), jnp.float32),
        "wo":  _xavier(ks[5], (r3, output_size)),
        "bo":  jnp.zeros((1, output_size), jnp.float32),
        "tau_adp1": 700.0 + 25.0 * jax.random.normal(ks[6], (1, r1), jnp.float32),
        "tau_adp2": 700.0 + 25.0 * jax.random.normal(ks[7], (1, r2), jnp.float32),
        "tau_adp3": 700.0 + 25.0 * jax.random.normal(ks[8], (1, r3), jnp.float32),
        "tau_m1": 20.0 + 5.0 * jax.random.normal(ks[9], (1, r1), jnp.float32),
        "tau_m2": 20.0 + 5.0 * jax.random.normal(ks[10], (1, r2), jnp.float32),
        "tau_m3": 20.0 + 5.0 * jax.random.normal(ks[11], (1, r3), jnp.float32),
    }
    return params


if __name__ == "__main__":
    # small, module-consistent shapes
    batch = 2
    input_size = 2
    hidden_dims = [32, 32, 32]
    output_size = 1
    time_window = 8               # T

    # args.* stand-ins for the rhythm masks
    cycle_min = [2, 2, 2]
    cycle_max = [4, 4, 4]
    duty_cycle_min = [0.3, 0.3, 0.3]
    duty_cycle_max = [0.7, 0.7, 0.7]
    phase_max = [0.5, 0.5, 0.5]

    key = jax.random.PRNGKey(0)
    k_param, k_x, k_s1, k_s2, k_s3 = jax.random.split(key, 5)

    params = init_params(k_param, input_size, hidden_dims, output_size)

    masks = tuple(
        create_general_mask(hidden_dims[i], cycle_min[i], cycle_max[i],
                            duty_cycle_min[i], duty_cycle_max[i],
                            phase_max[i], time_window)
        for i in range(3)
    )

    # initial mem == spike == uniform random (mirrors torch.rand aliasing)
    init_states = (
        jax.random.uniform(k_s1, (batch, hidden_dims[0]), jnp.float32),
        jax.random.uniform(k_s2, (batch, hidden_dims[1]), jnp.float32),
        jax.random.uniform(k_s3, (batch, hidden_dims[2]), jnp.float32),
    )

    # input shaped like the PyTorch forward: (B, input_size, T)
    x = jax.random.normal(k_x, (batch, input_size, time_window), jnp.float32)

    out_duration = rhythm_alif_forward(x, masks, params, init_states, task="duration")
    out_seq = rhythm_alif_forward(x, masks, params, init_states, task="recall")
    jax.block_until_ready(out_duration)
    jax.block_until_ready(out_seq)

    assert out_duration.shape == (batch, output_size)
    assert out_seq.shape == (batch, output_size, time_window)
    assert bool(jnp.all(jnp.isfinite(out_duration))) and bool(jnp.all(jnp.isfinite(out_seq)))
    # sigmoid outputs must lie in (0, 1)
    assert bool(jnp.all((out_seq > 0.0) & (out_seq < 1.0)))
    # 'duration' must equal the last timestep of the full sequence output
    assert bool(jnp.allclose(out_duration, out_seq[:, :, -1], atol=1e-6))
    print("KERNEL_OK")
</pallas_src>

<mosaic_0001>
module attributes {stable_mosaic.version = 11 : i64} {
  func.func @_rhythm_alif_kernel(%arg0: i32, %arg1: i32, %arg2: memref<8x8x128xf32, #tpu.memory_space<vmem>>, %arg3: memref<8x128xf32, #tpu.memory_space<vmem>>, %arg4: memref<8x128xf32, #tpu.memory_space<vmem>>, %arg5: memref<8x128xf32, #tpu.memory_space<vmem>>, %arg6: memref<128x128xf32, #tpu.memory_space<vmem>>, %arg7: memref<1x128xf32, #tpu.memory_space<vmem>>, %arg8: memref<256x128xf32, #tpu.memory_space<vmem>>, %arg9: memref<1x128xf32, #tpu.memory_space<vmem>>, %arg10: memref<128x128xf32, #tpu.memory_space<vmem>>, %arg11: memref<1x128xf32, #tpu.memory_space<vmem>>, %arg12: memref<1x128xf32, #tpu.memory_space<vmem>>, %arg13: memref<1x128xf32, #tpu.memory_space<vmem>>, %arg14: memref<1x128xf32, #tpu.memory_space<vmem>>, %arg15: memref<1x128xf32, #tpu.memory_space<vmem>>, %arg16: memref<1x128xf32, #tpu.memory_space<vmem>>, %arg17: memref<1x128xf32, #tpu.memory_space<vmem>>, %arg18: memref<8x128xf32, #tpu.memory_space<vmem>>, %arg19: memref<8x128xf32, #tpu.memory_space<vmem>>, %arg20: memref<8x128xf32, #tpu.memory_space<vmem>>, %arg21: memref<8x8x128xf32, #tpu.memory_space<vmem>>, %arg22: memref<8x128xf32, #tpu.memory_space<vmem>>, %arg23: memref<8x128xf32, #tpu.memory_space<vmem>>, %arg24: memref<8x128xf32, #tpu.memory_space<vmem>>, %arg25: memref<8x128xf32, #tpu.memory_space<vmem>>, %arg26: memref<8x128xf32, #tpu.memory_space<vmem>>, %arg27: memref<8x128xf32, #tpu.memory_space<vmem>>, %arg28: memref<8x128xf32, #tpu.memory_space<vmem>>, %arg29: memref<8x128xf32, #tpu.memory_space<vmem>>, %arg30: memref<8x128xf32, #tpu.memory_space<vmem>>) attributes {dimension_semantics = [#tpu.dimension_semantics<parallel>, #tpu.dimension_semantics<arbitrary>], iteration_bounds = array<i64: 1, 1>, scalar_prefetch = 0 : i64, scratch_operands = 9 : i64, tpu.core_type = #tpu.core_type<tc>, window_params = [{transform_indices = @transform_0, window_bounds = array<i64: 8, 8, 128>}, {transform_indices = @transform_1, window_bounds = array<i64: 8, 128>}, {transform_indices = @transform_2, window_bounds = array<i64: 8, 128>}, {transform_indices = @transform_3, window_bounds = array<i64: 8, 128>}, {pipeline_mode = #tpu.pipeline_mode<synchronous>, transform_indices = @transform_4, window_bounds = array<i64: 128, 128>}, {pipeline_mode = #tpu.pipeline_mode<synchronous>, transform_indices = @transform_5, window_bounds = array<i64: 1, 128>}, {pipeline_mode = #tpu.pipeline_mode<synchronous>, transform_indices = @transform_6, window_bounds = array<i64: 256, 128>}, {pipeline_mode = #tpu.pipeline_mode<synchronous>, transform_indices = @transform_7, window_bounds = array<i64: 1, 128>}, {pipeline_mode = #tpu.pipeline_mode<synchronous>, transform_indices = @transform_8, window_bounds = array<i64: 128, 128>}, {pipeline_mode = #tpu.pipeline_mode<synchronous>, transform_indices = @transform_9, window_bounds = array<i64: 1, 128>}, {pipeline_mode = #tpu.pipeline_mode<synchronous>, transform_indices = @transform_10, window_bounds = array<i64: 1, 128>}, {pipeline_mode = #tpu.pipeline_mode<synchronous>, transform_indices = @transform_11, window_bounds = array<i64: 1, 128>}, {pipeline_mode = #tpu.pipeline_mode<synchronous>, transform_indices = @transform_12, window_bounds = array<i64: 1, 128>}, {pipeline_mode = #tpu.pipeline_mode<synchronous>, transform_indices = @transform_13, window_bounds = array<i64: 1, 128>}, {pipeline_mode = #tpu.pipeline_mode<synchronous>, transform_indices = @transform_14, window_bounds = array<i64: 1, 128>}, {pipeline_mode = #tpu.pipeline_mode<synchronous>, transform_indices = @transform_15, window_bounds = array<i64: 1, 128>}, {transform_indices = @transform_16, window_bounds = array<i64: 8, 128>}, {transform_indices = @transform_17, window_bounds = array<i64: 8, 128>}, {transform_indices = @transform_18, window_bounds = array<i64: 8, 128>}, {transform_indices = @transform_19, window_bounds = array<i64: 8, 8, 128>}]} {
    %c0_i32 = arith.constant 0 : i32
    %0 = arith.cmpi eq, %arg1, %c0_i32 : i32
    %1 = arith.extui %0 : i1 to i32
    %c0_i32_0 = arith.constant 0 : i32
    %2 = arith.cmpi ne, %1, %c0_i32_0 : i32
    scf.if %2 {
      %c0_287 = arith.constant 0 : index
      %c0_288 = arith.constant 0 : index
      %873 = vector.load %arg18[%c0_287, %c0_288] : memref<8x128xf32, #tpu.memory_space<vmem>>, vector<8x128xf32>
      %c0_289 = arith.constant 0 : index
      %c0_290 = arith.constant 0 : index
      %874 = vector.load %arg19[%c0_289, %c0_290] : memref<8x128xf32, #tpu.memory_space<vmem>>, vector<8x128xf32>
      %c0_291 = arith.constant 0 : index
      %c0_292 = arith.constant 0 : index
      %875 = vector.load %arg20[%c0_291, %c0_292] : memref<8x128xf32, #tpu.memory_space<vmem>>, vector<8x128xf32>
      %c0_293 = arith.constant 0 : index
      %c0_294 = arith.constant 0 : index
      %876 = vector.load %arg22[%c0_293, %c0_294] : memref<8x128xf32, #tpu.memory_space<vmem>>, vector<8x128xf32>
      tpu.vector_store %arg22[%c0_293, %c0_294], %873 {strides = array<i32>} : memref<8x128xf32, #tpu.memory_space<vmem>>, vector<8x128xf32>,
      %c0_295 = arith.constant 0 : index
      %c0_296 = arith.constant 0 : index
      %877 = vector.load %arg23[%c0_295, %c0_296] : memref<8x128xf32, #tpu.memory_space<vmem>>, vector<8x128xf32>
      tpu.vector_store %arg23[%c0_295, %c0_296], %873 {strides = array<i32>} : memref<8x128xf32, #tpu.memory_space<vmem>>, vector<8x128xf32>,
      %cst_297 = arith.constant 0.00999999977 : f32
      %878 = vector.broadcast %cst_297 : f32 to vector<8x128xf32>
      %c0_298 = arith.constant 0 : index
      %c0_299 = arith.constant 0 : index
      %879 = vector.load %arg24[%c0_298, %c0_299] : memref<8x128xf32, #tpu.memory_space<vmem>>, vector<8x128xf32>
      tpu.vector_store %arg24[%c0_298, %c0_299], %878 {strides = array<i32>} : memref<8x128xf32, #tpu.memory_space<vmem>>, vector<8x128xf32>,
      %c0_300 = arith.constant 0 : index
      %c0_301 = arith.constant 0 : index
      %880 = vector.load %arg25[%c0_300, %c0_301] : memref<8x128xf32, #tpu.memory_space<vmem>>, vector<8x128xf32>
      tpu.vector_store %arg25[%c0_300, %c0_301], %874 {strides = array<i32>} : memref<8x128xf32, #tpu.memory_space<vmem>>, vector<8x128xf32>,
      %c0_302 = arith.constant 0 : index
      %c0_303 = arith.constant 0 : index
      %881 = vector.load %arg26[%c0_302, %c0_303] : memref<8x128xf32, #tpu.memory_space<vmem>>, vector<8x128xf32>
      tpu.vector_store %arg26[%c0_302, %c0_303], %874 {strides = array<i32>} : memref<8x128xf32, #tpu.memory_space<vmem>>, vector<8x128xf32>,
      %cst_304 = arith.constant 0.00999999977 : f32
      %882 = vector.broadcast %cst_304 : f32 to vector<8x128xf32>
      %c0_305 = arith.constant 0 : index
      %c0_306 = arith.constant 0 : index
      %883 = vector.load %arg27[%c0_305, %c0_306] : memref<8x128xf32, #tpu.memory_space<vmem>>, vector<8x128xf32>
      tpu.vector_store %arg27[%c0_305, %c0_306], %882 {strides = array<i32>} : memref<8x128xf32, #tpu.memory_space<vmem>>, vector<8x128xf32>,
      %c0_307 = arith.constant 0 : index
      %c0_308 = arith.constant 0 : index
      %884 = vector.load %arg28[%c0_307, %c0_308] : memref<8x128xf32, #tpu.memory_space<vmem>>, vector<8x128xf32>
      tpu.vector_store %arg28[%c0_307, %c0_308], %875 {strides = array<i32>} : memref<8x128xf32, #tpu.memory_space<vmem>>, vector<8x128xf32>,
      %c0_309 = arith.constant 0 : index
      %c0_310 = arith.constant 0 : index
      %885 = vector.load %arg29[%c0_309, %c0_310] : memref<8x128xf32, #tpu.memory_space<vmem>>, vector<8x128xf32>
      tpu.vector_store %arg29[%c0_309, %c0_310], %875 {strides = array<i32>} : memref<8x128xf32, #tpu.memory_space<vmem>>, vector<8x128xf32>,
      %cst_311 = arith.constant 0.00999999977 : f32
      %886 = vector.broadcast %cst_311 : f32 to vector<8x128xf32>
      %c0_312 = arith.constant 0 : index
      %c0_313 = arith.constant 0 : index
      %887 = vector.load %arg30[%c0_312, %c0_313] : memref<8x128xf32, #tpu.memory_space<vmem>>, vector<8x128xf32>
      tpu.vector_store %arg30[%c0_312, %c0_313], %886 {strides = array<i32>} : memref<8x128xf32, #tpu.memory_space<vmem>>, vector<8x128xf32>,
    } else {
    }
    %c0 = arith.constant 0 : index
    %c0_1 = arith.constant 0 : index
    %3 = vector.load %arg6[%c0, %c0_1] : memref<128x128xf32, #tpu.memory_space<vmem>>, vector<128x128xf32>
    %c0_2 = arith.constant 0 : index
    %c0_3 = arith.constant 0 : index
    %4 = vector.load %arg8[%c0_2, %c0_3] : memref<256x128xf32, #tpu.memory_space<vmem>>, vector<256x128xf32>
    %c0_4 = arith.constant 0 : index
    %c0_5 = arith.constant 0 : index
    %5 = vector.load %arg10[%c0_4, %c0_5] : memref<128x128xf32, #tpu.memory_space<vmem>>, vector<128x128xf32>
    %c0_6 = arith.constant 0 : index
    %c0_7 = arith.constant 0 : index
    %6 = vector.load %arg7[%c0_6, %c0_7] : memref<1x128xf32, #tpu.memory_space<vmem>>, vector<1x128xf32>
    %7 = vector.shape_cast %6 : vector<1x128xf32> to vector<1x128xf32>
    %8 = vector.broadcast %7 : vector<1x128xf32> to vector<8x128xf32>
    %c0_8 = arith.constant 0 : index
    %c0_9 = arith.constant 0 : index
    %9 = vector.load %arg9[%c0_8, %c0_9] : memref<1x128xf32, #tpu.memory_space<vmem>>, vector<1x128xf32>
    %10 = vector.shape_cast %9 : vector<1x128xf32> to vector<1x128xf32>
    %11 = vector.broadcast %10 : vector<1x128xf32> to vector<8x128xf32>
    %c0_10 = arith.constant 0 : index
    %c0_11 = arith.constant 0 : index
    %12 = vector.load %arg11[%c0_10, %c0_11] : memref<1x128xf32, #tpu.memory_space<vmem>>, vector<1x128xf32>
    %13 = vector.shape_cast %12 : vector<1x128xf32> to vector<1x128xf32>
    %14 = vector.broadcast %13 : vector<1x128xf32> to vector<8x128xf32>
    %c0_12 = arith.constant 0 : index
    %c0_13 = arith.constant 0 : index
    %15 = vector.load %arg12[%c0_12, %c0_13] : memref<1x128xf32, #tpu.memory_space<vmem>>, vector<1x128xf32>
    %16 = vector.shape_cast %15 : vector<1x128xf32> to vector<1x128xf32>
    %17 = vector.broadcast %16 : vector<1x128xf32> to vector<8x128xf32>
    %c0_14 = arith.constant 0 : index
    %c0_15 = arith.constant 0 : index
    %18 = vector.load %arg13[%c0_14, %c0_15] : memref<1x128xf32, #tpu.memory_space<vmem>>, vector<1x128xf32>
    %19 = vector.shape_cast %18 : vector<1x128xf32> to vector<1x128xf32>
    %20 = vector.broadcast %19 : vector<1x128xf32> to vector<8x128xf32>
    %cst = arith.constant 1.000000e+00 : f32
    %21 = vector.broadcast %cst : f32 to vector<8x128xf32>
    %22 = arith.subf %21, %20 : vector<8x128xf32>
    %c0_16 = arith.constant 0 : index
    %c0_17 = arith.constant 0 : index
    %23 = vector.load %arg14[%c0_16, %c0_17] : memref<1x128xf32, #tpu.memory_space<vmem>>, vector<1x128xf32>
    %24 = vector.shape_cast %23 : vector<1x128xf32> to vector<1x128xf32>
    %25 = vector.broadcast %24 : vector<1x128xf32> to vector<8x128xf32>
    %c0_18 = arith.constant 0 : index
    %c0_19 = arith.constant 0 : index
    %26 = vector.load %arg15[%c0_18, %c0_19] : memref<1x128xf32, #tpu.memory_space<vmem>>, vector<1x128xf32>
    %27 = vector.shape_cast %26 : vector<1x128xf32> to vector<1x128xf32>
    %28 = vector.broadcast %27 : vector<1x128xf32> to vector<8x128xf32>
    %cst_20 = arith.constant 1.000000e+00 : f32
    %29 = vector.broadcast %cst_20 : f32 to vector<8x128xf32>
    %30 = arith.subf %29, %28 : vector<8x128xf32>
    %c0_21 = arith.constant 0 : index
    %c0_22 = arith.constant 0 : index
    %31 = vector.load %arg16[%c0_21, %c0_22] : memref<1x128xf32, #tpu.memory_space<vmem>>, vector<1x128xf32>
    %32 = vector.shape_cast %31 : vector<1x128xf32> to vector<1x128xf32>
    %33 = vector.broadcast %32 : vector<1x128xf32> to vector<8x128xf32>
    %c0_23 = arith.constant 0 : index
    %c0_24 = arith.constant 0 : index
    %34 = vector.load %arg17[%c0_23, %c0_24] : memref<1x128xf32, #tpu.memory_space<vmem>>, vector<1x128xf32>
    %35 = vector.shape_cast %34 : vector<1x128xf32> to vector<1x128xf32>
    %36 = vector.broadcast %35 : vector<1x128xf32> to vector<8x128xf32>
    %cst_25 = arith.constant 1.000000e+00 : f32
    %37 = vector.broadcast %cst_25 : f32 to vector<8x128xf32>
    %38 = arith.subf %37, %36 : vector<8x128xf32>
    %c0_26 = arith.constant 0 : index
    %c0_27 = arith.constant 0 : index
    %39 = vector.load %arg22[%c0_26, %c0_27] : memref<8x128xf32, #tpu.memory_space<vmem>>, vector<8x128xf32>
    %c0_28 = arith.constant 0 : index
    %c0_29 = arith.constant 0 : index
    %40 = vector.load %arg23[%c0_28, %c0_29] : memref<8x128xf32, #tpu.memory_space<vmem>>, vector<8x128xf32>
    %c0_30 = arith.constant 0 : index
    %c0_31 = arith.constant 0 : index
    %41 = vector.load %arg24[%c0_30, %c0_31] : memref<8x128xf32, #tpu.memory_space<vmem>>, vector<8x128xf32>
    %c0_32 = arith.constant 0 : index
    %c0_33 = arith.constant 0 : index
    %42 = vector.load %arg25[%c0_32, %c0_33] : memref<8x128xf32, #tpu.memory_space<vmem>>, vector<8x128xf32>
    %c0_34 = arith.constant 0 : index
    %c0_35 = arith.constant 0 : index
    %43 = vector.load %arg26[%c0_34, %c0_35] : memref<8x128xf32, #tpu.memory_space<vmem>>, vector<8x128xf32>
    %c0_36 = arith.constant 0 : index
    %c0_37 = arith.constant 0 : index
    %44 = vector.load %arg27[%c0_36, %c0_37] : memref<8x128xf32, #tpu.memory_space<vmem>>, vector<8x128xf32>
    %c0_38 = arith.constant 0 : index
    %c0_39 = arith.constant 0 : index
    %45 = vector.load %arg28[%c0_38, %c0_39] : memref<8x128xf32, #tpu.memory_space<vmem>>, vector<8x128xf32>
    %c0_40 = arith.constant 0 : index
    %c0_41 = arith.constant 0 : index
    %46 = vector.load %arg29[%c0_40, %c0_41] : memref<8x128xf32, #tpu.memory_space<vmem>>, vector<8x128xf32>
    %c0_42 = arith.constant 0 : index
    %c0_43 = arith.constant 0 : index
    %47 = vector.load %arg30[%c0_42, %c0_43] : memref<8x128xf32, #tpu.memory_space<vmem>>, vector<8x128xf32>
    %c0_i32_44 = arith.constant 0 : i32
    %48 = arith.index_cast %c0_i32_44 : i32 to index
    %c0_45 = arith.constant 0 : index
    %49 = vector.load %arg3[%48, %c0_45] : memref<8x128xf32, #tpu.memory_space<vmem>>, vector<1x128xf32>
    %50 = arith.index_cast %c0_i32_44 : i32 to index
    %c0_46 = arith.constant 0 : index
    %51 = vector.load %arg4[%50, %c0_46] : memref<8x128xf32, #tpu.memory_space<vmem>>, vector<1x128xf32>
    %52 = arith.index_cast %c0_i32_44 : i32 to index
    %c0_47 = arith.constant 0 : index
    %53 = vector.load %arg5[%52, %c0_47] : memref<8x128xf32, #tpu.memory_space<vmem>>, vector<1x128xf32>
    %54 = arith.index_cast %c0_i32_44 : i32 to index
    %c0_48 = arith.constant 0 : index
    %c0_49 = arith.constant 0 : index
    %55 = vector.load %arg2[%54, %c0_48, %c0_49] : memref<8x8x128xf32, #tpu.memory_space<vmem>>, vector<1x8x128xf32>
    %56 = vector.shape_cast %55 : vector<1x8x128xf32> to vector<8x128xf32>
    %cst_50 = arith.constant dense<0.000000e+00> : vector<8x128xf32>
    %57 = tpu.matmul %40, %3, %cst_50 {dimension_numbers = #tpu.dot_dimension_numbers<[1], [0], [0], [1], [0, 0, 1, 1], [], []>} : vector<8x128xf32>, vector<128x128xf32>, vector<8x128xf32> -> vector<8x128xf32>
    %58 = arith.addf %56, %57 : vector<8x128xf32>
    %59 = arith.addf %58, %8 : vector<8x128xf32>
    %60 = arith.mulf %20, %41 : vector<8x128xf32>
    %61 = arith.mulf %22, %40 : vector<8x128xf32>
    %62 = arith.addf %60, %61 : vector<8x128xf32>
    %cst_51 = arith.constant 1.800000e+00 : f32
    %63 = vector.broadcast %cst_51 : f32 to vector<8x128xf32>
    %64 = arith.mulf %63, %62 : vector<8x128xf32>
    %cst_52 = arith.constant 0.00999999977 : f32
    %65 = vector.broadcast %cst_52 : f32 to vector<8x128xf32>
    %66 = arith.addf %65, %64 : vector<8x128xf32>
    %67 = arith.mulf %39, %17 : vector<8x128xf32>
    %cst_53 = arith.constant 1.000000e+00 : f32
    %68 = vector.broadcast %cst_53 : f32 to vector<8x128xf32>
    %69 = arith.mulf %68, %59 : vector<8x128xf32>
    %70 = arith.addf %67, %69 : vector<8x128xf32>
    %71 = arith.mulf %66, %40 : vector<8x128xf32>
    %cst_54 = arith.constant 1.000000e+00 : f32
    %72 = vector.broadcast %cst_54 : f32 to vector<8x128xf32>
    %73 = arith.mulf %71, %72 : vector<8x128xf32>
    %74 = arith.subf %70, %73 : vector<8x128xf32>
    %cst_55 = arith.constant 0.000000e+00 : f32
    %75 = vector.broadcast %cst_55 : f32 to vector<1x128xf32>
    %76 = arith.cmpf oeq, %49, %75 : vector<1x128xf32>
    %77 = vector.shape_cast %76 : vector<1x128xi1> to vector<1x128xi1>
    %78 = vector.broadcast %77 : vector<1x128xi1> to vector<8x128xi1>
    %79 = arith.select %78, %39, %74 : vector<8x128xi1>, vector<8x128xf32>
    %80 = arith.subf %79, %66 : vector<8x128xf32>
    %cst_56 = arith.constant 0.000000e+00 : f32
    %81 = vector.broadcast %cst_56 : f32 to vector<8x128xf32>
    %82 = arith.cmpf ogt, %80, %81 : vector<8x128xf32>
    %83 = arith.extui %82 : vector<8x128xi1> to vector<8x128xi32>
    %84 = arith.sitofp %83 : vector<8x128xi32> to vector<8x128xf32>
    %85 = vector.broadcast %49 : vector<1x128xf32> to vector<8x128xf32>
    %86 = arith.mulf %84, %85 : vector<8x128xf32>
    %87 = tpu.concatenate %86, %43 in 1 : vector<8x128xf32>, vector<8x128xf32> -> vector<8x256xf32>
    %cst_57 = arith.constant dense<0.000000e+00> : vector<8x128xf32>
    %88 = tpu.matmul %87, %4, %cst_57 {dimension_numbers = #tpu.dot_dimension_numbers<[1], [0], [0], [1], [0, 0, 1, 1], [], []>} : vector<8x256xf32>, vector<256x128xf32>, vector<8x128xf32> -> vector<8x128xf32>
    %89 = arith.addf %88, %11 : vector<8x128xf32>
    %90 = arith.mulf %28, %44 : vector<8x128xf32>
    %91 = arith.mulf %30, %43 : vector<8x128xf32>
    %92 = arith.addf %90, %91 : vector<8x128xf32>
    %cst_58 = arith.constant 1.800000e+00 : f32
    %93 = vector.broadcast %cst_58 : f32 to vector<8x128xf32>
    %94 = arith.mulf %93, %92 : vector<8x128xf32>
    %cst_59 = arith.constant 0.00999999977 : f32
    %95 = vector.broadcast %cst_59 : f32 to vector<8x128xf32>
    %96 = arith.addf %95, %94 : vector<8x128xf32>
    %97 = arith.mulf %42, %25 : vector<8x128xf32>
    %cst_60 = arith.constant 1.000000e+00 : f32
    %98 = vector.broadcast %cst_60 : f32 to vector<8x128xf32>
    %99 = arith.mulf %98, %89 : vector<8x128xf32>
    %100 = arith.addf %97, %99 : vector<8x128xf32>
    %101 = arith.mulf %96, %43 : vector<8x128xf32>
    %cst_61 = arith.constant 1.000000e+00 : f32
    %102 = vector.broadcast %cst_61 : f32 to vector<8x128xf32>
    %103 = arith.mulf %101, %102 : vector<8x128xf32>
    %104 = arith.subf %100, %103 : vector<8x128xf32>
    %cst_62 = arith.constant 0.000000e+00 : f32
    %105 = vector.broadcast %cst_62 : f32 to vector<1x128xf32>
    %106 = arith.cmpf oeq, %51, %105 : vector<1x128xf32>
    %107 = vector.shape_cast %106 : vector<1x128xi1> to vector<1x128xi1>
    %108 = vector.broadcast %107 : vector<1x128xi1> to vector<8x128xi1>
    %109 = arith.select %108, %42, %104 : vector<8x128xi1>, vector<8x128xf32>
    %110 = arith.subf %109, %96 : vector<8x128xf32>
    %cst_63 = arith.constant 0.000000e+00 : f32
    %111 = vector.broadcast %cst_63 : f32 to vector<8x128xf32>
    %112 = arith.cmpf ogt, %110, %111 : vector<8x128xf32>
    %113 = arith.extui %112 : vector<8x128xi1> to vector<8x128xi32>
    %114 = arith.sitofp %113 : vector<8x128xi32> to vector<8x128xf32>
    %115 = vector.broadcast %51 : vector<1x128xf32> to vector<8x128xf32>
    %116 = arith.mulf %114, %115 : vector<8x128xf32>
    %cst_64 = arith.constant dense<0.000000e+00> : vector<8x128xf32>
    %117 = tpu.matmul %116, %5, %cst_64 {dimension_numbers = #tpu.dot_dimension_numbers<[1], [0], [0], [1], [0, 0, 1, 1], [], []>} : vector<8x128xf32>, vector<128x128xf32>, vector<8x128xf32> -> vector<8x128xf32>
    %118 = arith.addf %117, %14 : vector<8x128xf32>
    %119 = arith.mulf %36, %47 : vector<8x128xf32>
    %120 = arith.mulf %38, %46 : vector<8x128xf32>
    %121 = arith.addf %119, %120 : vector<8x128xf32>
    %cst_65 = arith.constant 1.800000e+00 : f32
    %122 = vector.broadcast %cst_65 : f32 to vector<8x128xf32>
    %123 = arith.mulf %122, %121 : vector<8x128xf32>
    %cst_66 = arith.constant 0.00999999977 : f32
    %124 = vector.broadcast %cst_66 : f32 to vector<8x128xf32>
    %125 = arith.addf %124, %123 : vector<8x128xf32>
    %126 = arith.mulf %45, %33 : vector<8x128xf32>
    %cst_67 = arith.constant 1.000000e+00 : f32
    %127 = vector.broadcast %cst_67 : f32 to vector<8x128xf32>
    %128 = arith.mulf %127, %118 : vector<8x128xf32>
    %129 = arith.addf %126, %128 : vector<8x128xf32>
    %130 = arith.mulf %125, %46 : vector<8x128xf32>
    %cst_68 = arith.constant 1.000000e+00 : f32
    %131 = vector.broadcast %cst_68 : f32 to vector<8x128xf32>
    %132 = arith.mulf %130, %131 : vector<8x128xf32>
    %133 = arith.subf %129, %132 : vector<8x128xf32>
    %cst_69 = arith.constant 0.000000e+00 : f32
    %134 = vector.broadcast %cst_69 : f32 to vector<1x128xf32>
    %135 = arith.cmpf oeq, %53, %134 : vector<1x128xf32>
    %136 = vector.shape_cast %135 : vector<1x128xi1> to vector<1x128xi1>
    %137 = vector.broadcast %136 : vector<1x128xi1> to vector<8x128xi1>
    %138 = arith.select %137, %45, %133 : vector<8x128xi1>, vector<8x128xf32>
    %139 = arith.subf %138, %125 : vector<8x128xf32>
    %cst_70 = arith.constant 0.000000e+00 : f32
    %140 = vector.broadcast %cst_70 : f32 to vector<8x128xf32>
    %141 = arith.cmpf ogt, %139, %140 : vector<8x128xf32>
    %142 = arith.extui %141 : vector<8x128xi1> to vector<8x128xi32>
    %143 = arith.sitofp %142 : vector<8x128xi32> to vector<8x128xf32>
    %144 = vector.broadcast %53 : vector<1x128xf32> to vector<8x128xf32>
    %145 = arith.mulf %143, %144 : vector<8x128xf32>
    %146 = arith.index_cast %c0_i32_44 : i32 to index
    %c0_71 = arith.constant 0 : index
    %c0_72 = arith.constant 0 : index
    %147 = vector.load %arg21[%146, %c0_71, %c0_72] : memref<8x8x128xf32, #tpu.memory_space<vmem>>, vector<1x8x128xf32>
    %148 = vector.shape_cast %147 : vector<1x8x128xf32> to vector<8x128xf32>
    %149 = vector.shape_cast %145 : vector<8x128xf32> to vector<1x8x128xf32>
    tpu.vector_store %arg21[%146, %c0_71, %c0_72], %149 {strides = array<i32>} : memref<8x8x128xf32, #tpu.memory_space<vmem>>, vector<1x8x128xf32>,
    %c1_i32 = arith.constant 1 : i32
    %150 = arith.index_cast %c1_i32 : i32 to index
    %c0_73 = arith.constant 0 : index
    %151 = vector.load %arg3[%150, %c0_73] : memref<8x128xf32, #tpu.memory_space<vmem>>, vector<1x128xf32>
    %152 = arith.index_cast %c1_i32 : i32 to index
    %c0_74 = arith.constant 0 : index
    %153 = vector.load %arg4[%152, %c0_74] : memref<8x128xf32, #tpu.memory_space<vmem>>, vector<1x128xf32>
    %154 = arith.index_cast %c1_i32 : i32 to index
    %c0_75 = arith.constant 0 : index
    %155 = vector.load %arg5[%154, %c0_75] : memref<8x128xf32, #tpu.memory_space<vmem>>, vector<1x128xf32>
    %156 = arith.index_cast %c1_i32 : i32 to index
    %c0_76 = arith.constant 0 : index
    %c0_77 = arith.constant 0 : index
    %157 = vector.load %arg2[%156, %c0_76, %c0_77] : memref<8x8x128xf32, #tpu.memory_space<vmem>>, vector<1x8x128xf32>
    %158 = vector.shape_cast %157 : vector<1x8x128xf32> to vector<8x128xf32>
    %cst_78 = arith.constant dense<0.000000e+00> : vector<8x128xf32>
    %159 = tpu.matmul %86, %3, %cst_78 {dimension_numbers = #tpu.dot_dimension_numbers<[1], [0], [0], [1], [0, 0, 1, 1], [], []>} : vector<8x128xf32>, vector<128x128xf32>, vector<8x128xf32> -> vector<8x128xf32>
    %160 = arith.addf %158, %159 : vector<8x128xf32>
    %161 = arith.addf %160, %8 : vector<8x128xf32>
    %162 = arith.mulf %20, %62 : vector<8x128xf32>
    %163 = arith.mulf %22, %86 : vector<8x128xf32>
    %164 = arith.addf %162, %163 : vector<8x128xf32>
    %cst_79 = arith.constant 1.800000e+00 : f32
    %165 = vector.broadcast %cst_79 : f32 to vector<8x128xf32>
    %166 = arith.mulf %165, %164 : vector<8x128xf32>
    %cst_80 = arith.constant 0.00999999977 : f32
    %167 = vector.broadcast %cst_80 : f32 to vector<8x128xf32>
    %168 = arith.addf %167, %166 : vector<8x128xf32>
    %169 = arith.mulf %79, %17 : vector<8x128xf32>
    %cst_81 = arith.constant 1.000000e+00 : f32
    %170 = vector.broadcast %cst_81 : f32 to vector<8x128xf32>
    %171 = arith.mulf %170, %161 : vector<8x128xf32>
    %172 = arith.addf %169, %171 : vector<8x128xf32>
    %173 = arith.mulf %168, %86 : vector<8x128xf32>
    %cst_82 = arith.constant 1.000000e+00 : f32
    %174 = vector.broadcast %cst_82 : f32 to vector<8x128xf32>
    %175 = arith.mulf %173, %174 : vector<8x128xf32>
    %176 = arith.subf %172, %175 : vector<8x128xf32>
    %cst_83 = arith.constant 0.000000e+00 : f32
    %177 = vector.broadcast %cst_83 : f32 to vector<1x128xf32>
    %178 = arith.cmpf oeq, %151, %177 : vector<1x128xf32>
    %179 = vector.shape_cast %178 : vector<1x128xi1> to vector<1x128xi1>
    %180 = vector.broadcast %179 : vector<1x128xi1> to vector<8x128xi1>
    %181 = arith.select %180, %79, %176 : vector<8x128xi1>, vector<8x128xf32>
    %182 = arith.subf %181, %168 : vector<8x128xf32>
    %cst_84 = arith.constant 0.000000e+00 : f32
    %183 = vector.broadcast %cst_84 : f32 to vector<8x128xf32>
    %184 = arith.cmpf ogt, %182, %183 : vector<8x128xf32>
    %185 = arith.extui %184 : vector<8x128xi1> to vector<8x128xi32>
    %186 = arith.sitofp %185 : vector<8x128xi32> to vector<8x128xf32>
    %187 = vector.broadcast %151 : vector<1x128xf32> to vector<8x128xf32>
    %188 = arith.mulf %186, %187 : vector<8x128xf32>
    %189 = tpu.concatenate %188, %116 in 1 : vector<8x128xf32>, vector<8x128xf32> -> vector<8x256xf32>
    %cst_85 = arith.constant dense<0.000000e+00> : vector<8x128xf32>
    %190 = tpu.matmul %189, %4, %cst_85 {dimension_numbers = #tpu.dot_dimension_numbers<[1], [0], [0], [1], [0, 0, 1, 1], [], []>} : vector<8x256xf32>, vector<256x128xf32>, vector<8x128xf32> -> vector<8x128xf32>
    %191 = arith.addf %190, %11 : vector<8x128xf32>
    %192 = arith.mulf %28, %92 : vector<8x128xf32>
    %193 = arith.mulf %30, %116 : vector<8x128xf32>
    %194 = arith.addf %192, %193 : vector<8x128xf32>
    %cst_86 = arith.constant 1.800000e+00 : f32
    %195 = vector.broadcast %cst_86 : f32 to vector<8x128xf32>
    %196 = arith.mulf %195, %194 : vector<8x128xf32>
    %cst_87 = arith.constant 0.00999999977 : f32
    %197 = vector.broadcast %cst_87 : f32 to vector<8x128xf32>
    %198 = arith.addf %197, %196 : vector<8x128xf32>
    %199 = arith.mulf %109, %25 : vector<8x128xf32>
    %cst_88 = arith.constant 1.000000e+00 : f32
    %200 = vector.broadcast %cst_88 : f32 to vector<8x128xf32>
    %201 = arith.mulf %200, %191 : vector<8x128xf32>
    %202 = arith.addf %199, %201 : vector<8x128xf32>
    %203 = arith.mulf %198, %116 : vector<8x128xf32>
    %cst_89 = arith.constant 1.000000e+00 : f32
    %204 = vector.broadcast %cst_89 : f32 to vector<8x128xf32>
    %205 = arith.mulf %203, %204 : vector<8x128xf32>
    %206 = arith.subf %202, %205 : vector<8x128xf32>
    %cst_90 = arith.constant 0.000000e+00 : f32
    %207 = vector.broadcast %cst_90 : f32 to vector<1x128xf32>
    %208 = arith.cmpf oeq, %153, %207 : vector<1x128xf32>
    %209 = vector.shape_cast %208 : vector<1x128xi1> to vector<1x128xi1>
    %210 = vector.broadcast %209 : vector<1x128xi1> to vector<8x128xi1>
    %211 = arith.select %210, %109, %206 : vector<8x128xi1>, vector<8x128xf32>
    %212 = arith.subf %211, %198 : vector<8x128xf32>
    %cst_91 = arith.constant 0.000000e+00 : f32
    %213 = vector.broadcast %cst_91 : f32 to vector<8x128xf32>
    %214 = arith.cmpf ogt, %212, %213 : vector<8x128xf32>
    %215 = arith.extui %214 : vector<8x128xi1> to vector<8x128xi32>
    %216 = arith.sitofp %215 : vector<8x128xi32> to vector<8x128xf32>
    %217 = vector.broadcast %153 : vector<1x128xf32> to vector<8x128xf32>
    %218 = arith.mulf %216, %217 : vector<8x128xf32>
    %cst_92 = arith.constant dense<0.000000e+00> : vector<8x128xf32>
    %219 = tpu.matmul %218, %5, %cst_92 {dimension_numbers = #tpu.dot_dimension_numbers<[1], [0], [0], [1], [0, 0, 1, 1], [], []>} : vector<8x128xf32>, vector<128x128xf32>, vector<8x128xf32> -> vector<8x128xf32>
    %220 = arith.addf %219, %14 : vector<8x128xf32>
    %221 = arith.mulf %36, %121 : vector<8x128xf32>
    %222 = arith.mulf %38, %145 : vector<8x128xf32>
    %223 = arith.addf %221, %222 : vector<8x128xf32>
    %cst_93 = arith.constant 1.800000e+00 : f32
    %224 = vector.broadcast %cst_93 : f32 to vector<8x128xf32>
    %225 = arith.mulf %224, %223 : vector<8x128xf32>
    %cst_94 = arith.constant 0.00999999977 : f32
    %226 = vector.broadcast %cst_94 : f32 to vector<8x128xf32>
    %227 = arith.addf %226, %225 : vector<8x128xf32>
    %228 = arith.mulf %138, %33 : vector<8x128xf32>
    %cst_95 = arith.constant 1.000000e+00 : f32
    %229 = vector.broadcast %cst_95 : f32 to vector<8x128xf32>
    %230 = arith.mulf %229, %220 : vector<8x128xf32>
    %231 = arith.addf %228, %230 : vector<8x128xf32>
    %232 = arith.mulf %227, %145 : vector<8x128xf32>
    %cst_96 = arith.constant 1.000000e+00 : f32
    %233 = vector.broadcast %cst_96 : f32 to vector<8x128xf32>
    %234 = arith.mulf %232, %233 : vector<8x128xf32>
    %235 = arith.subf %231, %234 : vector<8x128xf32>
    %cst_97 = arith.constant 0.000000e+00 : f32
    %236 = vector.broadcast %cst_97 : f32 to vector<1x128xf32>
    %237 = arith.cmpf oeq, %155, %236 : vector<1x128xf32>
    %238 = vector.shape_cast %237 : vector<1x128xi1> to vector<1x128xi1>
    %239 = vector.broadcast %238 : vector<1x128xi1> to vector<8x128xi1>
    %240 = arith.select %239, %138, %235 : vector<8x128xi1>, vector<8x128xf32>
    %241 = arith.subf %240, %227 : vector<8x128xf32>
    %cst_98 = arith.constant 0.000000e+00 : f32
    %242 = vector.broadcast %cst_98 : f32 to vector<8x128xf32>
    %243 = arith.cmpf ogt, %241, %242 : vector<8x128xf32>
    %244 = arith.extui %243 : vector<8x128xi1> to vector<8x128xi32>
    %245 = arith.sitofp %244 : vector<8x128xi32> to vector<8x128xf32>
    %246 = vector.broadcast %155 : vector<1x128xf32> to vector<8x128xf32>
    %247 = arith.mulf %245, %246 : vector<8x128xf32>
    %248 = arith.index_cast %c1_i32 : i32 to index
    %c0_99 = arith.constant 0 : index
    %c0_100 = arith.constant 0 : index
    %249 = vector.load %arg21[%248, %c0_99, %c0_100] : memref<8x8x128xf32, #tpu.memory_space<vmem>>, vector<1x8x128xf32>
    %250 = vector.shape_cast %249 : vector<1x8x128xf32> to vector<8x128xf32>
    %251 = vector.shape_cast %247 : vector<8x128xf32> to vector<1x8x128xf32>
    tpu.vector_store %arg21[%248, %c0_99, %c0_100], %251 {strides = array<i32>} : memref<8x8x128xf32, #tpu.memory_space<vmem>>, vector<1x8x128xf32>,
    %c2_i32 = arith.constant 2 : i32
    %252 = arith.index_cast %c2_i32 : i32 to index
    %c0_101 = arith.constant 0 : index
    %253 = vector.load %arg3[%252, %c0_101] : memref<8x128xf32, #tpu.memory_space<vmem>>, vector<1x128xf32>
    %254 = arith.index_cast %c2_i32 : i32 to index
    %c0_102 = arith.constant 0 : index
    %255 = vector.load %arg4[%254, %c0_102] : memref<8x128xf32, #tpu.memory_space<vmem>>, vector<1x128xf32>
    %256 = arith.index_cast %c2_i32 : i32 to index
    %c0_103 = arith.constant 0 : index
    %257 = vector.load %arg5[%256, %c0_103] : memref<8x128xf32, #tpu.memory_space<vmem>>, vector<1x128xf32>
    %258 = arith.index_cast %c2_i32 : i32 to index
    %c0_104 = arith.constant 0 : index
    %c0_105 = arith.constant 0 : index
    %259 = vector.load %arg2[%258, %c0_104, %c0_105] : memref<8x8x128xf32, #tpu.memory_space<vmem>>, vector<1x8x128xf32>
    %260 = vector.shape_cast %259 : vector<1x8x128xf32> to vector<8x128xf32>
    %cst_106 = arith.constant dense<0.000000e+00> : vector<8x128xf32>
    %261 = tpu.matmul %188, %3, %cst_106 {dimension_numbers = #tpu.dot_dimension_numbers<[1], [0], [0], [1], [0, 0, 1, 1], [], []>} : vector<8x128xf32>, vector<128x128xf32>, vector<8x128xf32> -> vector<8x128xf32>
    %262 = arith.addf %260, %261 : vector<8x128xf32>
    %263 = arith.addf %262, %8 : vector<8x128xf32>
    %264 = arith.mulf %20, %164 : vector<8x128xf32>
    %265 = arith.mulf %22, %188 : vector<8x128xf32>
    %266 = arith.addf %264, %265 : vector<8x128xf32>
    %cst_107 = arith.constant 1.800000e+00 : f32
    %267 = vector.broadcast %cst_107 : f32 to vector<8x128xf32>
    %268 = arith.mulf %267, %266 : vector<8x128xf32>
    %cst_108 = arith.constant 0.00999999977 : f32
    %269 = vector.broadcast %cst_108 : f32 to vector<8x128xf32>
    %270 = arith.addf %269, %268 : vector<8x128xf32>
    %271 = arith.mulf %181, %17 : vector<8x128xf32>
    %cst_109 = arith.constant 1.000000e+00 : f32
    %272 = vector.broadcast %cst_109 : f32 to vector<8x128xf32>
    %273 = arith.mulf %272, %263 : vector<8x128xf32>
    %274 = arith.addf %271, %273 : vector<8x128xf32>
    %275 = arith.mulf %270, %188 : vector<8x128xf32>
    %cst_110 = arith.constant 1.000000e+00 : f32
    %276 = vector.broadcast %cst_110 : f32 to vector<8x128xf32>
    %277 = arith.mulf %275, %276 : vector<8x128xf32>
    %278 = arith.subf %274, %277 : vector<8x128xf32>
    %cst_111 = arith.constant 0.000000e+00 : f32
    %279 = vector.broadcast %cst_111 : f32 to vector<1x128xf32>
    %280 = arith.cmpf oeq, %253, %279 : vector<1x128xf32>
    %281 = vector.shape_cast %280 : vector<1x128xi1> to vector<1x128xi1>
    %282 = vector.broadcast %281 : vector<1x128xi1> to vector<8x128xi1>
    %283 = arith.select %282, %181, %278 : vector<8x128xi1>, vector<8x128xf32>
    %284 = arith.subf %283, %270 : vector<8x128xf32>
    %cst_112 = arith.constant 0.000000e+00 : f32
    %285 = vector.broadcast %cst_112 : f32 to vector<8x128xf32>
    %286 = arith.cmpf ogt, %284, %285 : vector<8x128xf32>
    %287 = arith.extui %286 : vector<8x128xi1> to vector<8x128xi32>
    %288 = arith.sitofp %287 : vector<8x128xi32> to vector<8x128xf32>
    %289 = vector.broadcast %253 : vector<1x128xf32> to vector<8x128xf32>
    %290 = arith.mulf %288, %289 : vector<8x128xf32>
    %291 = tpu.concatenate %290, %218 in 1 : vector<8x128xf32>, vector<8x128xf32> -> vector<8x256xf32>
    %cst_113 = arith.constant dense<0.000000e+00> : vector<8x128xf32>
    %292 = tpu.matmul %291, %4, %cst_113 {dimension_numbers = #tpu.dot_dimension_numbers<[1], [0], [0], [1], [0, 0, 1, 1], [], []>} : vector<8x256xf32>, vector<256x128xf32>, vector<8x128xf32> -> vector<8x128xf32>
    %293 = arith.addf %292, %11 : vector<8x128xf32>
    %294 = arith.mulf %28, %194 : vector<8x128xf32>
    %295 = arith.mulf %30, %218 : vector<8x128xf32>
    %296 = arith.addf %294, %295 : vector<8x128xf32>
    %cst_114 = arith.constant 1.800000e+00 : f32
    %297 = vector.broadcast %cst_114 : f32 to vector<8x128xf32>
    %298 = arith.mulf %297, %296 : vector<8x128xf32>
    %cst_115 = arith.constant 0.00999999977 : f32
    %299 = vector.broadcast %cst_115 : f32 to vector<8x128xf32>
    %300 = arith.addf %299, %298 : vector<8x128xf32>
    %301 = arith.mulf %211, %25 : vector<8x128xf32>
    %cst_116 = arith.constant 1.000000e+00 : f32
    %302 = vector.broadcast %cst_116 : f32 to vector<8x128xf32>
    %303 = arith.mulf %302, %293 : vector<8x128xf32>
    %304 = arith.addf %301, %303 : vector<8x128xf32>
    %305 = arith.mulf %300, %218 : vector<8x128xf32>
    %cst_117 = arith.constant 1.000000e+00 : f32
    %306 = vector.broadcast %cst_117 : f32 to vector<8x128xf32>
    %307 = arith.mulf %305, %306 : vector<8x128xf32>
    %308 = arith.subf %304, %307 : vector<8x128xf32>
    %cst_118 = arith.constant 0.000000e+00 : f32
    %309 = vector.broadcast %cst_118 : f32 to vector<1x128xf32>
    %310 = arith.cmpf oeq, %255, %309 : vector<1x128xf32>
    %311 = vector.shape_cast %310 : vector<1x128xi1> to vector<1x128xi1>
    %312 = vector.broadcast %311 : vector<1x128xi1> to vector<8x128xi1>
    %313 = arith.select %312, %211, %308 : vector<8x128xi1>, vector<8x128xf32>
    %314 = arith.subf %313, %300 : vector<8x128xf32>
    %cst_119 = arith.constant 0.000000e+00 : f32
    %315 = vector.broadcast %cst_119 : f32 to vector<8x128xf32>
    %316 = arith.cmpf ogt, %314, %315 : vector<8x128xf32>
    %317 = arith.extui %316 : vector<8x128xi1> to vector<8x128xi32>
    %318 = arith.sitofp %317 : vector<8x128xi32> to vector<8x128xf32>
    %319 = vector.broadcast %255 : vector<1x128xf32> to vector<8x128xf32>
    %320 = arith.mulf %318, %319 : vector<8x128xf32>
    %cst_120 = arith.constant dense<0.000000e+00> : vector<8x128xf32>
    %321 = tpu.matmul %320, %5, %cst_120 {dimension_numbers = #tpu.dot_dimension_numbers<[1], [0], [0], [1], [0, 0, 1, 1], [], []>} : vector<8x128xf32>, vector<128x128xf32>, vector<8x128xf32> -> vector<8x128xf32>
    %322 = arith.addf %321, %14 : vector<8x128xf32>
    %323 = arith.mulf %36, %223 : vector<8x128xf32>
    %324 = arith.mulf %38, %247 : vector<8x128xf32>
    %325 = arith.addf %323, %324 : vector<8x128xf32>
    %cst_121 = arith.constant 1.800000e+00 : f32
    %326 = vector.broadcast %cst_121 : f32 to vector<8x128xf32>
    %327 = arith.mulf %326, %325 : vector<8x128xf32>
    %cst_122 = arith.constant 0.00999999977 : f32
    %328 = vector.broadcast %cst_122 : f32 to vector<8x128xf32>
    %329 = arith.addf %328, %327 : vector<8x128xf32>
    %330 = arith.mulf %240, %33 : vector<8x128xf32>
    %cst_123 = arith.constant 1.000000e+00 : f32
    %331 = vector.broadcast %cst_123 : f32 to vector<8x128xf32>
    %332 = arith.mulf %331, %322 : vector<8x128xf32>
    %333 = arith.addf %330, %332 : vector<8x128xf32>
    %334 = arith.mulf %329, %247 : vector<8x128xf32>
    %cst_124 = arith.constant 1.000000e+00 : f32
    %335 = vector.broadcast %cst_124 : f32 to vector<8x128xf32>
    %336 = arith.mulf %334, %335 : vector<8x128xf32>
    %337 = arith.subf %333, %336 : vector<8x128xf32>
    %cst_125 = arith.constant 0.000000e+00 : f32
    %338 = vector.broadcast %cst_125 : f32 to vector<1x128xf32>
    %339 = arith.cmpf oeq, %257, %338 : vector<1x128xf32>
    %340 = vector.shape_cast %339 : vector<1x128xi1> to vector<1x128xi1>
    %341 = vector.broadcast %340 : vector<1x128xi1> to vector<8x128xi1>
    %342 = arith.select %341, %240, %337 : vector<8x128xi1>, vector<8x128xf32>
    %343 = arith.subf %342, %329 : vector<8x128xf32>
    %cst_126 = arith.constant 0.000000e+00 : f32
    %344 = vector.broadcast %cst_126 : f32 to vector<8x128xf32>
    %345 = arith.cmpf ogt, %343, %344 : vector<8x128xf32>
    %346 = arith.extui %345 : vector<8x128xi1> to vector<8x128xi32>
    %347 = arith.sitofp %346 : vector<8x128xi32> to vector<8x128xf32>
    %348 = vector.broadcast %257 : vector<1x128xf32> to vector<8x128xf32>
    %349 = arith.mulf %347, %348 : vector<8x128xf32>
    %350 = arith.index_cast %c2_i32 : i32 to index
    %c0_127 = arith.constant 0 : index
    %c0_128 = arith.constant 0 : index
    %351 = vector.load %arg21[%350, %c0_127, %c0_128] : memref<8x8x128xf32, #tpu.memory_space<vmem>>, vector<1x8x128xf32>
    %352 = vector.shape_cast %351 : vector<1x8x128xf32> to vector<8x128xf32>
    %353 = vector.shape_cast %349 : vector<8x128xf32> to vector<1x8x128xf32>
    tpu.vector_store %arg21[%350, %c0_127, %c0_128], %353 {strides = array<i32>} : memref<8x8x128xf32, #tpu.memory_space<vmem>>, vector<1x8x128xf32>,
    %c3_i32 = arith.constant 3 : i32
    %354 = arith.index_cast %c3_i32 : i32 to index
    %c0_129 = arith.constant 0 : index
    %355 = vector.load %arg3[%354, %c0_129] : memref<8x128xf32, #tpu.memory_space<vmem>>, vector<1x128xf32>
    %356 = arith.index_cast %c3_i32 : i32 to index
    %c0_130 = arith.constant 0 : index
    %357 = vector.load %arg4[%356, %c0_130] : memref<8x128xf32, #tpu.memory_space<vmem>>, vector<1x128xf32>
    %358 = arith.index_cast %c3_i32 : i32 to index
    %c0_131 = arith.constant 0 : index
    %359 = vector.load %arg5[%358, %c0_131] : memref<8x128xf32, #tpu.memory_space<vmem>>, vector<1x128xf32>
    %360 = arith.index_cast %c3_i32 : i32 to index
    %c0_132 = arith.constant 0 : index
    %c0_133 = arith.constant 0 : index
    %361 = vector.load %arg2[%360, %c0_132, %c0_133] : memref<8x8x128xf32, #tpu.memory_space<vmem>>, vector<1x8x128xf32>
    %362 = vector.shape_cast %361 : vector<1x8x128xf32> to vector<8x128xf32>
    %cst_134 = arith.constant dense<0.000000e+00> : vector<8x128xf32>
    %363 = tpu.matmul %290, %3, %cst_134 {dimension_numbers = #tpu.dot_dimension_numbers<[1], [0], [0], [1], [0, 0, 1, 1], [], []>} : vector<8x128xf32>, vector<128x128xf32>, vector<8x128xf32> -> vector<8x128xf32>
    %364 = arith.addf %362, %363 : vector<8x128xf32>
    %365 = arith.addf %364, %8 : vector<8x128xf32>
    %366 = arith.mulf %20, %266 : vector<8x128xf32>
    %367 = arith.mulf %22, %290 : vector<8x128xf32>
    %368 = arith.addf %366, %367 : vector<8x128xf32>
    %cst_135 = arith.constant 1.800000e+00 : f32
    %369 = vector.broadcast %cst_135 : f32 to vector<8x128xf32>
    %370 = arith.mulf %369, %368 : vector<8x128xf32>
    %cst_136 = arith.constant 0.00999999977 : f32
    %371 = vector.broadcast %cst_136 : f32 to vector<8x128xf32>
    %372 = arith.addf %371, %370 : vector<8x128xf32>
    %373 = arith.mulf %283, %17 : vector<8x128xf32>
    %cst_137 = arith.constant 1.000000e+00 : f32
    %374 = vector.broadcast %cst_137 : f32 to vector<8x128xf32>
    %375 = arith.mulf %374, %365 : vector<8x128xf32>
    %376 = arith.addf %373, %375 : vector<8x128xf32>
    %377 = arith.mulf %372, %290 : vector<8x128xf32>
    %cst_138 = arith.constant 1.000000e+00 : f32
    %378 = vector.broadcast %cst_138 : f32 to vector<8x128xf32>
    %379 = arith.mulf %377, %378 : vector<8x128xf32>
    %380 = arith.subf %376, %379 : vector<8x128xf32>
    %cst_139 = arith.constant 0.000000e+00 : f32
    %381 = vector.broadcast %cst_139 : f32 to vector<1x128xf32>
    %382 = arith.cmpf oeq, %355, %381 : vector<1x128xf32>
    %383 = vector.shape_cast %382 : vector<1x128xi1> to vector<1x128xi1>
    %384 = vector.broadcast %383 : vector<1x128xi1> to vector<8x128xi1>
    %385 = arith.select %384, %283, %380 : vector<8x128xi1>, vector<8x128xf32>
    %386 = arith.subf %385, %372 : vector<8x128xf32>
    %cst_140 = arith.constant 0.000000e+00 : f32
    %387 = vector.broadcast %cst_140 : f32 to vector<8x128xf32>
    %388 = arith.cmpf ogt, %386, %387 : vector<8x128xf32>
    %389 = arith.extui %388 : vector<8x128xi1> to vector<8x128xi32>
    %390 = arith.sitofp %389 : vector<8x128xi32> to vector<8x128xf32>
    %391 = vector.broadcast %355 : vector<1x128xf32> to vector<8x128xf32>
    %392 = arith.mulf %390, %391 : vector<8x128xf32>
    %393 = tpu.concatenate %392, %320 in 1 : vector<8x128xf32>, vector<8x128xf32> -> vector<8x256xf32>
    %cst_141 = arith.constant dense<0.000000e+00> : vector<8x128xf32>
    %394 = tpu.matmul %393, %4, %cst_141 {dimension_numbers = #tpu.dot_dimension_numbers<[1], [0], [0], [1], [0, 0, 1, 1], [], []>} : vector<8x256xf32>, vector<256x128xf32>, vector<8x128xf32> -> vector<8x128xf32>
    %395 = arith.addf %394, %11 : vector<8x128xf32>
    %396 = arith.mulf %28, %296 : vector<8x128xf32>
    %397 = arith.mulf %30, %320 : vector<8x128xf32>
    %398 = arith.addf %396, %397 : vector<8x128xf32>
    %cst_142 = arith.constant 1.800000e+00 : f32
    %399 = vector.broadcast %cst_142 : f32 to vector<8x128xf32>
    %400 = arith.mulf %399, %398 : vector<8x128xf32>
    %cst_143 = arith.constant 0.00999999977 : f32
    %401 = vector.broadcast %cst_143 : f32 to vector<8x128xf32>
    %402 = arith.addf %401, %400 : vector<8x128xf32>
    %403 = arith.mulf %313, %25 : vector<8x128xf32>
    %cst_144 = arith.constant 1.000000e+00 : f32
    %404 = vector.broadcast %cst_144 : f32 to vector<8x128xf32>
    %405 = arith.mulf %404, %395 : vector<8x128xf32>
    %406 = arith.addf %403, %405 : vector<8x128xf32>
    %407 = arith.mulf %402, %320 : vector<8x128xf32>
    %cst_145 = arith.constant 1.000000e+00 : f32
    %408 = vector.broadcast %cst_145 : f32 to vector<8x128xf32>
    %409 = arith.mulf %407, %408 : vector<8x128xf32>
    %410 = arith.subf %406, %409 : vector<8x128xf32>
    %cst_146 = arith.constant 0.000000e+00 : f32
    %411 = vector.broadcast %cst_146 : f32 to vector<1x128xf32>
    %412 = arith.cmpf oeq, %357, %411 : vector<1x128xf32>
    %413 = vector.shape_cast %412 : vector<1x128xi1> to vector<1x128xi1>
    %414 = vector.broadcast %413 : vector<1x128xi1> to vector<8x128xi1>
    %415 = arith.select %414, %313, %410 : vector<8x128xi1>, vector<8x128xf32>
    %416 = arith.subf %415, %402 : vector<8x128xf32>
    %cst_147 = arith.constant 0.000000e+00 : f32
    %417 = vector.broadcast %cst_147 : f32 to vector<8x128xf32>
    %418 = arith.cmpf ogt, %416, %417 : vector<8x128xf32>
    %419 = arith.extui %418 : vector<8x128xi1> to vector<8x128xi32>
    %420 = arith.sitofp %419 : vector<8x128xi32> to vector<8x128xf32>
    %421 = vector.broadcast %357 : vector<1x128xf32> to vector<8x128xf32>
    %422 = arith.mulf %420, %421 : vector<8x128xf32>
    %cst_148 = arith.constant dense<0.000000e+00> : vector<8x128xf32>
    %423 = tpu.matmul %422, %5, %cst_148 {dimension_numbers = #tpu.dot_dimension_numbers<[1], [0], [0], [1], [0, 0, 1, 1], [], []>} : vector<8x128xf32>, vector<128x128xf32>, vector<8x128xf32> -> vector<8x128xf32>
    %424 = arith.addf %423, %14 : vector<8x128xf32>
    %425 = arith.mulf %36, %325 : vector<8x128xf32>
    %426 = arith.mulf %38, %349 : vector<8x128xf32>
    %427 = arith.addf %425, %426 : vector<8x128xf32>
    %cst_149 = arith.constant 1.800000e+00 : f32
    %428 = vector.broadcast %cst_149 : f32 to vector<8x128xf32>
    %429 = arith.mulf %428, %427 : vector<8x128xf32>
    %cst_150 = arith.constant 0.00999999977 : f32
    %430 = vector.broadcast %cst_150 : f32 to vector<8x128xf32>
    %431 = arith.addf %430, %429 : vector<8x128xf32>
    %432 = arith.mulf %342, %33 : vector<8x128xf32>
    %cst_151 = arith.constant 1.000000e+00 : f32
    %433 = vector.broadcast %cst_151 : f32 to vector<8x128xf32>
    %434 = arith.mulf %433, %424 : vector<8x128xf32>
    %435 = arith.addf %432, %434 : vector<8x128xf32>
    %436 = arith.mulf %431, %349 : vector<8x128xf32>
    %cst_152 = arith.constant 1.000000e+00 : f32
    %437 = vector.broadcast %cst_152 : f32 to vector<8x128xf32>
    %438 = arith.mulf %436, %437 : vector<8x128xf32>
    %439 = arith.subf %435, %438 : vector<8x128xf32>
    %cst_153 = arith.constant 0.000000e+00 : f32
    %440 = vector.broadcast %cst_153 : f32 to vector<1x128xf32>
    %441 = arith.cmpf oeq, %359, %440 : vector<1x128xf32>
    %442 = vector.shape_cast %441 : vector<1x128xi1> to vector<1x128xi1>
    %443 = vector.broadcast %442 : vector<1x128xi1> to vector<8x128xi1>
    %444 = arith.select %443, %342, %439 : vector<8x128xi1>, vector<8x128xf32>
    %445 = arith.subf %444, %431 : vector<8x128xf32>
    %cst_154 = arith.constant 0.000000e+00 : f32
    %446 = vector.broadcast %cst_154 : f32 to vector<8x128xf32>
    %447 = arith.cmpf ogt, %445, %446 : vector<8x128xf32>
    %448 = arith.extui %447 : vector<8x128xi1> to vector<8x128xi32>
    %449 = arith.sitofp %448 : vector<8x128xi32> to vector<8x128xf32>
    %450 = vector.broadcast %359 : vector<1x128xf32> to vector<8x128xf32>
    %451 = arith.mulf %449, %450 : vector<8x128xf32>
    %452 = arith.index_cast %c3_i32 : i32 to index
    %c0_155 = arith.constant 0 : index
    %c0_156 = arith.constant 0 : index
    %453 = vector.load %arg21[%452, %c0_155, %c0_156] : memref<8x8x128xf32, #tpu.memory_space<vmem>>, vector<1x8x128xf32>
    %454 = vector.shape_cast %453 : vector<1x8x128xf32> to vector<8x128xf32>
    %455 = vector.shape_cast %451 : vector<8x128xf32> to vector<1x8x128xf32>
    tpu.vector_store %arg21[%452, %c0_155, %c0_156], %455 {strides = array<i32>} : memref<8x8x128xf32, #tpu.memory_space<vmem>>, vector<1x8x128xf32>,
    %c4_i32 = arith.constant 4 : i32
    %456 = arith.index_cast %c4_i32 : i32 to index
    %c0_157 = arith.constant 0 : index
    %457 = vector.load %arg3[%456, %c0_157] : memref<8x128xf32, #tpu.memory_space<vmem>>, vector<1x128xf32>
    %458 = arith.index_cast %c4_i32 : i32 to index
    %c0_158 = arith.constant 0 : index
    %459 = vector.load %arg4[%458, %c0_158] : memref<8x128xf32, #tpu.memory_space<vmem>>, vector<1x128xf32>
    %460 = arith.index_cast %c4_i32 : i32 to index
    %c0_159 = arith.constant 0 : index
    %461 = vector.load %arg5[%460, %c0_159] : memref<8x128xf32, #tpu.memory_space<vmem>>, vector<1x128xf32>
    %462 = arith.index_cast %c4_i32 : i32 to index
    %c0_160 = arith.constant 0 : index
    %c0_161 = arith.constant 0 : index
    %463 = vector.load %arg2[%462, %c0_160, %c0_161] : memref<8x8x128xf32, #tpu.memory_space<vmem>>, vector<1x8x128xf32>
    %464 = vector.shape_cast %463 : vector<1x8x128xf32> to vector<8x128xf32>
    %cst_162 = arith.constant dense<0.000000e+00> : vector<8x128xf32>
    %465 = tpu.matmul %392, %3, %cst_162 {dimension_numbers = #tpu.dot_dimension_numbers<[1], [0], [0], [1], [0, 0, 1, 1], [], []>} : vector<8x128xf32>, vector<128x128xf32>, vector<8x128xf32> -> vector<8x128xf32>
    %466 = arith.addf %464, %465 : vector<8x128xf32>
    %467 = arith.addf %466, %8 : vector<8x128xf32>
    %468 = arith.mulf %20, %368 : vector<8x128xf32>
    %469 = arith.mulf %22, %392 : vector<8x128xf32>
    %470 = arith.addf %468, %469 : vector<8x128xf32>
    %cst_163 = arith.constant 1.800000e+00 : f32
    %471 = vector.broadcast %cst_163 : f32 to vector<8x128xf32>
    %472 = arith.mulf %471, %470 : vector<8x128xf32>
    %cst_164 = arith.constant 0.00999999977 : f32
    %473 = vector.broadcast %cst_164 : f32 to vector<8x128xf32>
    %474 = arith.addf %473, %472 : vector<8x128xf32>
    %475 = arith.mulf %385, %17 : vector<8x128xf32>
    %cst_165 = arith.constant 1.000000e+00 : f32
    %476 = vector.broadcast %cst_165 : f32 to vector<8x128xf32>
    %477 = arith.mulf %476, %467 : vector<8x128xf32>
    %478 = arith.addf %475, %477 : vector<8x128xf32>
    %479 = arith.mulf %474, %392 : vector<8x128xf32>
    %cst_166 = arith.constant 1.000000e+00 : f32
    %480 = vector.broadcast %cst_166 : f32 to vector<8x128xf32>
    %481 = arith.mulf %479, %480 : vector<8x128xf32>
    %482 = arith.subf %478, %481 : vector<8x128xf32>
    %cst_167 = arith.constant 0.000000e+00 : f32
    %483 = vector.broadcast %cst_167 : f32 to vector<1x128xf32>
    %484 = arith.cmpf oeq, %457, %483 : vector<1x128xf32>
    %485 = vector.shape_cast %484 : vector<1x128xi1> to vector<1x128xi1>
    %486 = vector.broadcast %485 : vector<1x128xi1> to vector<8x128xi1>
    %487 = arith.select %486, %385, %482 : vector<8x128xi1>, vector<8x128xf32>
    %488 = arith.subf %487, %474 : vector<8x128xf32>
    %cst_168 = arith.constant 0.000000e+00 : f32
    %489 = vector.broadcast %cst_168 : f32 to vector<8x128xf32>
    %490 = arith.cmpf ogt, %488, %489 : vector<8x128xf32>
    %491 = arith.extui %490 : vector<8x128xi1> to vector<8x128xi32>
    %492 = arith.sitofp %491 : vector<8x128xi32> to vector<8x128xf32>
    %493 = vector.broadcast %457 : vector<1x128xf32> to vector<8x128xf32>
    %494 = arith.mulf %492, %493 : vector<8x128xf32>
    %495 = tpu.concatenate %494, %422 in 1 : vector<8x128xf32>, vector<8x128xf32> -> vector<8x256xf32>
    %cst_169 = arith.constant dense<0.000000e+00> : vector<8x128xf32>
    %496 = tpu.matmul %495, %4, %cst_169 {dimension_numbers = #tpu.dot_dimension_numbers<[1], [0], [0], [1], [0, 0, 1, 1], [], []>} : vector<8x256xf32>, vector<256x128xf32>, vector<8x128xf32> -> vector<8x128xf32>
    %497 = arith.addf %496, %11 : vector<8x128xf32>
    %498 = arith.mulf %28, %398 : vector<8x128xf32>
    %499 = arith.mulf %30, %422 : vector<8x128xf32>
    %500 = arith.addf %498, %499 : vector<8x128xf32>
    %cst_170 = arith.constant 1.800000e+00 : f32
    %501 = vector.broadcast %cst_170 : f32 to vector<8x128xf32>
    %502 = arith.mulf %501, %500 : vector<8x128xf32>
    %cst_171 = arith.constant 0.00999999977 : f32
    %503 = vector.broadcast %cst_171 : f32 to vector<8x128xf32>
    %504 = arith.addf %503, %502 : vector<8x128xf32>
    %505 = arith.mulf %415, %25 : vector<8x128xf32>
    %cst_172 = arith.constant 1.000000e+00 : f32
    %506 = vector.broadcast %cst_172 : f32 to vector<8x128xf32>
    %507 = arith.mulf %506, %497 : vector<8x128xf32>
    %508 = arith.addf %505, %507 : vector<8x128xf32>
    %509 = arith.mulf %504, %422 : vector<8x128xf32>
    %cst_173 = arith.constant 1.000000e+00 : f32
    %510 = vector.broadcast %cst_173 : f32 to vector<8x128xf32>
    %511 = arith.mulf %509, %510 : vector<8x128xf32>
    %512 = arith.subf %508, %511 : vector<8x128xf32>
    %cst_174 = arith.constant 0.000000e+00 : f32
    %513 = vector.broadcast %cst_174 : f32 to vector<1x128xf32>
    %514 = arith.cmpf oeq, %459, %513 : vector<1x128xf32>
    %515 = vector.shape_cast %514 : vector<1x128xi1> to vector<1x128xi1>
    %516 = vector.broadcast %515 : vector<1x128xi1> to vector<8x128xi1>
    %517 = arith.select %516, %415, %512 : vector<8x128xi1>, vector<8x128xf32>
    %518 = arith.subf %517, %504 : vector<8x128xf32>
    %cst_175 = arith.constant 0.000000e+00 : f32
    %519 = vector.broadcast %cst_175 : f32 to vector<8x128xf32>
    %520 = arith.cmpf ogt, %518, %519 : vector<8x128xf32>
    %521 = arith.extui %520 : vector<8x128xi1> to vector<8x128xi32>
    %522 = arith.sitofp %521 : vector<8x128xi32> to vector<8x128xf32>
    %523 = vector.broadcast %459 : vector<1x128xf32> to vector<8x128xf32>
    %524 = arith.mulf %522, %523 : vector<8x128xf32>
    %cst_176 = arith.constant dense<0.000000e+00> : vector<8x128xf32>
    %525 = tpu.matmul %524, %5, %cst_176 {dimension_numbers = #tpu.dot_dimension_numbers<[1], [0], [0], [1], [0, 0, 1, 1], [], []>} : vector<8x128xf32>, vector<128x128xf32>, vector<8x128xf32> -> vector<8x128xf32>
    %526 = arith.addf %525, %14 : vector<8x128xf32>
    %527 = arith.mulf %36, %427 : vector<8x128xf32>
    %528 = arith.mulf %38, %451 : vector<8x128xf32>
    %529 = arith.addf %527, %528 : vector<8x128xf32>
    %cst_177 = arith.constant 1.800000e+00 : f32
    %530 = vector.broadcast %cst_177 : f32 to vector<8x128xf32>
    %531 = arith.mulf %530, %529 : vector<8x128xf32>
    %cst_178 = arith.constant 0.00999999977 : f32
    %532 = vector.broadcast %cst_178 : f32 to vector<8x128xf32>
    %533 = arith.addf %532, %531 : vector<8x128xf32>
    %534 = arith.mulf %444, %33 : vector<8x128xf32>
    %cst_179 = arith.constant 1.000000e+00 : f32
    %535 = vector.broadcast %cst_179 : f32 to vector<8x128xf32>
    %536 = arith.mulf %535, %526 : vector<8x128xf32>
    %537 = arith.addf %534, %536 : vector<8x128xf32>
    %538 = arith.mulf %533, %451 : vector<8x128xf32>
    %cst_180 = arith.constant 1.000000e+00 : f32
    %539 = vector.broadcast %cst_180 : f32 to vector<8x128xf32>
    %540 = arith.mulf %538, %539 : vector<8x128xf32>
    %541 = arith.subf %537, %540 : vector<8x128xf32>
    %cst_181 = arith.constant 0.000000e+00 : f32
    %542 = vector.broadcast %cst_181 : f32 to vector<1x128xf32>
    %543 = arith.cmpf oeq, %461, %542 : vector<1x128xf32>
    %544 = vector.shape_cast %543 : vector<1x128xi1> to vector<1x128xi1>
    %545 = vector.broadcast %544 : vector<1x128xi1> to vector<8x128xi1>
    %546 = arith.select %545, %444, %541 : vector<8x128xi1>, vector<8x128xf32>
    %547 = arith.subf %546, %533 : vector<8x128xf32>
    %cst_182 = arith.constant 0.000000e+00 : f32
    %548 = vector.broadcast %cst_182 : f32 to vector<8x128xf32>
    %549 = arith.cmpf ogt, %547, %548 : vector<8x128xf32>
    %550 = arith.extui %549 : vector<8x128xi1> to vector<8x128xi32>
    %551 = arith.sitofp %550 : vector<8x128xi32> to vector<8x128xf32>
    %552 = vector.broadcast %461 : vector<1x128xf32> to vector<8x128xf32>
    %553 = arith.mulf %551, %552 : vector<8x128xf32>
    %554 = arith.index_cast %c4_i32 : i32 to index
    %c0_183 = arith.constant 0 : index
    %c0_184 = arith.constant 0 : index
    %555 = vector.load %arg21[%554, %c0_183, %c0_184] : memref<8x8x128xf32, #tpu.memory_space<vmem>>, vector<1x8x128xf32>
    %556 = vector.shape_cast %555 : vector<1x8x128xf32> to vector<8x128xf32>
    %557 = vector.shape_cast %553 : vector<8x128xf32> to vector<1x8x128xf32>
    tpu.vector_store %arg21[%554, %c0_183, %c0_184], %557 {strides = array<i32>} : memref<8x8x128xf32, #tpu.memory_space<vmem>>, vector<1x8x128xf32>,
    %c5_i32 = arith.constant 5 : i32
    %558 = arith.index_cast %c5_i32 : i32 to index
    %c0_185 = arith.constant 0 : index
    %559 = vector.load %arg3[%558, %c0_185] : memref<8x128xf32, #tpu.memory_space<vmem>>, vector<1x128xf32>
    %560 = arith.index_cast %c5_i32 : i32 to index
    %c0_186 = arith.constant 0 : index
    %561 = vector.load %arg4[%560, %c0_186] : memref<8x128xf32, #tpu.memory_space<vmem>>, vector<1x128xf32>
    %562 = arith.index_cast %c5_i32 : i32 to index
    %c0_187 = arith.constant 0 : index
    %563 = vector.load %arg5[%562, %c0_187] : memref<8x128xf32, #tpu.memory_space<vmem>>, vector<1x128xf32>
    %564 = arith.index_cast %c5_i32 : i32 to index
    %c0_188 = arith.constant 0 : index
    %c0_189 = arith.constant 0 : index
    %565 = vector.load %arg2[%564, %c0_188, %c0_189] : memref<8x8x128xf32, #tpu.memory_space<vmem>>, vector<1x8x128xf32>
    %566 = vector.shape_cast %565 : vector<1x8x128xf32> to vector<8x128xf32>
    %cst_190 = arith.constant dense<0.000000e+00> : vector<8x128xf32>
    %567 = tpu.matmul %494, %3, %cst_190 {dimension_numbers = #tpu.dot_dimension_numbers<[1], [0], [0], [1], [0, 0, 1, 1], [], []>} : vector<8x128xf32>, vector<128x128xf32>, vector<8x128xf32> -> vector<8x128xf32>
    %568 = arith.addf %566, %567 : vector<8x128xf32>
    %569 = arith.addf %568, %8 : vector<8x128xf32>
    %570 = arith.mulf %20, %470 : vector<8x128xf32>
    %571 = arith.mulf %22, %494 : vector<8x128xf32>
    %572 = arith.addf %570, %571 : vector<8x128xf32>
    %cst_191 = arith.constant 1.800000e+00 : f32
    %573 = vector.broadcast %cst_191 : f32 to vector<8x128xf32>
    %574 = arith.mulf %573, %572 : vector<8x128xf32>
    %cst_192 = arith.constant 0.00999999977 : f32
    %575 = vector.broadcast %cst_192 : f32 to vector<8x128xf32>
    %576 = arith.addf %575, %574 : vector<8x128xf32>
    %577 = arith.mulf %487, %17 : vector<8x128xf32>
    %cst_193 = arith.constant 1.000000e+00 : f32
    %578 = vector.broadcast %cst_193 : f32 to vector<8x128xf32>
    %579 = arith.mulf %578, %569 : vector<8x128xf32>
    %580 = arith.addf %577, %579 : vector<8x128xf32>
    %581 = arith.mulf %576, %494 : vector<8x128xf32>
    %cst_194 = arith.constant 1.000000e+00 : f32
    %582 = vector.broadcast %cst_194 : f32 to vector<8x128xf32>
    %583 = arith.mulf %581, %582 : vector<8x128xf32>
    %584 = arith.subf %580, %583 : vector<8x128xf32>
    %cst_195 = arith.constant 0.000000e+00 : f32
    %585 = vector.broadcast %cst_195 : f32 to vector<1x128xf32>
    %586 = arith.cmpf oeq, %559, %585 : vector<1x128xf32>
    %587 = vector.shape_cast %586 : vector<1x128xi1> to vector<1x128xi1>
    %588 = vector.broadcast %587 : vector<1x128xi1> to vector<8x128xi1>
    %589 = arith.select %588, %487, %584 : vector<8x128xi1>, vector<8x128xf32>
    %590 = arith.subf %589, %576 : vector<8x128xf32>
    %cst_196 = arith.constant 0.000000e+00 : f32
    %591 = vector.broadcast %cst_196 : f32 to vector<8x128xf32>
    %592 = arith.cmpf ogt, %590, %591 : vector<8x128xf32>
    %593 = arith.extui %592 : vector<8x128xi1> to vector<8x128xi32>
    %594 = arith.sitofp %593 : vector<8x128xi32> to vector<8x128xf32>
    %595 = vector.broadcast %559 : vector<1x128xf32> to vector<8x128xf32>
    %596 = arith.mulf %594, %595 : vector<8x128xf32>
    %597 = tpu.concatenate %596, %524 in 1 : vector<8x128xf32>, vector<8x128xf32> -> vector<8x256xf32>
    %cst_197 = arith.constant dense<0.000000e+00> : vector<8x128xf32>
    %598 = tpu.matmul %597, %4, %cst_197 {dimension_numbers = #tpu.dot_dimension_numbers<[1], [0], [0], [1], [0, 0, 1, 1], [], []>} : vector<8x256xf32>, vector<256x128xf32>, vector<8x128xf32> -> vector<8x128xf32>
    %599 = arith.addf %598, %11 : vector<8x128xf32>
    %600 = arith.mulf %28, %500 : vector<8x128xf32>
    %601 = arith.mulf %30, %524 : vector<8x128xf32>
    %602 = arith.addf %600, %601 : vector<8x128xf32>
    %cst_198 = arith.constant 1.800000e+00 : f32
    %603 = vector.broadcast %cst_198 : f32 to vector<8x128xf32>
    %604 = arith.mulf %603, %602 : vector<8x128xf32>
    %cst_199 = arith.constant 0.00999999977 : f32
    %605 = vector.broadcast %cst_199 : f32 to vector<8x128xf32>
    %606 = arith.addf %605, %604 : vector<8x128xf32>
    %607 = arith.mulf %517, %25 : vector<8x128xf32>
    %cst_200 = arith.constant 1.000000e+00 : f32
    %608 = vector.broadcast %cst_200 : f32 to vector<8x128xf32>
    %609 = arith.mulf %608, %599 : vector<8x128xf32>
    %610 = arith.addf %607, %609 : vector<8x128xf32>
    %611 = arith.mulf %606, %524 : vector<8x128xf32>
    %cst_201 = arith.constant 1.000000e+00 : f32
    %612 = vector.broadcast %cst_201 : f32 to vector<8x128xf32>
    %613 = arith.mulf %611, %612 : vector<8x128xf32>
    %614 = arith.subf %610, %613 : vector<8x128xf32>
    %cst_202 = arith.constant 0.000000e+00 : f32
    %615 = vector.broadcast %cst_202 : f32 to vector<1x128xf32>
    %616 = arith.cmpf oeq, %561, %615 : vector<1x128xf32>
    %617 = vector.shape_cast %616 : vector<1x128xi1> to vector<1x128xi1>
    %618 = vector.broadcast %617 : vector<1x128xi1> to vector<8x128xi1>
    %619 = arith.select %618, %517, %614 : vector<8x128xi1>, vector<8x128xf32>
    %620 = arith.subf %619, %606 : vector<8x128xf32>
    %cst_203 = arith.constant 0.000000e+00 : f32
    %621 = vector.broadcast %cst_203 : f32 to vector<8x128xf32>
    %622 = arith.cmpf ogt, %620, %621 : vector<8x128xf32>
    %623 = arith.extui %622 : vector<8x128xi1> to vector<8x128xi32>
    %624 = arith.sitofp %623 : vector<8x128xi32> to vector<8x128xf32>
    %625 = vector.broadcast %561 : vector<1x128xf32> to vector<8x128xf32>
    %626 = arith.mulf %624, %625 : vector<8x128xf32>
    %cst_204 = arith.constant dense<0.000000e+00> : vector<8x128xf32>
    %627 = tpu.matmul %626, %5, %cst_204 {dimension_numbers = #tpu.dot_dimension_numbers<[1], [0], [0], [1], [0, 0, 1, 1], [], []>} : vector<8x128xf32>, vector<128x128xf32>, vector<8x128xf32> -> vector<8x128xf32>
    %628 = arith.addf %627, %14 : vector<8x128xf32>
    %629 = arith.mulf %36, %529 : vector<8x128xf32>
    %630 = arith.mulf %38, %553 : vector<8x128xf32>
    %631 = arith.addf %629, %630 : vector<8x128xf32>
    %cst_205 = arith.constant 1.800000e+00 : f32
    %632 = vector.broadcast %cst_205 : f32 to vector<8x128xf32>
    %633 = arith.mulf %632, %631 : vector<8x128xf32>
    %cst_206 = arith.constant 0.00999999977 : f32
    %634 = vector.broadcast %cst_206 : f32 to vector<8x128xf32>
    %635 = arith.addf %634, %633 : vector<8x128xf32>
    %636 = arith.mulf %546, %33 : vector<8x128xf32>
    %cst_207 = arith.constant 1.000000e+00 : f32
    %637 = vector.broadcast %cst_207 : f32 to vector<8x128xf32>
    %638 = arith.mulf %637, %628 : vector<8x128xf32>
    %639 = arith.addf %636, %638 : vector<8x128xf32>
    %640 = arith.mulf %635, %553 : vector<8x128xf32>
    %cst_208 = arith.constant 1.000000e+00 : f32
    %641 = vector.broadcast %cst_208 : f32 to vector<8x128xf32>
    %642 = arith.mulf %640, %641 : vector<8x128xf32>
    %643 = arith.subf %639, %642 : vector<8x128xf32>
    %cst_209 = arith.constant 0.000000e+00 : f32
    %644 = vector.broadcast %cst_209 : f32 to vector<1x128xf32>
    %645 = arith.cmpf oeq, %563, %644 : vector<1x128xf32>
    %646 = vector.shape_cast %645 : vector<1x128xi1> to vector<1x128xi1>
    %647 = vector.broadcast %646 : vector<1x128xi1> to vector<8x128xi1>
    %648 = arith.select %647, %546, %643 : vector<8x128xi1>, vector<8x128xf32>
    %649 = arith.subf %648, %635 : vector<8x128xf32>
    %cst_210 = arith.constant 0.000000e+00 : f32
    %650 = vector.broadcast %cst_210 : f32 to vector<8x128xf32>
    %651 = arith.cmpf ogt, %649, %650 : vector<8x128xf32>
    %652 = arith.extui %651 : vector<8x128xi1> to vector<8x128xi32>
    %653 = arith.sitofp %652 : vector<8x128xi32> to vector<8x128xf32>
    %654 = vector.broadcast %563 : vector<1x128xf32> to vector<8x128xf32>
    %655 = arith.mulf %653, %654 : vector<8x128xf32>
    %656 = arith.index_cast %c5_i32 : i32 to index
    %c0_211 = arith.constant 0 : index
    %c0_212 = arith.constant 0 : index
    %657 = vector.load %arg21[%656, %c0_211, %c0_212] : memref<8x8x128xf32, #tpu.memory_space<vmem>>, vector<1x8x128xf32>
    %658 = vector.shape_cast %657 : vector<1x8x128xf32> to vector<8x128xf32>
    %659 = vector.shape_cast %655 : vector<8x128xf32> to vector<1x8x128xf32>
    tpu.vector_store %arg21[%656, %c0_211, %c0_212], %659 {strides = array<i32>} : memref<8x8x128xf32, #tpu.memory_space<vmem>>, vector<1x8x128xf32>,
    %c6_i32 = arith.constant 6 : i32
    %660 = arith.index_cast %c6_i32 : i32 to index
    %c0_213 = arith.constant 0 : index
    %661 = vector.load %arg3[%660, %c0_213] : memref<8x128xf32, #tpu.memory_space<vmem>>, vector<1x128xf32>
    %662 = arith.index_cast %c6_i32 : i32 to index
    %c0_214 = arith.constant 0 : index
    %663 = vector.load %arg4[%662, %c0_214] : memref<8x128xf32, #tpu.memory_space<vmem>>, vector<1x128xf32>
    %664 = arith.index_cast %c6_i32 : i32 to index
    %c0_215 = arith.constant 0 : index
    %665 = vector.load %arg5[%664, %c0_215] : memref<8x128xf32, #tpu.memory_space<vmem>>, vector<1x128xf32>
    %666 = arith.index_cast %c6_i32 : i32 to index
    %c0_216 = arith.constant 0 : index
    %c0_217 = arith.constant 0 : index
    %667 = vector.load %arg2[%666, %c0_216, %c0_217] : memref<8x8x128xf32, #tpu.memory_space<vmem>>, vector<1x8x128xf32>
    %668 = vector.shape_cast %667 : vector<1x8x128xf32> to vector<8x128xf32>
    %cst_218 = arith.constant dense<0.000000e+00> : vector<8x128xf32>
    %669 = tpu.matmul %596, %3, %cst_218 {dimension_numbers = #tpu.dot_dimension_numbers<[1], [0], [0], [1], [0, 0, 1, 1], [], []>} : vector<8x128xf32>, vector<128x128xf32>, vector<8x128xf32> -> vector<8x128xf32>
    %670 = arith.addf %668, %669 : vector<8x128xf32>
    %671 = arith.addf %670, %8 : vector<8x128xf32>
    %672 = arith.mulf %20, %572 : vector<8x128xf32>
    %673 = arith.mulf %22, %596 : vector<8x128xf32>
    %674 = arith.addf %672, %673 : vector<8x128xf32>
    %cst_219 = arith.constant 1.800000e+00 : f32
    %675 = vector.broadcast %cst_219 : f32 to vector<8x128xf32>
    %676 = arith.mulf %675, %674 : vector<8x128xf32>
    %cst_220 = arith.constant 0.00999999977 : f32
    %677 = vector.broadcast %cst_220 : f32 to vector<8x128xf32>
    %678 = arith.addf %677, %676 : vector<8x128xf32>
    %679 = arith.mulf %589, %17 : vector<8x128xf32>
    %cst_221 = arith.constant 1.000000e+00 : f32
    %680 = vector.broadcast %cst_221 : f32 to vector<8x128xf32>
    %681 = arith.mulf %680, %671 : vector<8x128xf32>
    %682 = arith.addf %679, %681 : vector<8x128xf32>
    %683 = arith.mulf %678, %596 : vector<8x128xf32>
    %cst_222 = arith.constant 1.000000e+00 : f32
    %684 = vector.broadcast %cst_222 : f32 to vector<8x128xf32>
    %685 = arith.mulf %683, %684 : vector<8x128xf32>
    %686 = arith.subf %682, %685 : vector<8x128xf32>
    %cst_223 = arith.constant 0.000000e+00 : f32
    %687 = vector.broadcast %cst_223 : f32 to vector<1x128xf32>
    %688 = arith.cmpf oeq, %661, %687 : vector<1x128xf32>
    %689 = vector.shape_cast %688 : vector<1x128xi1> to vector<1x128xi1>
    %690 = vector.broadcast %689 : vector<1x128xi1> to vector<8x128xi1>
    %691 = arith.select %690, %589, %686 : vector<8x128xi1>, vector<8x128xf32>
    %692 = arith.subf %691, %678 : vector<8x128xf32>
    %cst_224 = arith.constant 0.000000e+00 : f32
    %693 = vector.broadcast %cst_224 : f32 to vector<8x128xf32>
    %694 = arith.cmpf ogt, %692, %693 : vector<8x128xf32>
    %695 = arith.extui %694 : vector<8x128xi1> to vector<8x128xi32>
    %696 = arith.sitofp %695 : vector<8x128xi32> to vector<8x128xf32>
    %697 = vector.broadcast %661 : vector<1x128xf32> to vector<8x128xf32>
    %698 = arith.mulf %696, %697 : vector<8x128xf32>
    %699 = tpu.concatenate %698, %626 in 1 : vector<8x128xf32>, vector<8x128xf32> -> vector<8x256xf32>
    %cst_225 = arith.constant dense<0.000000e+00> : vector<8x128xf32>
    %700 = tpu.matmul %699, %4, %cst_225 {dimension_numbers = #tpu.dot_dimension_numbers<[1], [0], [0], [1], [0, 0, 1, 1], [], []>} : vector<8x256xf32>, vector<256x128xf32>, vector<8x128xf32> -> vector<8x128xf32>
    %701 = arith.addf %700, %11 : vector<8x128xf32>
    %702 = arith.mulf %28, %602 : vector<8x128xf32>
    %703 = arith.mulf %30, %626 : vector<8x128xf32>
    %704 = arith.addf %702, %703 : vector<8x128xf32>
    %cst_226 = arith.constant 1.800000e+00 : f32
    %705 = vector.broadcast %cst_226 : f32 to vector<8x128xf32>
    %706 = arith.mulf %705, %704 : vector<8x128xf32>
    %cst_227 = arith.constant 0.00999999977 : f32
    %707 = vector.broadcast %cst_227 : f32 to vector<8x128xf32>
    %708 = arith.addf %707, %706 : vector<8x128xf32>
    %709 = arith.mulf %619, %25 : vector<8x128xf32>
    %cst_228 = arith.constant 1.000000e+00 : f32
    %710 = vector.broadcast %cst_228 : f32 to vector<8x128xf32>
    %711 = arith.mulf %710, %701 : vector<8x128xf32>
    %712 = arith.addf %709, %711 : vector<8x128xf32>
    %713 = arith.mulf %708, %626 : vector<8x128xf32>
    %cst_229 = arith.constant 1.000000e+00 : f32
    %714 = vector.broadcast %cst_229 : f32 to vector<8x128xf32>
    %715 = arith.mulf %713, %714 : vector<8x128xf32>
    %716 = arith.subf %712, %715 : vector<8x128xf32>
    %cst_230 = arith.constant 0.000000e+00 : f32
    %717 = vector.broadcast %cst_230 : f32 to vector<1x128xf32>
    %718 = arith.cmpf oeq, %663, %717 : vector<1x128xf32>
    %719 = vector.shape_cast %718 : vector<1x128xi1> to vector<1x128xi1>
    %720 = vector.broadcast %719 : vector<1x128xi1> to vector<8x128xi1>
    %721 = arith.select %720, %619, %716 : vector<8x128xi1>, vector<8x128xf32>
    %722 = arith.subf %721, %708 : vector<8x128xf32>
    %cst_231 = arith.constant 0.000000e+00 : f32
    %723 = vector.broadcast %cst_231 : f32 to vector<8x128xf32>
    %724 = arith.cmpf ogt, %722, %723 : vector<8x128xf32>
    %725 = arith.extui %724 : vector<8x128xi1> to vector<8x128xi32>
    %726 = arith.sitofp %725 : vector<8x128xi32> to vector<8x128xf32>
    %727 = vector.broadcast %663 : vector<1x128xf32> to vector<8x128xf32>
    %728 = arith.mulf %726, %727 : vector<8x128xf32>
    %cst_232 = arith.constant dense<0.000000e+00> : vector<8x128xf32>
    %729 = tpu.matmul %728, %5, %cst_232 {dimension_numbers = #tpu.dot_dimension_numbers<[1], [0], [0], [1], [0, 0, 1, 1], [], []>} : vector<8x128xf32>, vector<128x128xf32>, vector<8x128xf32> -> vector<8x128xf32>
    %730 = arith.addf %729, %14 : vector<8x128xf32>
    %731 = arith.mulf %36, %631 : vector<8x128xf32>
    %732 = arith.mulf %38, %655 : vector<8x128xf32>
    %733 = arith.addf %731, %732 : vector<8x128xf32>
    %cst_233 = arith.constant 1.800000e+00 : f32
    %734 = vector.broadcast %cst_233 : f32 to vector<8x128xf32>
    %735 = arith.mulf %734, %733 : vector<8x128xf32>
    %cst_234 = arith.constant 0.00999999977 : f32
    %736 = vector.broadcast %cst_234 : f32 to vector<8x128xf32>
    %737 = arith.addf %736, %735 : vector<8x128xf32>
    %738 = arith.mulf %648, %33 : vector<8x128xf32>
    %cst_235 = arith.constant 1.000000e+00 : f32
    %739 = vector.broadcast %cst_235 : f32 to vector<8x128xf32>
    %740 = arith.mulf %739, %730 : vector<8x128xf32>
    %741 = arith.addf %738, %740 : vector<8x128xf32>
    %742 = arith.mulf %737, %655 : vector<8x128xf32>
    %cst_236 = arith.constant 1.000000e+00 : f32
    %743 = vector.broadcast %cst_236 : f32 to vector<8x128xf32>
    %744 = arith.mulf %742, %743 : vector<8x128xf32>
    %745 = arith.subf %741, %744 : vector<8x128xf32>
    %cst_237 = arith.constant 0.000000e+00 : f32
    %746 = vector.broadcast %cst_237 : f32 to vector<1x128xf32>
    %747 = arith.cmpf oeq, %665, %746 : vector<1x128xf32>
    %748 = vector.shape_cast %747 : vector<1x128xi1> to vector<1x128xi1>
    %749 = vector.broadcast %748 : vector<1x128xi1> to vector<8x128xi1>
    %750 = arith.select %749, %648, %745 : vector<8x128xi1>, vector<8x128xf32>
    %751 = arith.subf %750, %737 : vector<8x128xf32>
    %cst_238 = arith.constant 0.000000e+00 : f32
    %752 = vector.broadcast %cst_238 : f32 to vector<8x128xf32>
    %753 = arith.cmpf ogt, %751, %752 : vector<8x128xf32>
    %754 = arith.extui %753 : vector<8x128xi1> to vector<8x128xi32>
    %755 = arith.sitofp %754 : vector<8x128xi32> to vector<8x128xf32>
    %756 = vector.broadcast %665 : vector<1x128xf32> to vector<8x128xf32>
    %757 = arith.mulf %755, %756 : vector<8x128xf32>
    %758 = arith.index_cast %c6_i32 : i32 to index
    %c0_239 = arith.constant 0 : index
    %c0_240 = arith.constant 0 : index
    %759 = vector.load %arg21[%758, %c0_239, %c0_240] : memref<8x8x128xf32, #tpu.memory_space<vmem>>, vector<1x8x128xf32>
    %760 = vector.shape_cast %759 : vector<1x8x128xf32> to vector<8x128xf32>
    %761 = vector.shape_cast %757 : vector<8x128xf32> to vector<1x8x128xf32>
    tpu.vector_store %arg21[%758, %c0_239, %c0_240], %761 {strides = array<i32>} : memref<8x8x128xf32, #tpu.memory_space<vmem>>, vector<1x8x128xf32>,
    %c7_i32 = arith.constant 7 : i32
    %762 = arith.index_cast %c7_i32 : i32 to index
    %c0_241 = arith.constant 0 : index
    %763 = vector.load %arg3[%762, %c0_241] : memref<8x128xf32, #tpu.memory_space<vmem>>, vector<1x128xf32>
    %764 = arith.index_cast %c7_i32 : i32 to index
    %c0_242 = arith.constant 0 : index
    %765 = vector.load %arg4[%764, %c0_242] : memref<8x128xf32, #tpu.memory_space<vmem>>, vector<1x128xf32>
    %766 = arith.index_cast %c7_i32 : i32 to index
    %c0_243 = arith.constant 0 : index
    %767 = vector.load %arg5[%766, %c0_243] : memref<8x128xf32, #tpu.memory_space<vmem>>, vector<1x128xf32>
    %768 = arith.index_cast %c7_i32 : i32 to index
    %c0_244 = arith.constant 0 : index
    %c0_245 = arith.constant 0 : index
    %769 = vector.load %arg2[%768, %c0_244, %c0_245] : memref<8x8x128xf32, #tpu.memory_space<vmem>>, vector<1x8x128xf32>
    %770 = vector.shape_cast %769 : vector<1x8x128xf32> to vector<8x128xf32>
    %cst_246 = arith.constant dense<0.000000e+00> : vector<8x128xf32>
    %771 = tpu.matmul %698, %3, %cst_246 {dimension_numbers = #tpu.dot_dimension_numbers<[1], [0], [0], [1], [0, 0, 1, 1], [], []>} : vector<8x128xf32>, vector<128x128xf32>, vector<8x128xf32> -> vector<8x128xf32>
    %772 = arith.addf %770, %771 : vector<8x128xf32>
    %773 = arith.addf %772, %8 : vector<8x128xf32>
    %774 = arith.mulf %20, %674 : vector<8x128xf32>
    %775 = arith.mulf %22, %698 : vector<8x128xf32>
    %776 = arith.addf %774, %775 : vector<8x128xf32>
    %cst_247 = arith.constant 1.800000e+00 : f32
    %777 = vector.broadcast %cst_247 : f32 to vector<8x128xf32>
    %778 = arith.mulf %777, %776 : vector<8x128xf32>
    %cst_248 = arith.constant 0.00999999977 : f32
    %779 = vector.broadcast %cst_248 : f32 to vector<8x128xf32>
    %780 = arith.addf %779, %778 : vector<8x128xf32>
    %781 = arith.mulf %691, %17 : vector<8x128xf32>
    %cst_249 = arith.constant 1.000000e+00 : f32
    %782 = vector.broadcast %cst_249 : f32 to vector<8x128xf32>
    %783 = arith.mulf %782, %773 : vector<8x128xf32>
    %784 = arith.addf %781, %783 : vector<8x128xf32>
    %785 = arith.mulf %780, %698 : vector<8x128xf32>
    %cst_250 = arith.constant 1.000000e+00 : f32
    %786 = vector.broadcast %cst_250 : f32 to vector<8x128xf32>
    %787 = arith.mulf %785, %786 : vector<8x128xf32>
    %788 = arith.subf %784, %787 : vector<8x128xf32>
    %cst_251 = arith.constant 0.000000e+00 : f32
    %789 = vector.broadcast %cst_251 : f32 to vector<1x128xf32>
    %790 = arith.cmpf oeq, %763, %789 : vector<1x128xf32>
    %791 = vector.shape_cast %790 : vector<1x128xi1> to vector<1x128xi1>
    %792 = vector.broadcast %791 : vector<1x128xi1> to vector<8x128xi1>
    %793 = arith.select %792, %691, %788 : vector<8x128xi1>, vector<8x128xf32>
    %794 = arith.subf %793, %780 : vector<8x128xf32>
    %cst_252 = arith.constant 0.000000e+00 : f32
    %795 = vector.broadcast %cst_252 : f32 to vector<8x128xf32>
    %796 = arith.cmpf ogt, %794, %795 : vector<8x128xf32>
    %797 = arith.extui %796 : vector<8x128xi1> to vector<8x128xi32>
    %798 = arith.sitofp %797 : vector<8x128xi32> to vector<8x128xf32>
    %799 = vector.broadcast %763 : vector<1x128xf32> to vector<8x128xf32>
    %800 = arith.mulf %798, %799 : vector<8x128xf32>
    %801 = tpu.concatenate %800, %728 in 1 : vector<8x128xf32>, vector<8x128xf32> -> vector<8x256xf32>
    %cst_253 = arith.constant dense<0.000000e+00> : vector<8x128xf32>
    %802 = tpu.matmul %801, %4, %cst_253 {dimension_numbers = #tpu.dot_dimension_numbers<[1], [0], [0], [1], [0, 0, 1, 1], [], []>} : vector<8x256xf32>, vector<256x128xf32>, vector<8x128xf32> -> vector<8x128xf32>
    %803 = arith.addf %802, %11 : vector<8x128xf32>
    %804 = arith.mulf %28, %704 : vector<8x128xf32>
    %805 = arith.mulf %30, %728 : vector<8x128xf32>
    %806 = arith.addf %804, %805 : vector<8x128xf32>
    %cst_254 = arith.constant 1.800000e+00 : f32
    %807 = vector.broadcast %cst_254 : f32 to vector<8x128xf32>
    %808 = arith.mulf %807, %806 : vector<8x128xf32>
    %cst_255 = arith.constant 0.00999999977 : f32
    %809 = vector.broadcast %cst_255 : f32 to vector<8x128xf32>
    %810 = arith.addf %809, %808 : vector<8x128xf32>
    %811 = arith.mulf %721, %25 : vector<8x128xf32>
    %cst_256 = arith.constant 1.000000e+00 : f32
    %812 = vector.broadcast %cst_256 : f32 to vector<8x128xf32>
    %813 = arith.mulf %812, %803 : vector<8x128xf32>
    %814 = arith.addf %811, %813 : vector<8x128xf32>
    %815 = arith.mulf %810, %728 : vector<8x128xf32>
    %cst_257 = arith.constant 1.000000e+00 : f32
    %816 = vector.broadcast %cst_257 : f32 to vector<8x128xf32>
    %817 = arith.mulf %815, %816 : vector<8x128xf32>
    %818 = arith.subf %814, %817 : vector<8x128xf32>
    %cst_258 = arith.constant 0.000000e+00 : f32
    %819 = vector.broadcast %cst_258 : f32 to vector<1x128xf32>
    %820 = arith.cmpf oeq, %765, %819 : vector<1x128xf32>
    %821 = vector.shape_cast %820 : vector<1x128xi1> to vector<1x128xi1>
    %822 = vector.broadcast %821 : vector<1x128xi1> to vector<8x128xi1>
    %823 = arith.select %822, %721, %818 : vector<8x128xi1>, vector<8x128xf32>
    %824 = arith.subf %823, %810 : vector<8x128xf32>
    %cst_259 = arith.constant 0.000000e+00 : f32
    %825 = vector.broadcast %cst_259 : f32 to vector<8x128xf32>
    %826 = arith.cmpf ogt, %824, %825 : vector<8x128xf32>
    %827 = arith.extui %826 : vector<8x128xi1> to vector<8x128xi32>
    %828 = arith.sitofp %827 : vector<8x128xi32> to vector<8x128xf32>
    %829 = vector.broadcast %765 : vector<1x128xf32> to vector<8x128xf32>
    %830 = arith.mulf %828, %829 : vector<8x128xf32>
    %cst_260 = arith.constant dense<0.000000e+00> : vector<8x128xf32>
    %831 = tpu.matmul %830, %5, %cst_260 {dimension_numbers = #tpu.dot_dimension_numbers<[1], [0], [0], [1], [0, 0, 1, 1], [], []>} : vector<8x128xf32>, vector<128x128xf32>, vector<8x128xf32> -> vector<8x128xf32>
    %832 = arith.addf %831, %14 : vector<8x128xf32>
    %833 = arith.mulf %36, %733 : vector<8x128xf32>
    %834 = arith.mulf %38, %757 : vector<8x128xf32>
    %835 = arith.addf %833, %834 : vector<8x128xf32>
    %cst_261 = arith.constant 1.800000e+00 : f32
    %836 = vector.broadcast %cst_261 : f32 to vector<8x128xf32>
    %837 = arith.mulf %836, %835 : vector<8x128xf32>
    %cst_262 = arith.constant 0.00999999977 : f32
    %838 = vector.broadcast %cst_262 : f32 to vector<8x128xf32>
    %839 = arith.addf %838, %837 : vector<8x128xf32>
    %840 = arith.mulf %750, %33 : vector<8x128xf32>
    %cst_263 = arith.constant 1.000000e+00 : f32
    %841 = vector.broadcast %cst_263 : f32 to vector<8x128xf32>
    %842 = arith.mulf %841, %832 : vector<8x128xf32>
    %843 = arith.addf %840, %842 : vector<8x128xf32>
    %844 = arith.mulf %839, %757 : vector<8x128xf32>
    %cst_264 = arith.constant 1.000000e+00 : f32
    %845 = vector.broadcast %cst_264 : f32 to vector<8x128xf32>
    %846 = arith.mulf %844, %845 : vector<8x128xf32>
    %847 = arith.subf %843, %846 : vector<8x128xf32>
    %cst_265 = arith.constant 0.000000e+00 : f32
    %848 = vector.broadcast %cst_265 : f32 to vector<1x128xf32>
    %849 = arith.cmpf oeq, %767, %848 : vector<1x128xf32>
    %850 = vector.shape_cast %849 : vector<1x128xi1> to vector<1x128xi1>
    %851 = vector.broadcast %850 : vector<1x128xi1> to vector<8x128xi1>
    %852 = arith.select %851, %750, %847 : vector<8x128xi1>, vector<8x128xf32>
    %853 = arith.subf %852, %839 : vector<8x128xf32>
    %cst_266 = arith.constant 0.000000e+00 : f32
    %854 = vector.broadcast %cst_266 : f32 to vector<8x128xf32>
    %855 = arith.cmpf ogt, %853, %854 : vector<8x128xf32>
    %856 = arith.extui %855 : vector<8x128xi1> to vector<8x128xi32>
    %857 = arith.sitofp %856 : vector<8x128xi32> to vector<8x128xf32>
    %858 = vector.broadcast %767 : vector<1x128xf32> to vector<8x128xf32>
    %859 = arith.mulf %857, %858 : vector<8x128xf32>
    %860 = arith.index_cast %c7_i32 : i32 to index
    %c0_267 = arith.constant 0 : index
    %c0_268 = arith.constant 0 : index
    %861 = vector.load %arg21[%860, %c0_267, %c0_268] : memref<8x8x128xf32, #tpu.memory_space<vmem>>, vector<1x8x128xf32>
    %862 = vector.shape_cast %861 : vector<1x8x128xf32> to vector<8x128xf32>
    %863 = vector.shape_cast %859 : vector<8x128xf32> to vector<1x8x128xf32>
    tpu.vector_store %arg21[%860, %c0_267, %c0_268], %863 {strides = array<i32>} : memref<8x8x128xf32, #tpu.memory_space<vmem>>, vector<1x8x128xf32>,
    %c8_i32 = arith.constant 8 : i32
    %c0_269 = arith.constant 0 : index
    %c0_270 = arith.constant 0 : index
    %864 = vector.load %arg22[%c0_269, %c0_270] : memref<8x128xf32, #tpu.memory_space<vmem>>, vector<8x128xf32>
    tpu.vector_store %arg22[%c0_269, %c0_270], %793 {strides = array<i32>} : memref<8x128xf32, #tpu.memory_space<vmem>>, vector<8x128xf32>,
    %c0_271 = arith.constant 0 : index
    %c0_272 = arith.constant 0 : index
    %865 = vector.load %arg23[%c0_271, %c0_272] : memref<8x128xf32, #tpu.memory_space<vmem>>, vector<8x128xf32>
    tpu.vector_store %arg23[%c0_271, %c0_272], %800 {strides = array<i32>} : memref<8x128xf32, #tpu.memory_space<vmem>>, vector<8x128xf32>,
    %c0_273 = arith.constant 0 : index
    %c0_274 = arith.constant 0 : index
    %866 = vector.load %arg24[%c0_273, %c0_274] : memref<8x128xf32, #tpu.memory_space<vmem>>, vector<8x128xf32>
    tpu.vector_store %arg24[%c0_273, %c0_274], %776 {strides = array<i32>} : memref<8x128xf32, #tpu.memory_space<vmem>>, vector<8x128xf32>,
    %c0_275 = arith.constant 0 : index
    %c0_276 = arith.constant 0 : index
    %867 = vector.load %arg25[%c0_275, %c0_276] : memref<8x128xf32, #tpu.memory_space<vmem>>, vector<8x128xf32>
    tpu.vector_store %arg25[%c0_275, %c0_276], %823 {strides = array<i32>} : memref<8x128xf32, #tpu.memory_space<vmem>>, vector<8x128xf32>,
    %c0_277 = arith.constant 0 : index
    %c0_278 = arith.constant 0 : index
    %868 = vector.load %arg26[%c0_277, %c0_278] : memref<8x128xf32, #tpu.memory_space<vmem>>, vector<8x128xf32>
    tpu.vector_store %arg26[%c0_277, %c0_278], %830 {strides = array<i32>} : memref<8x128xf32, #tpu.memory_space<vmem>>, vector<8x128xf32>,
    %c0_279 = arith.constant 0 : index
    %c0_280 = arith.constant 0 : index
    %869 = vector.load %arg27[%c0_279, %c0_280] : memref<8x128xf32, #tpu.memory_space<vmem>>, vector<8x128xf32>
    tpu.vector_store %arg27[%c0_279, %c0_280], %806 {strides = array<i32>} : memref<8x128xf32, #tpu.memory_space<vmem>>, vector<8x128xf32>,
    %c0_281 = arith.constant 0 : index
    %c0_282 = arith.constant 0 : index
    %870 = vector.load %arg28[%c0_281, %c0_282] : memref<8x128xf32, #tpu.memory_space<vmem>>, vector<8x128xf32>
    tpu.vector_store %arg28[%c0_281, %c0_282], %852 {strides = array<i32>} : memref<8x128xf32, #tpu.memory_space<vmem>>, vector<8x128xf32>,
    %c0_283 = arith.constant 0 : index
    %c0_284 = arith.constant 0 : index
    %871 = vector.load %arg29[%c0_283, %c0_284] : memref<8x128xf32, #tpu.memory_space<vmem>>, vector<8x128xf32>
    tpu.vector_store %arg29[%c0_283, %c0_284], %859 {strides = array<i32>} : memref<8x128xf32, #tpu.memory_space<vmem>>, vector<8x128xf32>,
    %c0_285 = arith.constant 0 : index
    %c0_286 = arith.constant 0 : index
    %872 = vector.load %arg30[%c0_285, %c0_286] : memref<8x128xf32, #tpu.memory_space<vmem>>, vector<8x128xf32>
    tpu.vector_store %arg30[%c0_285, %c0_286], %835 {strides = array<i32>} : memref<8x128xf32, #tpu.memory_space<vmem>>, vector<8x128xf32>,
    return
  }
  func.func @transform_0(%arg0: i32, %arg1: i32) -> (i32, i32, i32) {
    %c0_i32 = arith.constant 0 : i32
    %c0_i32_0 = arith.constant 0 : i32
    return %arg1, %arg0, %c0_i32 : i32, i32, i32
  }
  func.func @transform_1(%arg0: i32, %arg1: i32) -> (i32, i32) {
    %c0_i32 = arith.constant 0 : i32
    %c0_i32_0 = arith.constant 0 : i32
    return %arg1, %c0_i32 : i32, i32
  }
  func.func @transform_2(%arg0: i32, %arg1: i32) -> (i32, i32) {
    %c0_i32 = arith.constant 0 : i32
    %c0_i32_0 = arith.constant 0 : i32
    return %arg1, %c0_i32 : i32, i32
  }
  func.func @transform_3(%arg0: i32, %arg1: i32) -> (i32, i32) {
    %c0_i32 = arith.constant 0 : i32
    %c0_i32_0 = arith.constant 0 : i32
    return %arg1, %c0_i32 : i32, i32
  }
  func.func @transform_4(%arg0: i32, %arg1: i32) -> (i32, i32) {
    %c0_i32 = arith.constant 0 : i32
    %c0_i32_0 = arith.constant 0 : i32
    %c0_i32_1 = arith.constant 0 : i32
    return %c0_i32, %c0_i32_0 : i32, i32
  }
  func.func @transform_5(%arg0: i32, %arg1: i32) -> (i32, i32) {
    %c0_i32 = arith.constant 0 : i32
    %c0_i32_0 = arith.constant 0 : i32
    %c0_i32_1 = arith.constant 0 : i32
    return %c0_i32, %c0_i32_0 : i32, i32
  }
  func.func @transform_6(%arg0: i32, %arg1: i32) -> (i32, i32) {
    %c0_i32 = arith.constant 0 : i32
    %c0_i32_0 = arith.constant 0 : i32
    %c0_i32_1 = arith.constant 0 : i32
    return %c0_i32, %c0_i32_0 : i32, i32
  }
  func.func @transform_7(%arg0: i32, %arg1: i32) -> (i32, i32) {
    %c0_i32 = arith.constant 0 : i32
    %c0_i32_0 = arith.constant 0 : i32
    %c0_i32_1 = arith.constant 0 : i32
    return %c0_i32, %c0_i32_0 : i32, i32
  }
  func.func @transform_8(%arg0: i32, %arg1: i32) -> (i32, i32) {
    %c0_i32 = arith.constant 0 : i32
    %c0_i32_0 = arith.constant 0 : i32
    %c0_i32_1 = arith.constant 0 : i32
    return %c0_i32, %c0_i32_0 : i32, i32
  }
  func.func @transform_9(%arg0: i32, %arg1: i32) -> (i32, i32) {
    %c0_i32 = arith.constant 0 : i32
    %c0_i32_0 = arith.constant 0 : i32
    %c0_i32_1 = arith.constant 0 : i32
    return %c0_i32, %c0_i32_0 : i32, i32
  }
  func.func @transform_10(%arg0: i32, %arg1: i32) -> (i32, i32) {
    %c0_i32 = arith.constant 0 : i32
    %c0_i32_0 = arith.constant 0 : i32
    %c0_i32_1 = arith.constant 0 : i32
    return %c0_i32, %c0_i32_0 : i32, i32
  }
  func.func @transform_11(%arg0: i32, %arg1: i32) -> (i32, i32) {
    %c0_i32 = arith.constant 0 : i32
    %c0_i32_0 = arith.constant 0 : i32
    %c0_i32_1 = arith.constant 0 : i32
    return %c0_i32, %c0_i32_0 : i32, i32
  }
  func.func @transform_12(%arg0: i32, %arg1: i32) -> (i32, i32) {
    %c0_i32 = arith.constant 0 : i32
    %c0_i32_0 = arith.constant 0 : i32
    %c0_i32_1 = arith.constant 0 : i32
    return %c0_i32, %c0_i32_0 : i32, i32
  }
  func.func @transform_13(%arg0: i32, %arg1: i32) -> (i32, i32) {
    %c0_i32 = arith.constant 0 : i32
    %c0_i32_0 = arith.constant 0 : i32
    %c0_i32_1 = arith.constant 0 : i32
    return %c0_i32, %c0_i32_0 : i32, i32
  }
  func.func @transform_14(%arg0: i32, %arg1: i32) -> (i32, i32) {
    %c0_i32 = arith.constant 0 : i32
    %c0_i32_0 = arith.constant 0 : i32
    %c0_i32_1 = arith.constant 0 : i32
    return %c0_i32, %c0_i32_0 : i32, i32
  }
  func.func @transform_15(%arg0: i32, %arg1: i32) -> (i32, i32) {
    %c0_i32 = arith.constant 0 : i32
    %c0_i32_0 = arith.constant 0 : i32
    %c0_i32_1 = arith.constant 0 : i32
    return %c0_i32, %c0_i32_0 : i32, i32
  }
  func.func @transform_16(%arg0: i32, %arg1: i32) -> (i32, i32) {
    %c0_i32 = arith.constant 0 : i32
    %c0_i32_0 = arith.constant 0 : i32
    return %arg0, %c0_i32 : i32, i32
  }
  func.func @transform_17(%arg0: i32, %arg1: i32) -> (i32, i32) {
    %c0_i32 = arith.constant 0 : i32
    %c0_i32_0 = arith.constant 0 : i32
    return %arg0, %c0_i32 : i32, i32
  }
  func.func @transform_18(%arg0: i32, %arg1: i32) -> (i32, i32) {
    %c0_i32 = arith.constant 0 : i32
    %c0_i32_0 = arith.constant 0 : i32
    return %arg0, %c0_i32 : i32, i32
  }
  func.func @transform_19(%arg0: i32, %arg1: i32) -> (i32, i32, i32) {
    %c0_i32 = arith.constant 0 : i32
    %c0_i32_0 = arith.constant 0 : i32
    return %arg1, %arg0, %c0_i32 : i32, i32, i32
  }
}

</mosaic_0001>

<bundles_post_ra>
// kernel: tpu_custom_call.1
= control target key start
LH: loop header
LB: loop body
LE: loop exit
PB: predicated region body
PF: predicated region fallthrough
CT: control target
= control target key end

     0   :  { %s6055_s0 = inlined_call_operand.hbm [shape: f32[8,8,128], index: 0, kind: input, shape index: {}]   ;;  %s6056_s1 = inlined_call_operand.hbm [shape: f32[8,128], index: 1, kind: input, shape index: {}]   ;;  %s6057_s2 = inlined_call_operand.hbm [shape: f32[8,128], index: 2, kind: input, shape index: {}]   ;;  %s6058_s3 = inlined_call_operand.vmem [shape: f32[8,128], index: 3, kind: input, shape index: {}]   ;;  %s6059_s4 = inlined_call_operand.hbm [shape: f32[128,128], index: 4, kind: input, shape index: {}]   ;;  %s6060_s5 = inlined_call_operand.vmem [shape: f32[1,128], index: 5, kind: input, shape index: {}]   ;;  %s6061_s6 = inlined_call_operand.hbm [shape: f32[256,128], index: 6, kind: input, shape index: {}]   ;;  %s6062_s7 = inlined_call_operand.vmem [shape: f32[1,128], index: 7, kind: input, shape index: {}]   ;;  %s6063_s8 = inlined_call_operand.hbm [shape: f32[128,128], index: 8, kind: input, shape index: {}]   ;;  %s6064_s9 = inlined_call_operand.hbm [shape: f32[1,128], index: 9, kind: input, shape index: {}]   ;;  %s6065_s10 = inlined_call_operand.vmem [shape: f32[1,128], index: 10, kind: input, shape index: {}]   ;;  %s6066_s11 = inlined_call_operand.vmem [shape: f32[1,128], index: 11, kind: input, shape index: {}]   ;;  %s6067_s12 = inlined_call_operand.vmem [shape: f32[1,128], index: 12, kind: input, shape index: {}]   ;;  %s6068_s13 = inlined_call_operand.vmem [shape: f32[1,128], index: 13, kind: input, shape index: {}]   ;;  %s6069_s14 = inlined_call_operand.vmem [shape: f32[1,128], index: 14, kind: input, shape index: {}]   ;;  %s6070_s15 = inlined_call_operand.vmem [shape: f32[1,128], index: 15, kind: input, shape index: {}]   ;;  %s6071_s16 = inlined_call_operand.vmem [shape: f32[8,128], index: 16, kind: input, shape index: {}]   ;;  %s6072_s17 = inlined_call_operand.vmem [shape: f32[8,128], index: 17, kind: input, shape index: {}]   ;;  %s6073_s18 = inlined_call_operand.vmem [shape: f32[8,128], index: 18, kind: input, shape index: {}]   ;;  %s6074_s19 = inlined_call_operand.hbm [shape: f32[8,8,128], index: 19, kind: output, shape index: {}]  }
   0x1   :  { %6118 = sst [smem:[#allocation42_spill]] %s6055_s0 }
   0x2   :  { %6119 = sst [smem:[#allocation43_spill]] %s6056_s1 }
   0x3   :  { %6120 = sst [smem:[#allocation44_spill]] %s6057_s2 }
   0x4   :  { %6121 = sst [smem:[#allocation45_spill]] %s6058_s3 }
   0x5   :  { %6122 = sst [smem:[#allocation46_spill]] %s6074_s19 }
   0x6   :  { %24 = vsyncpa [#allocation12], 0 }
   0x7   :  { %25 = vsyncpa [#allocation15], 0 }
   0x8   :  { %26 = vsyncpa [#allocation18], 0 }
   0x9   :  { %27 = vsyncpa [#allocation21], 0 }
   0xa   :  { %28 = vsyncpa [#allocation13], 0  ;;  %s4704_s0 = smov [#allocation14]   ;;  %s6123_s1 = sld [smem:[#allocation43_spill]] }
   0xb   :  { %s47_s30 = sshll.u32 %s4704_s0, 4  ;;  %s48_s30 = int_to_ptr.vmem [resolvable:$true] %s47_s30 }
  0x10   :  { %s4518_s22 = scalar_lea.hbm %s6123_s1, 128 }
  0x11   :  { %p4519_p0 = scmp.ne.s32.totalorder %s6123_s1, %s4518_s22  ;;  %p4522_p1 = scmp.lt.u32.totalorder %s4518_s22, %s6123_s1 }
  0x13   :  { %p4524_p2 = pnand %p4522_p1, %p4519_p0 }
  0x15   :  { %4527 = shalt.err (!%p4524_p2)
}
  0x16   :  { %s4528_s3 = scalar_lea.vmem %s48_s30, 128  ;;  %p4533_p4 = scmp.lt.s32.totalorder %s48_s30, %s48_s30 }
  0x17   :  { %p4529_p3 = scmp.ne.s32.totalorder %s48_s30, %s4528_s3  ;;  %p4534_p5 = scmp.lt.s32.totalorder %s4528_s3, %s4528_s3 }
  0x19   :  { %p4535_p6 = por %p4534_p5, %p4533_p4 }
  0x1b   :  { %p4536_p7 = pnand %p4535_p6, %p4529_p3 }
  0x1d   :  { %4539 = shalt.err (!%p4536_p7)
}
  0x1e   :  { %50 = dma.hbm_to_vmem [thread:$0]  %s6123_s1, 128, %s48_s30, [#allocation15]  }
  0x1f   :  { %s4705_s28 = smov [#allocation17]   ;;  %s4706_s0 = smov [#allocation20]  }
  0x20   :  { %s68_s29 = sshll.u32 %s4705_s28, 4  ;;  %s96_s20 = sshll.u32 %s4706_s0, 4  ;;  %s69_s29 = int_to_ptr.vmem [resolvable:$true] %s68_s29  ;;  %s97_s20 = int_to_ptr.vmem [resolvable:$true] %s96_s20 }
  0x21   :  { %s4540_s2 = scalar_lea.hbm %s6059_s4, 2048 }
  0x22   :  { %p4541_p8 = scmp.ne.s32.totalorder %s6059_s4, %s4540_s2  ;;  %p4544_p9 = scmp.lt.u32.totalorder %s4540_s2, %s6059_s4 }
  0x24   :  { %p4546_p10 = pnand %p4544_p9, %p4541_p8 }
  0x26   :  { %4549 = shalt.err (!%p4546_p10)
}
  0x27   :  { %s4550_s30 = scalar_lea.vmem %s69_s29, 2048  ;;  %p4555_p12 = scmp.lt.s32.totalorder %s69_s29, %s69_s29 }
  0x28   :  { %p4551_p11 = scmp.ne.s32.totalorder %s69_s29, %s4550_s30  ;;  %p4556_p13 = scmp.lt.s32.totalorder %s4550_s30, %s4550_s30 }
  0x2a   :  { %p4557_p0 = por %p4556_p13, %p4555_p12 }
  0x2c   :  { %p4558_p1 = pnand %p4557_p0, %p4551_p11 }
  0x2e   :  { %4561 = shalt.err (!%p4558_p1)
}
  0x2f   :  { %s4707_s1 = smov 128   ;;  %s4708_s26 = smov 8  }
  0x30   :  { %74 = dma.hbm_to_vmem [thread:$0]  %s6059_s4, 2048, %s69_s29, [#allocation18], %s4707_s1, %s4707_s1, %s4708_s26  }
  0x31   :  { %s4562_s22 = scalar_lea.hbm %s6063_s8, 2048 }
  0x32   :  { %p4563_p2 = scmp.ne.s32.totalorder %s6063_s8, %s4562_s22  ;;  %p4566_p3 = scmp.lt.u32.totalorder %s4562_s22, %s6063_s8 }
  0x34   :  { %p4568_p4 = pnand %p4566_p3, %p4563_p2 }
  0x36   :  { %4571 = shalt.err (!%p4568_p4)
}
  0x37   :  { %s4572_s3 = scalar_lea.vmem %s97_s20, 2048  ;;  %p4577_p6 = scmp.lt.s32.totalorder %s97_s20, %s97_s20 }
  0x38   :  { %p4573_p5 = scmp.ne.s32.totalorder %s97_s20, %s4572_s3  ;;  %p4578_p7 = scmp.lt.s32.totalorder %s4572_s3, %s4572_s3 }
  0x3a   :  { %p4579_p8 = por %p4578_p7, %p4577_p6 }
  0x3c   :  { %p4580_p9 = pnand %p4579_p8, %p4573_p5 }
  0x3e   :  { %4583 = shalt.err (!%p4580_p9)
}
  0x3f   :  { %102 = dma.hbm_to_vmem [thread:$0]  %s6063_s8, 2048, %s97_s20, [#allocation21], %s4707_s1, %s4707_s1, %s4708_s26  }
  0x40   :  { %s4709_s30 = smov [#allocation11]   ;;  %s4710_s28 = smov [#allocation16]  }
  0x41   :  { %s34_s27 = sshll.u32 %s4709_s30, 4  ;;  %s57_s0 = sshll.u32 %s4710_s28, 4  ;;  %s35_s27 = int_to_ptr.vmem [resolvable:$true] %s34_s27  ;;  %s58_s0 = int_to_ptr.vmem [resolvable:$true] %s57_s0 }
  0x42   :  { %s6124_s2 = sld [smem:[#allocation42_spill]] }
  0x48   :  { %s4584_s23 = scalar_lea.hbm %s6124_s2, 1024 }
  0x49   :  { %p4585_p10 = scmp.ne.s32.totalorder %s6124_s2, %s4584_s23  ;;  %p4588_p11 = scmp.lt.u32.totalorder %s4584_s23, %s6124_s2 }
  0x4b   :  { %p4590_p12 = pnand %p4588_p11, %p4585_p10 }
  0x4d   :  { %4593 = shalt.err (!%p4590_p12)
}
  0x4e   :  { %s4594_s8 = scalar_lea.vmem %s35_s27, 1024  ;;  %p4599_p0 = scmp.lt.s32.totalorder %s35_s27, %s35_s27 }
  0x4f   :  { %p4595_p13 = scmp.ne.s32.totalorder %s35_s27, %s4594_s8  ;;  %p4600_p1 = scmp.lt.s32.totalorder %s4594_s8, %s4594_s8 }
  0x51   :  { %p4601_p2 = por %p4600_p1, %p4599_p0 }
  0x53   :  { %p4602_p3 = pnand %p4601_p2, %p4595_p13 }
  0x55   :  { %4605 = shalt.err (!%p4602_p3)
}
  0x56   :  { %40 = dma.hbm_to_vmem [thread:$0]  %s6124_s2, 1024, %s35_s27, [#allocation12], %s4707_s1, %s4707_s1, %s4708_s26  }
  0x57   :  { %s6125_s30 = sld [smem:[#allocation44_spill]] }
  0x5d   :  { %s4606_s28 = scalar_lea.hbm %s6125_s30, 128 }
  0x5e   :  { %p4607_p4 = scmp.ne.s32.totalorder %s6125_s30, %s4606_s28  ;;  %p4610_p5 = scmp.lt.u32.totalorder %s4606_s28, %s6125_s30 }
  0x60   :  { %p4612_p6 = pnand %p4610_p5, %p4607_p4 }
  0x62   :  { %4615 = shalt.err (!%p4612_p6)
}
  0x63   :  { %s4616_s25 = scalar_lea.vmem %s58_s0, 128  ;;  %p4621_p8 = scmp.lt.s32.totalorder %s58_s0, %s58_s0 }
  0x64   :  { %p4617_p7 = scmp.ne.s32.totalorder %s58_s0, %s4616_s25  ;;  %p4622_p9 = scmp.lt.s32.totalorder %s4616_s25, %s4616_s25 }
  0x66   :  { %p4623_p10 = por %p4622_p9, %p4621_p8 }
  0x68   :  { %p4624_p11 = pnand %p4623_p10, %p4617_p7 }
  0x6a   :  { %4627 = shalt.err (!%p4624_p11)
}
  0x6b   :  { %60 = dma.hbm_to_vmem [thread:$0]  %s6125_s30, 128, %s58_s0, [#allocation15]  }
  0x6c   :  { %s4711_s3 = smov [#allocation19]   ;;  %s4712_s20 = smov [#allocation22]  }
  0x6d   :  { %s82_s8 = sshll.u32 %s4711_s3, 4  ;;  %s109_s4 = sshll.u32 %s4712_s20, 4  ;;  %s83_s8 = int_to_ptr.vmem [resolvable:$true] %s82_s8  ;;  %s110_s4 = int_to_ptr.vmem [resolvable:$true] %s109_s4 }
  0x6e   :  { %s4628_s28 = scalar_lea.hbm %s6061_s6, 4096 }
  0x6f   :  { %p4629_p12 = scmp.ne.s32.totalorder %s6061_s6, %s4628_s28  ;;  %p4632_p13 = scmp.lt.u32.totalorder %s4628_s28, %s6061_s6 }
  0x71   :  { %p4634_p0 = pnand %p4632_p13, %p4629_p12 }
  0x73   :  { %4637 = shalt.err (!%p4634_p0)
}
  0x74   :  { %s4638_s0 = scalar_lea.vmem %s83_s8, 4096  ;;  %p4643_p2 = scmp.lt.s32.totalorder %s83_s8, %s83_s8 }
  0x75   :  { %p4639_p1 = scmp.ne.s32.totalorder %s83_s8, %s4638_s0  ;;  %p4644_p3 = scmp.lt.s32.totalorder %s4638_s0, %s4638_s0 }
  0x77   :  { %p4645_p4 = por %p4644_p3, %p4643_p2 }
  0x79   :  { %p4646_p5 = pnand %p4645_p4, %p4639_p1 }
  0x7b   :  { %4649 = shalt.err (!%p4646_p5)
}
  0x7c   :  { %88 = dma.hbm_to_vmem [thread:$0]  %s6061_s6, 4096, %s83_s8, [#allocation18], %s4707_s1, %s4707_s1, %s4708_s26  }
  0x7d   :  { %s4650_s3 = scalar_lea.hbm %s6064_s9, 16 }
  0x7e   :  { %p4651_p6 = scmp.ne.s32.totalorder %s6064_s9, %s4650_s3  ;;  %p4654_p7 = scmp.lt.u32.totalorder %s4650_s3, %s6064_s9 }
  0x80   :  { %p4656_p8 = pnand %p4654_p7, %p4651_p6 }
  0x82   :  { %4659 = shalt.err (!%p4656_p8)
}
  0x83   :  { %s4660_s21 = scalar_lea.vmem %s110_s4, 16  ;;  %s4664_s22 = scalar_lea.vmem %s110_s4, 32 }
  0x84   :  { %p4661_p9 = scmp.ne.s32.totalorder %s110_s4, %s4660_s21  ;;  %p4665_p10 = scmp.lt.s32.totalorder %s110_s4, %s110_s4 }
  0x85   :  { %p4666_p11 = scmp.lt.s32.totalorder %s4664_s22, %s4660_s21 }
  0x87   :  { %p4667_p12 = por %p4666_p11, %p4665_p10 }
  0x89   :  { %p4668_p13 = pnand %p4667_p12, %p4661_p9 }
  0x8b   :  { %4671 = shalt.err (!%p4668_p13)
}
  0x8c   :  { %112 = dma.hbm_to_vmem [thread:$0]  %s6064_s9, 16, %s110_s4, [#allocation21]  }
  0x8d   :  { %4694 = dma.done.wait [#allocation12], 1024  }
  0x8e   :  { %4695 = vsyncadd [#allocation12], 4294966272 }
  0x8f   :  { %4696 = dma.done.wait [#allocation15], 256  }
  0x90   :  { %4697 = vsyncadd [#allocation15], 4294967040 }
  0x91   :  { %4698 = dma.done.wait [#allocation18], 6144  }
  0x92   :  { %4699 = vsyncadd [#allocation18], 4294961152 }
  0x93   :  { %4700 = dma.done.wait [#allocation21], 2064  }
  0x94   :  { %4701 = vsyncadd [#allocation21], 4294965232  ;;  %v6080_v0 = vmov 0.0|0.0   ;;  %vm4714_vm0 = vmmov 0   ;;  %v6082_v1 = vmov 0.0   ;;  %v168_v2 = vld [vmem:[#allocation17] sm:$0xff] }
  0x95   :  { %3855 = vmatprep.subr.bf16.mxu0 %v6080_v0  ;;  %3327 = vmatprep.mubr.msk.f32.mxu0 %vm4714_vm0, %v6082_v1  ;;  %v169_v3 = vld [vmem:[#allocation17 + $0x8] sm:$0xff]  ;;  %v170_v4 = vld [vmem:[#allocation17 + $0x10] sm:$0xff]  ;;  %v171_v6 = vld [vmem:[#allocation17 + $0x18] sm:$0xff]  ;;  %s4717_s0 = smov [#allocation23]  }
  0x96   :  { %v4917_v5 = vpack.c.bf16 %v169_v3, %v168_v2  ;;  %v4920_v7 = vpack.c.bf16 %v171_v6, %v170_v4  ;;  %v172_v8 = vld [vmem:[#allocation17 + $0x20] sm:$0xff]  ;;  %v173_v9 = vld [vmem:[#allocation17 + $0x28] sm:$0xff]  ;;  %v174_v10 = vld [vmem:[#allocation17 + $0x30] sm:$0xff] }
  0x97   :  { %v175_v11 = vld [vmem:[#allocation17 + $0x38] sm:$0xff]  ;;  %v200_v12 = vld [vmem:[#allocation19 + $0x80] sm:$0xff]  ;;  %v201_v13 = vld [vmem:[#allocation19 + $0x88] sm:$0xff]  ;;  %v4924_v15 = vpack.c.bf16 %v173_v9, %v172_v8 }
  0x98   :  { %3857 = vmatpush3.bf16.msra.mxu0 %v4917_v5  ;;  %v184_v14 = vld [vmem:[#allocation19] sm:$0xff]  ;;  %v4926_v16 = vpack.c.bf16 %v201_v13, %v200_v12  ;;  %v185_v17 = vld [vmem:[#allocation19 + $0x8] sm:$0xff]  ;;  %v202_v18 = vld [vmem:[#allocation19 + $0x90] sm:$0xff]  ;;  %v4938_v27 = vpack.c.bf16 %v175_v11, %v174_v10 }
  0x99   :  { %3858 = vmatprep.subr.bf16.mxu0 %v6080_v0  ;;  %v203_v19 = vld [vmem:[#allocation19 + $0x98] sm:$0xff]  ;;  %v4929_v20 = vpack.c.bf16 %v185_v17, %v184_v14  ;;  %v186_v22 = vld [vmem:[#allocation19 + $0x10] sm:$0xff]  ;;  %v204_v24 = vld [vmem:[#allocation19 + $0xa0] sm:$0xff] }
  0x9a   :  { %6126 = vst [vmem:[#allocation29_spill] sm:$0xff] %v4926_v16  ;;  %v4931_v21 = vpack.c.bf16 %v203_v19, %v202_v18  ;;  %v187_v23 = vld [vmem:[#allocation19 + $0x18] sm:$0xff]  ;;  %3880 = vmatprep.subr.bf16.mxu1 %v4926_v16  ;;  %v205_v25 = vld [vmem:[#allocation19 + $0xa8] sm:$0xff]  ;;  %v176_v28 = vld [vmem:[#allocation17 + $0x40] sm:$0xff] }
  0x9b   :  { %3882 = vmatpush3.bf16.msra.mxu1 %v4929_v20  ;;  %v4935_v26 = vpack.c.bf16 %v187_v23, %v186_v22  ;;  %v4941_v29 = vpack.c.bf16 %v205_v25, %v204_v24  ;;  %v188_v30 = vld [vmem:[#allocation19 + $0x20] sm:$0xff]  ;;  %v189_v31 = vld [vmem:[#allocation19 + $0x28] sm:$0xff]  ;;  %v206_v33 = vld [vmem:[#allocation19 + $0xb0] sm:$0xff] }
  0x9c   :  { %3860 = vmatpush3.bf16.msra.mxu0 %v4920_v7  ;;  %3884 = vmatprep.subr.bf16.mxu1 %v4931_v21  ;;  %v177_v32 = vld [vmem:[#allocation17 + $0x48] sm:$0xff]  ;;  %v207_v34 = vld [vmem:[#allocation19 + $0xb8] sm:$0xff]  ;;  %v4945_v35 = vpack.c.bf16 %v189_v31, %v188_v30  ;;  %v178_v37 = vld [vmem:[#allocation17 + $0x50] sm:$0xff] }
  0x9d   :  { %3861 = vmatprep.subr.bf16.mxu0 %v6080_v0  ;;  %v4948_v36 = vpack.c.bf16 %v177_v32, %v176_v28  ;;  %v4951_v38 = vpack.c.bf16 %v207_v34, %v206_v33  ;;  %v190_v39 = vld [vmem:[#allocation19 + $0x30] sm:$0xff]  ;;  %v191_v40 = vld [vmem:[#allocation19 + $0x38] sm:$0xff]  ;;  %v208_v42 = vld [vmem:[#allocation19 + $0xc0] sm:$0xff] }
  0x9e   :  { %v179_v41 = vld [vmem:[#allocation17 + $0x58] sm:$0xff]  ;;  %v209_v43 = vld [vmem:[#allocation19 + $0xc8] sm:$0xff]  ;;  %v4955_v44 = vpack.c.bf16 %v191_v40, %v190_v39  ;;  %v180_v47 = vld [vmem:[#allocation17 + $0x60] sm:$0xff] }
  0x9f   :  { %3886 = vmatpush3.bf16.msra.mxu1 %v4935_v26  ;;  %v4958_v45 = vpack.c.bf16 %v179_v41, %v178_v37  ;;  %v4961_v46 = vpack.c.bf16 %v209_v43, %v208_v42  ;;  %v181_v48 = vld [vmem:[#allocation17 + $0x68] sm:$0xff]  ;;  %v182_v50 = vld [vmem:[#allocation17 + $0x70] sm:$0xff]  ;;  %v183_v51 = vld [vmem:[#allocation17 + $0x78] sm:$0xff]  ;;  %v394_v42 = vlaneseq }
  0xa0   :  { %3863 = vmatpush3.bf16.msra.mxu0 %v4924_v15  ;;  %3888 = vmatprep.subr.bf16.mxu1 %v4941_v29  ;;  %v4966_v49 = vpack.c.bf16 %v181_v48, %v180_v47  ;;  %v4971_v52 = vpack.c.bf16 %v183_v51, %v182_v50  ;;  %v4978_v53 = vld [vmem:[%s6071_s16] sm:$0xff]  ;;  %v192_v54 = vld [vmem:[#allocation19 + $0x40] sm:$0xff]  ;;  %v193_v55 = vld [vmem:[#allocation19 + $0x48] sm:$0xff]  ;;  %s6139_s16 = sld [smem:[#allocation45_spill]] }
  0xa1   :  { %3864 = vmatprep.subr.bf16.mxu0 %v6080_v0  ;;  %6127 = vst [vmem:[#allocation30_spill] sm:$0xff] %v4961_v46  ;;  %v4984_v56 = vpack.c.bf16 %v193_v55, %v192_v54  ;;  %v210_v57 = vld [vmem:[#allocation19 + $0xd0] sm:$0xff]  ;;  %v211_v58 = vld [vmem:[#allocation19 + $0xd8] sm:$0xff]  ;;  %v212_v63 = vld [vmem:[#allocation19 + $0xe0] sm:$0xff]  ;;  %v395_v48 = vshrl.u32 %v394_v42, 7 }
  0xa2   :  { %v4987_v59 = vpack.c.bf16 %v211_v58, %v210_v57  ;;  %v194_v60 = vld [vmem:[#allocation19 + $0x50] sm:$0xff]  ;;  %v195_v61 = vld [vmem:[#allocation19 + $0x58] sm:$0xff]  ;;  %v213_v2 = vld [vmem:[#allocation19 + $0xe8] sm:$0xff]  ;;  %v6096_v58 = vmov 0  }
  0xa3   :  { %3890 = vmatpush3.bf16.msra.mxu1 %v4945_v35  ;;  %v4989_v62 = vpack.c.bf16 %v195_v61, %v194_v60  ;;  %v4993_v3 = vpack.c.bf16 %v213_v2, %v212_v63  ;;  %v196_v4 = vld [vmem:[#allocation19 + $0x60] sm:$0xff]  ;;  %v197_v6 = vld [vmem:[#allocation19 + $0x68] sm:$0xff]  ;;  %v214_v9 = vld [vmem:[#allocation19 + $0xf0] sm:$0xff]  ;;  %v5044_v55 = vsub.s32 0, %v395_v48 }
  0xa4   :  { %3866 = vmatpush3.bf16.msra.mxu0 %v4938_v27  ;;  %3892 = vmatprep.subr.bf16.mxu1 %v4951_v38  ;;  %v4995_v8 = vpack.c.bf16 %v197_v6, %v196_v4  ;;  %v215_v10 = vld [vmem:[#allocation19 + $0xf8] sm:$0xff]  ;;  %v198_v11 = vld [vmem:[#allocation19 + $0x70] sm:$0xff]  ;;  %v216_v18 = vld [vmem:[#allocation20] sm:$0xff] }
  0xa5   :  { %3867 = vmatprep.subr.bf16.mxu0 %v6080_v0  ;;  %v4999_v12 = vpack.c.bf16 %v215_v10, %v214_v9  ;;  %v199_v13 = vld [vmem:[#allocation19 + $0x78] sm:$0xff]  ;;  %v5004_v14 = vld [vmem:[%s6072_s17] sm:$0xff]  ;;  %v217_v19 = vld [vmem:[#allocation20 + $0x8] sm:$0xff] }
  0xa6   :  { %v5006_v17 = vpack.c.bf16 %v199_v13, %v198_v11  ;;  %473 = vmatprep.mubr.f32.mxu1 %v5004_v14  ;;  %v218_v22 = vld [vmem:[#allocation20 + $0x10] sm:$0xff]  ;;  %v5012_v23 = vpack.c.bf16 %v217_v19, %v216_v18  ;;  %v219_v24 = vld [vmem:[#allocation20 + $0x18] sm:$0xff]  ;;  %v220_v28 = vld [vmem:[#allocation20 + $0x20] sm:$0xff] }
  0xa7   :  { %3894 = vmatpush3.bf16.msra.mxu1 %v4955_v44  ;;  %v5015_v25 = vpack.c.bf16 %v219_v24, %v218_v22  ;;  %v221_v30 = vld [vmem:[#allocation20 + $0x28] sm:$0xff]  ;;  %v222_v32 = vld [vmem:[#allocation20 + $0x30] sm:$0xff]  ;;  %v223_v33 = vld [vmem:[#allocation20 + $0x38] sm:$0xff] }
  0xa8   :  { %3869 = vmatpush3.bf16.msra.mxu0 %v4948_v36  ;;  %3896 = vmatprep.subr.bf16.mxu1 %v4961_v46  ;;  %6128 = vst [vmem:[#allocation31_spill] sm:$0xff] %v5012_v23  ;;  %v5019_v31 = vpack.c.bf16 %v221_v30, %v220_v28  ;;  %v5023_v34 = vpack.c.bf16 %v223_v33, %v222_v32  ;;  %v5031_v37 = vld [vmem:[%s6066_s11] ss:$0 sm:$0xff] }
  0xa9   :  { %3870 = vmatprep.subr.bf16.mxu0 %v6080_v0  ;;  %6129 = vst [vmem:[#allocation32_spill] sm:$0xff] %v5015_v25  ;;  %v5034_v39 = vsub.f32 1.0, %v5031_v37  ;;  %v383_v41 = vmul.f32 0.01, %v5031_v37  ;;  %v307_v47 = vld [vmem:[#allocation14] sm:$0x1] }
  0xaa   :  { %6130 = vst [vmem:[#allocation33_spill] sm:$0xff] %v5019_v31  ;;  %6131 = vst [vmem:[#allocation34_spill] sm:$0xff] %v5023_v34  ;;  %vm392_vm1 = vcmp.eq.f32.partialorder %v307_v47, 0.0  ;;  %v5042_v51 = vld [vmem:[%s6065_s10] ss:$0 sm:$0xff]  ;;  %v407_v24 = vrot.slane %v307_v47, %v5044_v55  ;;  %v225_v47 = vld [vmem:[#allocation20 + $0x48] sm:$0xff] }
  0xab   :  { %3898 = vmatpush3.bf16.msra.mxu1 %v4984_v56  ;;  %v384_v40 = vmul.f32 %v5034_v39, %v4978_v53  ;;  %v310_v54 = vld [vmem:[#allocation11] sm:$0xff]  ;;  %v393_v60 = vsel %vm392_vm1, 1, %v6096_v58  ;;  %v388_v4 = vmul.f32 %v5042_v51, %v4978_v53 }
  0xac   :  { %3872 = vmatpush3.bf16.msra.mxu0 %v4958_v45  ;;  %3900 = vmatprep.subr.bf16.mxu1 %v4987_v59  ;;  %v5050_v61 = vld [vmem:[%s6060_s5] ss:$0 sm:$0xff]  ;;  %v397_v9 = vrot.slane %v393_v60, %v5044_v55  ;;  %v228_v60 = vld [vmem:[#allocation20 + $0x60] sm:$0xff] }
  0xad   :  { %3873 = vmatprep.subr.bf16.mxu0 %v6080_v0  ;;  %v385_v43 = vadd.f32 %v384_v40, %v383_v41 }
  0xae   :  { %vm398_vm2 = vcmp.eq.s32.totalorder %v397_v9, 1 }
  0xaf   :  { %3902 = vmatpush3.bf16.msra.mxu1 %v4989_v62  ;;  %v386_v50 = vmul.f32 1.8, %v385_v43  ;;  %v679_v32 = vmul.f32 %v5031_v37, %v385_v43  ;;  %v224_v43 = vld [vmem:[#allocation20 + $0x40] sm:$0xff] }
  0xb0   :  { %3875 = vmatpush3.bf16.msra.mxu0 %v4966_v49  ;;  %3904 = vmatprep.subr.bf16.mxu1 %v4993_v3  ;;  %v5101_v48 = vpack.c.bf16 %v225_v47, %v224_v43  ;;  %v5145_v43 = vld [vmem:[%s6062_s7] ss:$0 sm:$0xff] }
  0xb1   :  { %3876 = vmatprep.subr.bf16.mxu0 %v6080_v0  ;;  %v387_v57 = vadd.f32 0.01, %v386_v50  ;;  %v226_v50 = vld [vmem:[#allocation20 + $0x50] sm:$0xff] }
  0xb2   :  { %6132 = vst [vmem:[#allocation35_spill] sm:$0xff] %v5101_v48 }
  0xb3   :  { %3906 = vmatpush3.bf16.msra.mxu1 %v4995_v8  ;;  %v390_v11 = vmul.f32 %v387_v57, %v4978_v53 }
  0xb4   :  { %3878 = vmatpush3.bf16.msra.mxu0 %v4971_v52  ;;  %3908 = vmatprep.subr.bf16.mxu1 %v4999_v12 }
  0xb5   :  { %3911 = vmatprep.subr.bf16.mxu0 %v6080_v0 }
  0xb7   :  { %3328 = vmatmul.mubr.f32.vlgmr.msra.gmra.mrb[0].mxu0 %v4978_v53  ;;  %3910 = vmatpush3.bf16.msra.mxu1 %v5006_v17 }
  0xb8   :  { %3362 = vmatprep.mubr.msk.f32.mxu0 %vm4714_vm0, %v6082_v1  ;;  %3935 = vmatprep.subr.bf16.mxu1 %v6080_v0 }
  0xb9   :  { %3913 = vmatpush3.bf16.msra.mxu0 %v5012_v23 }
  0xba   :  { %3914 = vmatprep.subr.bf16.mxu0 %v6080_v0 }
  0xbd   :  { %3916 = vmatpush3.bf16.msra.mxu0 %v5015_v25 }
  0xbe   :  { %3917 = vmatprep.subr.bf16.mxu0 %v6080_v0 }
  0xc1   :  { %3919 = vmatpush3.bf16.msra.mxu0 %v5019_v31 }
  0xc2   :  { %3920 = vmatprep.subr.bf16.mxu0 %v6080_v0 }
  0xc5   :  { %3922 = vmatpush3.bf16.msra.mxu0 %v5023_v34 }
  0xc6   :  { %3923 = vmatprep.subr.bf16.mxu0 %v6080_v0 }
  0xc9   :  { %3925 = vmatpush3.bf16.msra.mxu0 %v5101_v48 }
  0xca   :  { %3926 = vmatprep.subr.bf16.mxu0 %v6080_v0 }
 0x18a   :  { %v377_v63 = vpop.f32.mrb[0].mxu0 }
 0x18b   :  { %v381_v2 = vadd.f32 %v377_v63, %v310_v54  ;;  %v3329_v6 = vpop.f32.mrb[1].mxu0  ;;  %v227_v54 = vld [vmem:[#allocation20 + $0x58] sm:$0xff]  ;;  %v229_v63 = vld [vmem:[#allocation20 + $0x68] sm:$0xff] }
 0x18c   :  { %v231_v6 = vld [vmem:[#allocation20 + $0x78] sm:$0xff] }
 0x18d   :  { %v382_v10 = vadd.f32 %v5050_v61, %v381_v2  ;;  %v5113_v2 = vpack.c.bf16 %v229_v63, %v228_v60 }
 0x18f   :  { %v389_v13 = vadd.f32 %v388_v4, %v382_v10  ;;  %6134 = vst [vmem:[#allocation37_spill] sm:$0xff] %v5113_v2  ;;  %v230_v4 = vld [vmem:[#allocation20 + $0x70] sm:$0xff] }
 0x190   :  { %v5116_v9 = vpack.c.bf16 %v231_v6, %v230_v4  ;;  %v5128_v10 = vld [vmem:[%s6068_s13] ss:$0 sm:$0xff] }
 0x191   :  { %v391_v18 = vsub.f32 %v389_v13, %v390_v11  ;;  %v5131_v11 = vsub.f32 1.0, %v5128_v10 }
 0x192   :  { %6135 = vst [vmem:[#allocation38_spill] sm:$0xff] %v5116_v9 }
 0x193   :  { %v5058_v19 = vsel %vm398_vm2, %v4978_v53, %v391_v18  ;;  %v480_v13 = vmul.f32 %v5131_v11, %v5004_v14  ;;  %v479_v18 = vmul.f32 0.01, %v5128_v10 }
 0x194   :  { %v400_v22 = vsub.f32 %v5058_v19, %v387_v57  ;;  %v5107_v57 = vpack.c.bf16 %v227_v54, %v226_v50 }
 0x196   :  { %vm401_vm3 = vcmp.gt.f32.partialorder %v400_v22, 0.0  ;;  %6133 = vst [vmem:[#allocation36_spill] sm:$0xff] %v5107_v57  ;;  %3928 = vmatpush3.bf16.msra.mxu0 %v5107_v57  ;;  %v481_v22 = vadd.f32 %v480_v13, %v479_v18 }
 0x197   :  { %v2719_v28 = vsel %vm401_vm3, 1.0, %v6082_v1  ;;  %3929 = vmatprep.subr.bf16.mxu0 %v6080_v0 }
 0x198   :  { %v408_v30 = vmul.f32 %v2719_v28, %v407_v24  ;;  %v308_v24 = vld [vmem:[#allocation16] sm:$0x1]  ;;  %v482_v28 = vmul.f32 1.8, %v481_v22 }
 0x199   :  { %vm488_vm4 = vcmp.eq.f32.partialorder %v308_v24, 0.0 }
 0x19a   :  { %474 = vmatmul.mubr.f32.vlgmr.msra.gmra.mrb[0].mxu1 %v408_v30  ;;  %v680_v33 = vmul.f32 %v408_v30, %v5034_v39  ;;  %3931 = vmatpush3.bf16.msra.mxu0 %v5113_v2 }
 0x19b   :  { %3937 = vmatpush3.bf16.msra.mxu1 %v4917_v5  ;;  %3397 = vmatprep.mubr.msk.f32.mxu1 %vm4714_vm0, %v6082_v1 }
 0x19c   :  { %3938 = vmatprep.subr.bf16.mxu1 %v6080_v0  ;;  %v5069_v53 = vadd.f32 %v680_v33, %v679_v32  ;;  %3932 = vmatprep.subr.bf16.mxu0 %v6080_v0  ;;  %v483_v33 = vadd.f32 0.01, %v482_v28 }
 0x19e   :  { %v682_v40 = vmul.f32 1.8, %v5069_v53  ;;  %3934 = vmatpush3.bf16.msra.mxu0 %v5116_v9  ;;  %v486_v4 = vmul.f32 %v483_v33, %v5004_v14 }
 0x19f   :  { %3940 = vmatpush3.bf16.msra.mxu1 %v4920_v7  ;;  %3960 = vmatprep.subr.bf16.mxu0 %v4926_v16 }
 0x1a0   :  { %3941 = vmatprep.subr.bf16.mxu1 %v6080_v0  ;;  %v5074_v41 = vadd.f32 0.01, %v682_v40  ;;  %v489_v40 = vsel %vm488_vm4, 1, %v6096_v58 }
 0x1a1   :  { %v493_v60 = vrot.slane %v489_v40, %v5044_v55  ;;  %v775_v40 = vmul.f32 %v5128_v10, %v481_v22 }
 0x1a2   :  { %v5077_v42 = vmul.f32 %v5074_v41, %v408_v30 }
 0x1a3   :  { %3943 = vmatpush3.bf16.msra.mxu1 %v4924_v15  ;;  %vm494_vm5 = vcmp.eq.s32.totalorder %v493_v60, 1 }
 0x1a4   :  { %3944 = vmatprep.subr.bf16.mxu1 %v6080_v0 }
 0x1a7   :  { %3946 = vmatpush3.bf16.msra.mxu1 %v4938_v27 }
 0x1a8   :  { %3947 = vmatprep.subr.bf16.mxu1 %v6080_v0 }
 0x1ab   :  { %3949 = vmatpush3.bf16.msra.mxu1 %v4948_v36 }
 0x1ac   :  { %3950 = vmatprep.subr.bf16.mxu1 %v6080_v0 }
 0x1af   :  { %3952 = vmatpush3.bf16.msra.mxu1 %v4958_v45 }
 0x1b0   :  { %3953 = vmatprep.subr.bf16.mxu1 %v6080_v0 }
 0x1b3   :  { %3955 = vmatpush3.bf16.msra.mxu1 %v4966_v49 }
 0x1b4   :  { %3956 = vmatprep.subr.bf16.mxu1 %v6080_v0 }
 0x1b7   :  { %3958 = vmatpush3.bf16.msra.mxu1 %v4971_v52 }
 0x1b8   :  { %3991 = vmatprep.subr.bf16.mxu1 %v6080_v0 }
 0x1ba   :  { %3398 = vmatmul.mubr.f32.vlgmr.msra.gmra.mrb[2].mxu1 %v408_v30  ;;  %v5139_v30 = vld [vmem:[%s6067_s12] ss:$0 sm:$0xff] }
 0x1bb   :  { %3993 = vmatpush3.bf16.msra.mxu1 %v5012_v23  ;;  %3432 = vmatprep.mubr.msk.f32.mxu1 %vm4714_vm0, %v6082_v1  ;;  %v484_v54 = vmul.f32 %v5139_v30, %v5004_v14 }
 0x1bc   :  { %3994 = vmatprep.subr.bf16.mxu1 %v6080_v0 }
 0x1bf   :  { %3996 = vmatpush3.bf16.msra.mxu1 %v5015_v25 }
 0x1c0   :  { %3997 = vmatprep.subr.bf16.mxu1 %v6080_v0 }
 0x1c3   :  { %3999 = vmatpush3.bf16.msra.mxu1 %v5019_v31 }
 0x1c4   :  { %4000 = vmatprep.subr.bf16.mxu1 %v6080_v0 }
 0x1c7   :  { %4002 = vmatpush3.bf16.msra.mxu1 %v5023_v34 }
 0x1c8   :  { %4003 = vmatprep.subr.bf16.mxu1 %v6080_v0 }
 0x1cb   :  { %4005 = vmatpush3.bf16.msra.mxu1 %v5101_v48 }
 0x1cc   :  { %4006 = vmatprep.subr.bf16.mxu1 %v6080_v0 }
 0x1cf   :  { %4008 = vmatpush3.bf16.msra.mxu1 %v5107_v57 }
 0x1d0   :  { %4009 = vmatprep.subr.bf16.mxu1 %v6080_v0 }
 0x1d3   :  { %4011 = vmatpush3.bf16.msra.mxu1 %v5113_v2 }
 0x1d4   :  { %4012 = vmatprep.subr.bf16.mxu1 %v6080_v0  ;;  %v503_v0 = vrot.slane %v308_v24, %v5044_v55 }
 0x1d7   :  { %4014 = vmatpush3.bf16.msra.mxu1 %v5116_v9 }
 0x1d8   :  { %4040 = vmatprep.subr.bf16.mxu1 %v4926_v16 }
 0x26d   :  { %v2792_v32 = vpop.f32.mrb[0].mxu1 }
 0x26e   :  { %v2793_v47 = vpop.f32.mrb[1].mxu1 }
 0x26f   :  { %v2794_v50 = vadd.f32 %v2793_v47, %v2792_v32 }
 0x271   :  { %v476_v63 = vadd.f32 %v2794_v50, %v5145_v43 }
 0x273   :  { %v485_v6 = vadd.f32 %v484_v54, %v476_v63  ;;  %v606_v54 = vld [vmem:[#allocation11 + $0x8] sm:$0xff] }
 0x275   :  { %v487_v13 = vsub.f32 %v485_v6, %v486_v4 }
 0x277   :  { %v5153_v18 = vsel %vm494_vm5, %v5004_v14, %v487_v13 }
 0x278   :  { %v496_v28 = vsub.f32 %v5153_v18, %v483_v33 }
 0x27a   :  { %vm497_vm6 = vcmp.gt.f32.partialorder %v496_v28, 0.0 }
 0x27b   :  { %v2720_v32 = vsel %vm497_vm6, 1.0, %v6082_v1 }
 0x27c   :  { %v504_v47 = vmul.f32 %v2720_v32, %v503_v0  ;;  %v602_v0 = vld [vmem:[#allocation14 + $0x1] sm:$0x1]  ;;  %v684_v32 = vmul.f32 %v5042_v51, %v5058_v19 }
 0x27d   :  { %vm688_vm7 = vcmp.eq.f32.partialorder %v602_v0, 0.0 }
 0x27e   :  { %3363 = vmatmul.mubr.f32.vlgmr.msra.gmra.mrb[2].mxu0 %v504_v47  ;;  %v776_v50 = vmul.f32 %v504_v47, %v5131_v11  ;;  %v689_v60 = vsel %vm688_vm7, 1, %v6096_v58 }
 0x27f   :  { %3962 = vmatpush3.bf16.msra.mxu0 %v4929_v20  ;;  %769 = vmatprep.mubr.f32.mxu0 %v504_v47  ;;  %v693_v13 = vrot.slane %v689_v60, %v5044_v55 }
 0x280   :  { %3964 = vmatprep.subr.bf16.mxu0 %v4931_v21  ;;  %v5162_v14 = vadd.f32 %v776_v50, %v775_v40 }
 0x281   :  { %vm694_vm8 = vcmp.eq.s32.totalorder %v693_v13, 1  ;;  %v5247_v13 = vld [vmem:[%s6070_s15] ss:$0 sm:$0xff] }
 0x282   :  { %v778_v33 = vmul.f32 1.8, %v5162_v14  ;;  %6137 = vst [vmem:[#allocation39_spill] sm:$0xff] %v5247_v13 }
 0x283   :  { %3966 = vmatpush3.bf16.msra.mxu0 %v4935_v26 }
 0x284   :  { %3968 = vmatprep.subr.bf16.mxu0 %v4941_v29  ;;  %v5167_v24 = vadd.f32 0.01, %v778_v33 }
 0x286   :  { %v5170_v22 = vmul.f32 %v5167_v24, %v504_v47 }
 0x287   :  { %3970 = vmatpush3.bf16.msra.mxu0 %v4945_v35 }
 0x288   :  { %3972 = vmatprep.subr.bf16.mxu0 %v4951_v38 }
 0x28b   :  { %3974 = vmatpush3.bf16.msra.mxu0 %v4955_v44 }
 0x28c   :  { %3976 = vmatprep.subr.bf16.mxu0 %v4961_v46 }
 0x28d   :  { %v673_v63 = vpop.f32.mrb[2].mxu1 }
 0x28e   :  { %v677_v4 = vadd.f32 %v673_v63, %v606_v54  ;;  %v3399_v6 = vpop.f32.mrb[3].mxu1  ;;  %v703_v54 = vrot.slane %v602_v0, %v5044_v55  ;;  %v6136_v63 = vmov 0.0|0.0  }
 0x28f   :  { %3978 = vmatpush3.bf16.msra.mxu0 %v4984_v56 }
 0x290   :  { %v678_v28 = vadd.f32 %v5050_v61, %v677_v4  ;;  %3980 = vmatprep.subr.bf16.mxu0 %v4987_v59 }
 0x292   :  { %v685_v47 = vadd.f32 %v684_v32, %v678_v28  ;;  %v5250_v28 = vsub.f32 1.0, %v5247_v13  ;;  %v158_v32 = vld [vmem:[%s6073_s18] sm:$0xff] }
 0x293   :  { %3982 = vmatpush3.bf16.msra.mxu0 %v4989_v62 }
 0x294   :  { %v687_v40 = vsub.f32 %v685_v47, %v5077_v42  ;;  %3984 = vmatprep.subr.bf16.mxu0 %v4993_v3  ;;  %6138 = vst [vmem:[#allocation40_spill] sm:$0xff] %v5250_v28  ;;  %v575_v47 = vmul.f32 0.01, %v5247_v13 }
 0x296   :  { %v5187_v50 = vsel %vm694_vm8, %v5058_v19, %v687_v40  ;;  %v976_v19 = vmul.f32 %v5031_v37, %v5069_v53  ;;  %v576_v40 = vmul.f32 %v5250_v28, %v158_v32 }
 0x297   :  { %3986 = vmatpush3.bf16.msra.mxu0 %v4995_v8  ;;  %v696_v33 = vsub.f32 %v5187_v50, %v5074_v41 }
 0x298   :  { %3988 = vmatprep.subr.bf16.mxu0 %v4999_v12 }
 0x299   :  { %vm697_vm9 = vcmp.gt.f32.partialorder %v696_v33, 0.0  ;;  %v577_v33 = vadd.f32 %v576_v40, %v575_v47 }
 0x29a   :  { %v2722_v60 = vsel %vm697_vm9, 1.0, %v6082_v1 }
 0x29b   :  { %3990 = vmatpush3.bf16.msra.mxu0 %v5006_v17  ;;  %v704_v42 = vmul.f32 %v2722_v60, %v703_v54  ;;  %v309_v54 = vld [vmem:[%s6139_s16] sm:$0x1]  ;;  %v578_v60 = vmul.f32 1.8, %v577_v33 }
 0x29c   :  { %4015 = vmatprep.subr.bf16.mxu0 %v6136_v63  ;;  %vm584_vm10 = vcmp.eq.f32.partialorder %v309_v54, 0.0 }
 0x29d   :  { %v977_v4 = vmul.f32 %v704_v42, %v5034_v39 }
 0x29e   :  { %770 = vmatmul.mubr.f32.vlgmr.msra.gmra.mrb[4].mxu0 %v704_v42 }
 0x29f   :  { %4017 = vmatpush3.bf16.msra.mxu0 %v4917_v5  ;;  %3467 = vmatprep.mubr.msk.f32.mxu0 %vm4714_vm0, %v6082_v1  ;;  %v5203_v41 = vadd.f32 %v977_v4, %v976_v19  ;;  %v579_v19 = vadd.f32 0.01, %v578_v60  ;;  %v585_v4 = vsel %vm584_vm10, 1, %v6096_v58  ;;  %v599_v58 = vrot.slane %v309_v54, %v5044_v55 }
 0x2a0   :  { %4018 = vmatprep.subr.bf16.mxu0 %v6136_v63  ;;  %v589_v47 = vrot.slane %v585_v4, %v5044_v55 }
 0x2a1   :  { %v979_v0 = vmul.f32 1.8, %v5203_v41 }
 0x2a2   :  { %vm590_vm11 = vcmp.eq.s32.totalorder %v589_v47, 1 }
 0x2a3   :  { %4020 = vmatpush3.bf16.msra.mxu0 %v4920_v7  ;;  %v5208_v6 = vadd.f32 0.01, %v979_v0  ;;  %v5266_v0 = vld [vmem:[#allocation22] ss:$0 sm:$0xff] }
 0x2a4   :  { %4021 = vmatprep.subr.bf16.mxu0 %v6136_v63 }
 0x2a5   :  { %v5212_v53 = vmul.f32 %v5208_v6, %v704_v42 }
 0x2a7   :  { %4023 = vmatpush3.bf16.msra.mxu0 %v4924_v15 }
 0x2a8   :  { %4024 = vmatprep.subr.bf16.mxu0 %v6136_v63 }
 0x2ab   :  { %4026 = vmatpush3.bf16.msra.mxu0 %v4938_v27 }
 0x2ac   :  { %4027 = vmatprep.subr.bf16.mxu0 %v6136_v63 }
 0x2af   :  { %4029 = vmatpush3.bf16.msra.mxu0 %v4948_v36 }
 0x2b0   :  { %4030 = vmatprep.subr.bf16.mxu0 %v6136_v63 }
 0x2b3   :  { %4032 = vmatpush3.bf16.msra.mxu0 %v4958_v45 }
 0x2b4   :  { %4033 = vmatprep.subr.bf16.mxu0 %v6136_v63 }
 0x2b7   :  { %4035 = vmatpush3.bf16.msra.mxu0 %v4966_v49 }
 0x2b8   :  { %4036 = vmatprep.subr.bf16.mxu0 %v6136_v63 }
 0x2bb   :  { %4038 = vmatpush3.bf16.msra.mxu0 %v4971_v52 }
 0x2bc   :  { %4071 = vmatprep.subr.bf16.mxu0 %v6136_v63 }
 0x2be   :  { %3468 = vmatmul.mubr.f32.vlgmr.msra.gmra.mrb[6].mxu0 %v704_v42  ;;  %v5263_v42 = vld [vmem:[%s6069_s14] ss:$0 sm:$0xff] }
 0x2bf   :  { %4073 = vmatpush3.bf16.msra.mxu0 %v5012_v23  ;;  %3502 = vmatprep.mubr.msk.f32.mxu0 %vm4714_vm0, %v6082_v1  ;;  %6140 = vst [vmem:[#allocation41_spill] sm:$0xff] %v5263_v42  ;;  %v580_v1 = vmul.f32 %v5263_v42, %v158_v32  ;;  %v871_v23 = vmul.f32 %v5247_v13, %v577_v33 }
 0x2c0   :  { %4074 = vmatprep.subr.bf16.mxu0 %v6136_v63 }
 0x2c3   :  { %4076 = vmatpush3.bf16.msra.mxu0 %v5015_v25 }
 0x2c4   :  { %4077 = vmatprep.subr.bf16.mxu0 %v6136_v63 }
 0x2c7   :  { %4079 = vmatpush3.bf16.msra.mxu0 %v5019_v31  ;;  %v6141_v31 = vmov 0.0  }
 0x2c8   :  { %4080 = vmatprep.subr.bf16.mxu0 %v6136_v63 }
 0x2cb   :  { %4082 = vmatpush3.bf16.msra.mxu0 %v5023_v34 }
 0x2cc   :  { %4083 = vmatprep.subr.bf16.mxu0 %v6136_v63 }
 0x2cf   :  { %4085 = vmatpush3.bf16.msra.mxu0 %v5101_v48 }
 0x2d0   :  { %4086 = vmatprep.subr.bf16.mxu0 %v6136_v63 }
 0x2d3   :  { %4088 = vmatpush3.bf16.msra.mxu0 %v5107_v57 }
 0x2d4   :  { %4089 = vmatprep.subr.bf16.mxu0 %v6136_v63 }
 0x2d7   :  { %4091 = vmatpush3.bf16.msra.mxu0 %v5113_v2 }
 0x2d8   :  { %4092 = vmatprep.subr.bf16.mxu0 %v6136_v63 }
 0x2db   :  { %4094 = vmatpush3.bf16.msra.mxu0 %v5116_v9  ;;  %v582_v9 = vmul.f32 %v579_v19, %v158_v32 }
 0x2dc   :  { %4120 = vmatprep.subr.bf16.mxu0 %v4926_v16 }
 0x351   :  { %v571_v16 = vpop.f32.mrb[2].mxu0 }
 0x352   :  { %v572_v40 = vadd.f32 %v5266_v0, %v571_v16  ;;  %v3364_v2 = vpop.f32.mrb[3].mxu0 }
 0x353   :  { %v603_v2 = vld [vmem:[#allocation16 + $0x1] sm:$0x1] }
 0x354   :  { %v581_v57 = vadd.f32 %v580_v1, %v572_v40  ;;  %vm784_vm13 = vcmp.eq.f32.partialorder %v603_v2, 0.0 }
 0x356   :  { %v583_v48 = vsub.f32 %v581_v57, %v582_v9 }
 0x358   :  { %v5271_v34 = vsel %vm590_vm11, %v158_v32, %v583_v48  ;;  %v6142_v32 = vmov 0  }
 0x359   :  { %v592_v60 = vsub.f32 %v5271_v34, %v579_v19  ;;  %v785_v54 = vsel %vm784_vm13, 1, %v6142_v32 }
 0x35a   :  { %v789_v33 = vrot.slane %v785_v54, %v5044_v55  ;;  %v1072_v54 = vmul.f32 %v5128_v10, %v5162_v14 }
 0x35b   :  { %vm593_vm12 = vcmp.gt.f32.partialorder %v592_v60, 0.0 }
 0x35c   :  { %v2721_v25 = vsel %vm593_vm12, 1.0, %v6141_v31  ;;  %vm790_vm14 = vcmp.eq.s32.totalorder %v789_v33, 1 }
 0x35d   :  { %v600_v42 = vmul.f32 %v2721_v25, %v599_v58 }
 0x35f   :  { %601 = vst [vmem:[#allocation23] sm:$0xff] %v600_v42  ;;  %v872_v16 = vmul.f32 %v600_v42, %v5250_v28 }
 0x361   :  { %v5278_v4 = vadd.f32 %v872_v16, %v871_v23  ;;  %v780_v23 = vmul.f32 %v5139_v30, %v5153_v18  ;;  %v799_v16 = vrot.slane %v603_v2, %v5044_v55  ;;  %v899_v2 = vld [vmem:[#allocation14 + $0x2] sm:$0x1] }
 0x362   :  { %vm985_vm1 = vcmp.eq.f32.partialorder %v899_v2, 0.0 }
 0x363   :  { %v874_v1 = vmul.f32 1.8, %v5278_v4  ;;  %v986_v33 = vsel %vm985_vm1, 1, %v6142_v32 }
 0x365   :  { %v5281_v57 = vadd.f32 0.01, %v874_v1 }
 0x367   :  { %v5284_v48 = vmul.f32 %v5281_v57, %v600_v42 }
 0x371   :  { %v2861_v9 = vpop.f32.mrb[4].mxu0 }
 0x372   :  { %v2862_v25 = vpop.f32.mrb[5].mxu0 }
 0x373   :  { %v2863_v58 = vadd.f32 %v2862_v25, %v2861_v9 }
 0x375   :  { %v772_v19 = vadd.f32 %v2863_v58, %v5145_v43  ;;  %v903_v58 = vld [vmem:[#allocation11 + $0x10] sm:$0xff] }
 0x377   :  { %v781_v47 = vadd.f32 %v780_v23, %v772_v19 }
 0x379   :  { %v783_v40 = vsub.f32 %v781_v47, %v5170_v22 }
 0x37b   :  { %v5293_v42 = vsel %vm790_vm14, %v5153_v18, %v783_v40  ;;  %v990_v40 = vrot.slane %v986_v33, %v5044_v55 }
 0x37c   :  { %v792_v60 = vsub.f32 %v5293_v42, %v5167_v24 }
 0x37d   :  { %vm991_vm2 = vcmp.eq.s32.totalorder %v990_v40, 1  ;;  %v6145_v40 = vld [vmem:[#allocation33_spill] sm:$0xff] }
 0x37e   :  { %vm793_vm15 = vcmp.gt.f32.partialorder %v792_v60, 0.0 }
 0x37f   :  { %v2723_v1 = vsel %vm793_vm15, 1.0, %v6141_v31 }
 0x380   :  { %v800_v9 = vmul.f32 %v2723_v1, %v799_v16  ;;  %v981_v16 = vmul.f32 %v5042_v51, %v5187_v50 }
 0x382   :  { %3433 = vmatmul.mubr.f32.vlgmr.msra.gmra.mrb[4].mxu1 %v800_v9  ;;  %v1073_v25 = vmul.f32 %v800_v9, %v5131_v11 }
 0x383   :  { %4042 = vmatpush3.bf16.msra.mxu1 %v4929_v20  ;;  %1066 = vmatprep.mubr.f32.mxu1 %v800_v9 }
 0x384   :  { %4044 = vmatprep.subr.bf16.mxu1 %v4931_v21  ;;  %v5304_v18 = vadd.f32 %v1073_v25, %v1072_v54 }
 0x386   :  { %v1075_v24 = vmul.f32 1.8, %v5304_v18 }
 0x387   :  { %4046 = vmatpush3.bf16.msra.mxu1 %v4935_v26 }
 0x388   :  { %4048 = vmatprep.subr.bf16.mxu1 %v4941_v29  ;;  %v5309_v22 = vadd.f32 0.01, %v1075_v24  ;;  %v1000_v24 = vrot.slane %v899_v2, %v5044_v55 }
 0x38a   :  { %v5312_v14 = vmul.f32 %v5309_v22, %v800_v9 }
 0x38b   :  { %4050 = vmatpush3.bf16.msra.mxu1 %v4945_v35 }
 0x38c   :  { %4052 = vmatprep.subr.bf16.mxu1 %v4951_v38 }
 0x38f   :  { %4054 = vmatpush3.bf16.msra.mxu1 %v4955_v44 }
 0x390   :  { %4056 = vmatprep.subr.bf16.mxu1 %v4961_v46 }
 0x391   :  { %v970_v19 = vpop.f32.mrb[6].mxu0 }
 0x392   :  { %v974_v23 = vadd.f32 %v970_v19, %v903_v58  ;;  %v3469_v47 = vpop.f32.mrb[7].mxu0 }
 0x393   :  { %4058 = vmatpush3.bf16.msra.mxu1 %v4984_v56  ;;  %v6144_v47 = vld [vmem:[#allocation32_spill] sm:$0xff] }
 0x394   :  { %v975_v60 = vadd.f32 %v5050_v61, %v974_v23  ;;  %4060 = vmatprep.subr.bf16.mxu1 %v4987_v59  ;;  %v6143_v23 = vld [vmem:[#allocation31_spill] sm:$0xff] }
 0x396   :  { %v982_v1 = vadd.f32 %v981_v16, %v975_v60  ;;  %v6146_v60 = vld [vmem:[#allocation34_spill] sm:$0xff]  ;;  %v6147_v16 = vld [vmem:[#allocation35_spill] sm:$0xff] }
 0x397   :  { %4062 = vmatpush3.bf16.msra.mxu1 %v4989_v62 }
 0x398   :  { %v984_v9 = vsub.f32 %v982_v1, %v5212_v53  ;;  %4064 = vmatprep.subr.bf16.mxu1 %v4993_v3  ;;  %v6148_v1 = vld [vmem:[#allocation36_spill] sm:$0xff] }
 0x39a   :  { %v5329_v54 = vsel %vm991_vm2, %v5187_v50, %v984_v9  ;;  %v1273_v50 = vmul.f32 %v5031_v37, %v5203_v41  ;;  %v6149_v9 = vld [vmem:[#allocation37_spill] sm:$0xff] }
 0x39b   :  { %4066 = vmatpush3.bf16.msra.mxu1 %v4995_v8  ;;  %v993_v25 = vsub.f32 %v5329_v54, %v5208_v6 }
 0x39c   :  { %4068 = vmatprep.subr.bf16.mxu1 %v4999_v12 }
 0x39d   :  { %vm994_vm3 = vcmp.gt.f32.partialorder %v993_v25, 0.0  ;;  %v6150_v25 = vld [vmem:[#allocation38_spill] sm:$0xff] }
 0x39e   :  { %v2725_v58 = vsel %vm994_vm3, 1.0, %v6141_v31 }
 0x39f   :  { %4070 = vmatpush3.bf16.msra.mxu1 %v5006_v17  ;;  %v1001_v53 = vmul.f32 %v2725_v58, %v1000_v24  ;;  %v6151_v24 = vld [vmem:[#allocation29_spill] sm:$0xff]  ;;  %v604_v58 = vld [vmem:[%s6139_s16 + $0x1] sm:$0x1] }
 0x3a0   :  { %4095 = vmatprep.subr.bf16.mxu1 %v6136_v63  ;;  %vm880_vm4 = vcmp.eq.f32.partialorder %v604_v58, 0.0 }
 0x3a1   :  { %v1274_v33 = vmul.f32 %v1001_v53, %v5034_v39 }
 0x3a2   :  { %1067 = vmatmul.mubr.f32.vlgmr.msra.gmra.mrb[6].mxu1 %v1001_v53 }
 0x3a3   :  { %4097 = vmatpush3.bf16.msra.mxu1 %v4917_v5  ;;  %3537 = vmatprep.mubr.msk.f32.mxu1 %vm4714_vm0, %v6141_v31  ;;  %v5345_v6 = vadd.f32 %v1274_v33, %v1273_v50 }
 0x3a4   :  { %4098 = vmatprep.subr.bf16.mxu1 %v6136_v63 }
 0x3a5   :  { %v1276_v2 = vmul.f32 1.8, %v5345_v6 }
 0x3a7   :  { %4100 = vmatpush3.bf16.msra.mxu1 %v4920_v7  ;;  %v5350_v19 = vadd.f32 0.01, %v1276_v2 }
 0x3a8   :  { %4101 = vmatprep.subr.bf16.mxu1 %v6136_v63 }
 0x3a9   :  { %v5354_v41 = vmul.f32 %v5350_v19, %v1001_v53 }
 0x3ab   :  { %4103 = vmatpush3.bf16.msra.mxu1 %v4924_v15 }
 0x3ac   :  { %4104 = vmatprep.subr.bf16.mxu1 %v6136_v63 }
 0x3af   :  { %4106 = vmatpush3.bf16.msra.mxu1 %v4938_v27 }
 0x3b0   :  { %4107 = vmatprep.subr.bf16.mxu1 %v6136_v63 }
 0x3b3   :  { %4109 = vmatpush3.bf16.msra.mxu1 %v4948_v36 }
 0x3b4   :  { %4110 = vmatprep.subr.bf16.mxu1 %v6136_v63 }
 0x3b7   :  { %4112 = vmatpush3.bf16.msra.mxu1 %v4958_v45 }
 0x3b8   :  { %4113 = vmatprep.subr.bf16.mxu1 %v6136_v63 }
 0x3bb   :  { %4115 = vmatpush3.bf16.msra.mxu1 %v4966_v49 }
 0x3bc   :  { %4116 = vmatprep.subr.bf16.mxu1 %v6136_v63 }
 0x3bf   :  { %4118 = vmatpush3.bf16.msra.mxu1 %v4971_v52 }
 0x3c0   :  { %4151 = vmatprep.subr.bf16.mxu1 %v6136_v63 }
 0x3c2   :  { %3538 = vmatmul.mubr.f32.vlgmr.msra.gmra.mrb[8].mxu1 %v1001_v53  ;;  %v881_v53 = vsel %vm880_vm4, 1, %v6142_v32 }
 0x3c3   :  { %4153 = vmatpush3.bf16.msra.mxu1 %v6143_v23  ;;  %3572 = vmatprep.mubr.msk.f32.mxu1 %vm4714_vm0, %v6141_v31  ;;  %v885_v33 = vrot.slane %v881_v53, %v5044_v55 }
 0x3c4   :  { %4154 = vmatprep.subr.bf16.mxu1 %v6136_v63 }
 0x3c5   :  { %vm886_vm5 = vcmp.eq.s32.totalorder %v885_v33, 1 }
 0x3c7   :  { %4156 = vmatpush3.bf16.msra.mxu1 %v6144_v47  ;;  %v895_v47 = vrot.slane %v604_v58, %v5044_v55 }
 0x3c8   :  { %4157 = vmatprep.subr.bf16.mxu1 %v6136_v63 }
 0x3cb   :  { %4159 = vmatpush3.bf16.msra.mxu1 %v6145_v40 }
 0x3cc   :  { %4160 = vmatprep.subr.bf16.mxu1 %v6136_v63 }
 0x3cf   :  { %4162 = vmatpush3.bf16.msra.mxu1 %v6146_v60 }
 0x3d0   :  { %4163 = vmatprep.subr.bf16.mxu1 %v6136_v63 }
 0x3d3   :  { %4165 = vmatpush3.bf16.msra.mxu1 %v6147_v16 }
 0x3d4   :  { %4166 = vmatprep.subr.bf16.mxu1 %v6136_v63 }
 0x3d7   :  { %4168 = vmatpush3.bf16.msra.mxu1 %v6148_v1 }
 0x3d8   :  { %4169 = vmatprep.subr.bf16.mxu1 %v6136_v63 }
 0x3db   :  { %4171 = vmatpush3.bf16.msra.mxu1 %v6149_v9  ;;  %v6152_v9 = vld [vmem:[#allocation41_spill] sm:$0xff] }
 0x3dc   :  { %4172 = vmatprep.subr.bf16.mxu1 %v6136_v63  ;;  %v876_v1 = vmul.f32 %v6152_v9, %v5271_v34 }
 0x3df   :  { %4174 = vmatpush3.bf16.msra.mxu1 %v6150_v25 }
 0x3e0   :  { %4200 = vmatprep.subr.bf16.mxu1 %v6151_v24 }
 0x455   :  { %v867_v50 = vpop.f32.mrb[4].mxu1 }
 0x456   :  { %v868_v2 = vadd.f32 %v5266_v0, %v867_v50  ;;  %v3434_v16 = vpop.f32.mrb[5].mxu1 }
 0x457   :  { %v1168_v16 = vmul.f32 %v5247_v13, %v5278_v4 }
 0x458   :  { %v877_v60 = vadd.f32 %v876_v1, %v868_v2 }
 0x45a   :  { %v879_v24 = vsub.f32 %v877_v60, %v5284_v48  ;;  %v900_v60 = vld [vmem:[#allocation16 + $0x2] sm:$0x1] }
 0x45b   :  { %vm1081_vm7 = vcmp.eq.f32.partialorder %v900_v60, 0.0 }
 0x45c   :  { %v5396_v25 = vsel %vm886_vm5, %v5271_v34, %v879_v24 }
 0x45d   :  { %v888_v40 = vsub.f32 %v5396_v25, %v5281_v57 }
 0x45f   :  { %vm889_vm6 = vcmp.gt.f32.partialorder %v888_v40, 0.0 }
 0x460   :  { %v2724_v53 = vsel %vm889_vm6, 1.0, %v6141_v31 }
 0x461   :  { %v896_v50 = vmul.f32 %v2724_v53, %v895_v47  ;;  %v1082_v47 = vsel %vm1081_vm7, 1, %v6142_v32  ;;  %v1077_v53 = vmul.f32 %v5139_v30, %v5293_v42 }
 0x462   :  { %v1086_v4 = vrot.slane %v1082_v47, %v5044_v55 }
 0x463   :  { %898 = vst [vmem:[#allocation23 + $0x8] sm:$0xff] %v896_v50  ;;  %v1169_v1 = vmul.f32 %v896_v50, %v5250_v28  ;;  %v1096_v28 = vrot.slane %v900_v60, %v5044_v55  ;;  %v1200_v60 = vld [vmem:[#allocation11 + $0x18] sm:$0xff] }
 0x464   :  { %vm1087_vm8 = vcmp.eq.s32.totalorder %v1086_v4, 1 }
 0x465   :  { %v5405_v33 = vadd.f32 %v1169_v1, %v1168_v16 }
 0x467   :  { %v1171_v34 = vmul.f32 1.8, %v5405_v33 }
 0x469   :  { %v5408_v48 = vadd.f32 0.01, %v1171_v34 }
 0x46b   :  { %v5411_v57 = vmul.f32 %v5408_v48, %v896_v50 }
 0x475   :  { %v2930_v40 = vpop.f32.mrb[6].mxu1 }
 0x476   :  { %v2931_v24 = vpop.f32.mrb[7].mxu1 }
 0x477   :  { %v2932_v58 = vadd.f32 %v2931_v24, %v2930_v40  ;;  %v1369_v24 = vmul.f32 %v5128_v10, %v5304_v18 }
 0x479   :  { %v1069_v2 = vadd.f32 %v2932_v58, %v5145_v43 }
 0x47b   :  { %v1078_v16 = vadd.f32 %v1077_v53, %v1069_v2 }
 0x47d   :  { %v1080_v1 = vsub.f32 %v1078_v16, %v5312_v14  ;;  %v1196_v14 = vld [vmem:[#allocation14 + $0x3] sm:$0x1] }
 0x47e   :  { %vm1282_vm10 = vcmp.eq.f32.partialorder %v1196_v14, 0.0 }
 0x47f   :  { %v5420_v50 = vsel %vm1087_vm8, %v5293_v42, %v1080_v1  ;;  %v1283_v4 = vsel %vm1282_vm10, 1, %v6142_v32 }
 0x480   :  { %v1089_v34 = vsub.f32 %v5420_v50, %v5309_v22  ;;  %v1287_v1 = vrot.slane %v1283_v4, %v5044_v55 }
 0x482   :  { %vm1090_vm9 = vcmp.gt.f32.partialorder %v1089_v34, 0.0  ;;  %vm1288_vm11 = vcmp.eq.s32.totalorder %v1287_v1, 1  ;;  %v6157_v1 = vld [vmem:[#allocation36_spill] sm:$0xff] }
 0x483   :  { %v2726_v40 = vsel %vm1090_vm9, 1.0, %v6141_v31 }
 0x484   :  { %v1097_v47 = vmul.f32 %v2726_v40, %v1096_v28  ;;  %v1278_v40 = vmul.f32 %v5042_v51, %v5329_v54  ;;  %v1297_v51 = vrot.slane %v1196_v14, %v5044_v55 }
 0x486   :  { %3503 = vmatmul.mubr.f32.vlgmr.msra.gmra.mrb[8].mxu0 %v1097_v47  ;;  %v1370_v58 = vmul.f32 %v1097_v47, %v5131_v11 }
 0x487   :  { %4122 = vmatpush3.bf16.msra.mxu0 %v4929_v20  ;;  %1363 = vmatprep.mubr.f32.mxu0 %v1097_v47 }
 0x488   :  { %4124 = vmatprep.subr.bf16.mxu0 %v4931_v21  ;;  %v5431_v42 = vadd.f32 %v1370_v58, %v1369_v24 }
 0x48a   :  { %v1372_v22 = vmul.f32 1.8, %v5431_v42 }
 0x48b   :  { %4126 = vmatpush3.bf16.msra.mxu0 %v4935_v26 }
 0x48c   :  { %4128 = vmatprep.subr.bf16.mxu0 %v4941_v29  ;;  %v5436_v28 = vadd.f32 0.01, %v1372_v22 }
 0x48e   :  { %v5439_v18 = vmul.f32 %v5436_v28, %v1097_v47 }
 0x48f   :  { %4130 = vmatpush3.bf16.msra.mxu0 %v4945_v35 }
 0x490   :  { %4132 = vmatprep.subr.bf16.mxu0 %v4951_v38 }
 0x493   :  { %4134 = vmatpush3.bf16.msra.mxu0 %v4955_v44 }
 0x494   :  { %4136 = vmatprep.subr.bf16.mxu0 %v4961_v46 }
 0x495   :  { %v1267_v2 = vpop.f32.mrb[8].mxu1 }
 0x496   :  { %v1271_v53 = vadd.f32 %v1267_v2, %v1200_v60  ;;  %v3539_v16 = vpop.f32.mrb[9].mxu1  ;;  %v6154_v2 = vld [vmem:[#allocation33_spill] sm:$0xff] }
 0x497   :  { %4138 = vmatpush3.bf16.msra.mxu0 %v4984_v56  ;;  %v6156_v16 = vld [vmem:[#allocation35_spill] sm:$0xff] }
 0x498   :  { %v1272_v34 = vadd.f32 %v5050_v61, %v1271_v53  ;;  %4140 = vmatprep.subr.bf16.mxu0 %v4987_v59  ;;  %v6155_v53 = vld [vmem:[#allocation34_spill] sm:$0xff] }
 0x49a   :  { %v1279_v47 = vadd.f32 %v1278_v40, %v1272_v34  ;;  %v6158_v34 = vld [vmem:[#allocation37_spill] sm:$0xff]  ;;  %v6159_v40 = vld [vmem:[#allocation38_spill] sm:$0xff] }
 0x49b   :  { %4142 = vmatpush3.bf16.msra.mxu0 %v4989_v62 }
 0x49c   :  { %v1281_v24 = vsub.f32 %v1279_v47, %v5354_v41  ;;  %4144 = vmatprep.subr.bf16.mxu0 %v4993_v3  ;;  %v6160_v47 = vld [vmem:[#allocation29_spill] sm:$0xff] }
 0x49e   :  { %v5456_v58 = vsel %vm1288_vm11, %v5329_v54, %v1281_v24  ;;  %v1570_v54 = vmul.f32 %v5031_v37, %v5345_v6  ;;  %v6153_v6 = vld [vmem:[#allocation32_spill] sm:$0xff]  ;;  %v901_v24 = vld [vmem:[%s6139_s16 + $0x2] sm:$0x1] }
 0x49f   :  { %4146 = vmatpush3.bf16.msra.mxu0 %v4995_v8  ;;  %v1290_v61 = vsub.f32 %v5456_v58, %v5350_v19  ;;  %vm1177_vm13 = vcmp.eq.f32.partialorder %v901_v24, 0.0 }
 0x4a0   :  { %4148 = vmatprep.subr.bf16.mxu0 %v4999_v12 }
 0x4a1   :  { %vm1291_vm12 = vcmp.gt.f32.partialorder %v1290_v61, 0.0  ;;  %v1178_v61 = vsel %vm1177_vm13, 1, %v6142_v32 }
 0x4a2   :  { %v2728_v22 = vsel %vm1291_vm12, 1.0, %v6141_v31 }
 0x4a3   :  { %4150 = vmatpush3.bf16.msra.mxu0 %v5006_v17  ;;  %v1298_v41 = vmul.f32 %v2728_v22, %v1297_v51  ;;  %v1182_v22 = vrot.slane %v1178_v61, %v5044_v55 }
 0x4a4   :  { %4175 = vmatprep.subr.bf16.mxu0 %v6136_v63 }
 0x4a5   :  { %v1571_v60 = vmul.f32 %v1298_v41, %v5034_v39  ;;  %vm1183_vm14 = vcmp.eq.s32.totalorder %v1182_v22, 1 }
 0x4a6   :  { %1364 = vmatmul.mubr.f32.vlgmr.msra.gmra.mrb[10].mxu0 %v1298_v41 }
 0x4a7   :  { %4177 = vmatpush3.bf16.msra.mxu0 %v4917_v5  ;;  %3607 = vmatprep.mubr.msk.f32.mxu0 %vm4714_vm0, %v6141_v31  ;;  %v5472_v19 = vadd.f32 %v1571_v60, %v1570_v54  ;;  %v1173_v54 = vmul.f32 %v6152_v9, %v5396_v25 }
 0x4a8   :  { %4178 = vmatprep.subr.bf16.mxu0 %v6136_v63 }
 0x4a9   :  { %v1573_v14 = vmul.f32 1.8, %v5472_v19 }
 0x4ab   :  { %4180 = vmatpush3.bf16.msra.mxu0 %v4920_v7  ;;  %v5477_v4 = vadd.f32 0.01, %v1573_v14 }
 0x4ac   :  { %4181 = vmatprep.subr.bf16.mxu0 %v6136_v63 }
 0x4ad   :  { %v5481_v37 = vmul.f32 %v5477_v4, %v1298_v41 }
 0x4af   :  { %4183 = vmatpush3.bf16.msra.mxu0 %v4924_v15 }
 0x4b0   :  { %4184 = vmatprep.subr.bf16.mxu0 %v6136_v63 }
 0x4b3   :  { %4186 = vmatpush3.bf16.msra.mxu0 %v4938_v27 }
 0x4b4   :  { %4187 = vmatprep.subr.bf16.mxu0 %v6136_v63 }
 0x4b7   :  { %4189 = vmatpush3.bf16.msra.mxu0 %v4948_v36 }
 0x4b8   :  { %4190 = vmatprep.subr.bf16.mxu0 %v6136_v63 }
 0x4bb   :  { %4192 = vmatpush3.bf16.msra.mxu0 %v4958_v45 }
 0x4bc   :  { %4193 = vmatprep.subr.bf16.mxu0 %v6136_v63 }
 0x4bf   :  { %4195 = vmatpush3.bf16.msra.mxu0 %v4966_v49 }
 0x4c0   :  { %4196 = vmatprep.subr.bf16.mxu0 %v6136_v63 }
 0x4c3   :  { %4198 = vmatpush3.bf16.msra.mxu0 %v4971_v52 }
 0x4c4   :  { %4231 = vmatprep.subr.bf16.mxu0 %v6136_v63 }
 0x4c6   :  { %3608 = vmatmul.mubr.f32.vlgmr.msra.gmra.mrb[12].mxu0 %v1298_v41 }
 0x4c7   :  { %4233 = vmatpush3.bf16.msra.mxu0 %v6143_v23  ;;  %3642 = vmatprep.mubr.msk.f32.mxu0 %vm4714_vm0, %v6141_v31 }
 0x4c8   :  { %4234 = vmatprep.subr.bf16.mxu0 %v6136_v63 }
 0x4cb   :  { %4236 = vmatpush3.bf16.msra.mxu0 %v6153_v6 }
 0x4cc   :  { %4237 = vmatprep.subr.bf16.mxu0 %v6136_v63 }
 0x4cf   :  { %4239 = vmatpush3.bf16.msra.mxu0 %v6154_v2 }
 0x4d0   :  { %4240 = vmatprep.subr.bf16.mxu0 %v6136_v63 }
 0x4d3   :  { %4242 = vmatpush3.bf16.msra.mxu0 %v6155_v53 }
 0x4d4   :  { %4243 = vmatprep.subr.bf16.mxu0 %v6136_v63 }
 0x4d7   :  { %4245 = vmatpush3.bf16.msra.mxu0 %v6156_v16 }
 0x4d8   :  { %4246 = vmatprep.subr.bf16.mxu0 %v6136_v63 }
 0x4db   :  { %4248 = vmatpush3.bf16.msra.mxu0 %v6157_v1  ;;  %v1192_v1 = vrot.slane %v901_v24, %v5044_v55 }
 0x4dc   :  { %4249 = vmatprep.subr.bf16.mxu0 %v6136_v63 }
 0x4df   :  { %4251 = vmatpush3.bf16.msra.mxu0 %v6158_v34 }
 0x4e0   :  { %4252 = vmatprep.subr.bf16.mxu0 %v6136_v63 }
 0x4e3   :  { %4254 = vmatpush3.bf16.msra.mxu0 %v6159_v40 }
 0x4e4   :  { %4280 = vmatprep.subr.bf16.mxu0 %v6160_v47 }
 0x559   :  { %v1164_v51 = vpop.f32.mrb[8].mxu0 }
 0x55a   :  { %v1165_v41 = vadd.f32 %v5266_v0, %v1164_v51  ;;  %v3504_v60 = vpop.f32.mrb[9].mxu0 }
 0x55b   :  { %v1465_v60 = vmul.f32 %v5247_v13, %v5405_v33 }
 0x55c   :  { %v1174_v14 = vadd.f32 %v1173_v54, %v1165_v41  ;;  %v6161_v41 = vld [vmem:[#allocation40_spill] sm:$0xff] }
 0x55e   :  { %v1176_v47 = vsub.f32 %v1174_v14, %v5411_v57 }
 0x560   :  { %v5523_v40 = vsel %vm1183_vm14, %v5396_v25, %v1176_v47  ;;  %v1197_v47 = vld [vmem:[#allocation16 + $0x3] sm:$0x1] }
 0x561   :  { %v1185_v34 = vsub.f32 %v5523_v40, %v5408_v48  ;;  %vm1378_vm1 = vcmp.eq.f32.partialorder %v1197_v47, 0.0  ;;  %v1393_v13 = vrot.slane %v1197_v47, %v5044_v55 }
 0x563   :  { %vm1186_vm15 = vcmp.gt.f32.partialorder %v1185_v34, 0.0 }
 0x564   :  { %v2727_v61 = vsel %vm1186_vm15, 1.0, %v6141_v31 }
 0x565   :  { %v1193_v51 = vmul.f32 %v2727_v61, %v1192_v1  ;;  %v1379_v1 = vsel %vm1378_vm1, 1, %v6142_v32 }
 0x566   :  { %v1383_v33 = vrot.slane %v1379_v1, %v5044_v55 }
 0x567   :  { %1195 = vst [vmem:[#allocation23 + $0x10] sm:$0xff] %v1193_v51  ;;  %v1466_v22 = vmul.f32 %v1193_v51, %v6161_v41 }
 0x568   :  { %vm1384_vm2 = vcmp.eq.s32.totalorder %v1383_v33, 1 }
 0x569   :  { %v5532_v54 = vadd.f32 %v1466_v22, %v1465_v60  ;;  %v1374_v60 = vmul.f32 %v5139_v30, %v5420_v50  ;;  %v1666_v30 = vmul.f32 %v5128_v10, %v5431_v42  ;;  %v1497_v42 = vld [vmem:[#allocation11 + $0x20] sm:$0xff] }
 0x56b   :  { %v1468_v25 = vmul.f32 1.8, %v5532_v54 }
 0x56d   :  { %v5535_v57 = vadd.f32 0.01, %v1468_v25 }
 0x56f   :  { %v5538_v48 = vmul.f32 %v5535_v57, %v1193_v51 }
 0x579   :  { %v2999_v34 = vpop.f32.mrb[10].mxu0 }
 0x57a   :  { %v3000_v24 = vpop.f32.mrb[11].mxu0 }
 0x57b   :  { %v3001_v14 = vadd.f32 %v3000_v24, %v2999_v34 }
 0x57d   :  { %v1366_v61 = vadd.f32 %v3001_v14, %v5145_v43 }
 0x57f   :  { %v1375_v22 = vadd.f32 %v1374_v60, %v1366_v61  ;;  %v5578_v61 = vld [vmem:[%s6060_s5] ss:$0 sm:$0xff] }
 0x581   :  { %v1377_v25 = vsub.f32 %v1375_v22, %v5439_v18  ;;  %v1493_v18 = vld [vmem:[#allocation14 + $0x4] sm:$0x1]  ;;  %v5584_v22 = vld [vmem:[%s6065_s10] ss:$0 sm:$0xff] }
 0x582   :  { %vm1579_vm4 = vcmp.eq.f32.partialorder %v1493_v18, 0.0 }
 0x583   :  { %v5547_v51 = vsel %vm1384_vm2, %v5420_v50, %v1377_v25  ;;  %v1575_v25 = vmul.f32 %v5584_v22, %v5456_v58 }
 0x584   :  { %v1386_v41 = vsub.f32 %v5547_v51, %v5436_v28 }
 0x586   :  { %vm1387_vm3 = vcmp.gt.f32.partialorder %v1386_v41, 0.0  ;;  %v1580_v41 = vsel %vm1579_vm4, 1, %v6142_v32 }
 0x587   :  { %v2729_v34 = vsel %vm1387_vm3, 1.0, %v6141_v31  ;;  %v1584_v33 = vrot.slane %v1580_v41, %v5044_v55 }
 0x588   :  { %v1394_v1 = vmul.f32 %v2729_v34, %v1393_v13 }
 0x589   :  { %vm1585_vm5 = vcmp.eq.s32.totalorder %v1584_v33, 1  ;;  %v6163_v33 = vld [vmem:[#allocation37_spill] sm:$0xff] }
 0x58a   :  { %3573 = vmatmul.mubr.f32.vlgmr.msra.gmra.mrb[10].mxu1 %v1394_v1  ;;  %v1667_v43 = vmul.f32 %v1394_v1, %v5131_v11 }
 0x58b   :  { %4202 = vmatpush3.bf16.msra.mxu1 %v4929_v20  ;;  %1660 = vmatprep.mubr.f32.mxu1 %v1394_v1 }
 0x58c   :  { %4204 = vmatprep.subr.bf16.mxu1 %v4931_v21  ;;  %v5558_v50 = vadd.f32 %v1667_v43, %v1666_v30 }
 0x58e   :  { %v1669_v28 = vmul.f32 1.8, %v5558_v50 }
 0x58f   :  { %4206 = vmatpush3.bf16.msra.mxu1 %v4935_v26 }
 0x590   :  { %4208 = vmatprep.subr.bf16.mxu1 %v4941_v29  ;;  %v5563_v13 = vadd.f32 0.01, %v1669_v28  ;;  %v1594_v28 = vrot.slane %v1493_v18, %v5044_v55 }
 0x592   :  { %v5566_v10 = vmul.f32 %v5563_v13, %v1394_v1 }
 0x593   :  { %4210 = vmatpush3.bf16.msra.mxu1 %v4945_v35 }
 0x594   :  { %4212 = vmatprep.subr.bf16.mxu1 %v4951_v38 }
 0x597   :  { %4214 = vmatpush3.bf16.msra.mxu1 %v4955_v44 }
 0x598   :  { %4216 = vmatprep.subr.bf16.mxu1 %v4961_v46 }
 0x599   :  { %v1564_v47 = vpop.f32.mrb[12].mxu0 }
 0x59a   :  { %v1568_v24 = vadd.f32 %v1564_v47, %v1497_v42  ;;  %v3609_v14 = vpop.f32.mrb[13].mxu0 }
 0x59b   :  { %4218 = vmatpush3.bf16.msra.mxu1 %v4984_v56  ;;  %v6162_v14 = vld [vmem:[#allocation36_spill] sm:$0xff] }
 0x59c   :  { %v1569_v60 = vadd.f32 %v5578_v61, %v1568_v24  ;;  %4220 = vmatprep.subr.bf16.mxu1 %v4987_v59 }
 0x59e   :  { %v1576_v34 = vadd.f32 %v1575_v25, %v1569_v60  ;;  %v6164_v60 = vld [vmem:[#allocation38_spill] sm:$0xff]  ;;  %v6165_v25 = vld [vmem:[#allocation29_spill] sm:$0xff] }
 0x59f   :  { %4222 = vmatpush3.bf16.msra.mxu1 %v4989_v62 }
 0x5a0   :  { %v1578_v1 = vsub.f32 %v1576_v34, %v5481_v37  ;;  %4224 = vmatprep.subr.bf16.mxu1 %v4993_v3  ;;  %v1198_v34 = vld [vmem:[%s6139_s16 + $0x3] sm:$0x1] }
 0x5a1   :  { %vm1474_vm7 = vcmp.eq.f32.partialorder %v1198_v34, 0.0 }
 0x5a2   :  { %v5593_v30 = vsel %vm1585_vm5, %v5456_v58, %v1578_v1  ;;  %v5606_v58 = vld [vmem:[%s6066_s11] ss:$0 sm:$0xff]  ;;  %v1475_v1 = vsel %vm1474_vm7, 1, %v6142_v32 }
 0x5a3   :  { %4226 = vmatpush3.bf16.msra.mxu1 %v4995_v8  ;;  %v1587_v43 = vsub.f32 %v5593_v30, %v5477_v4  ;;  %v1867_v4 = vmul.f32 %v5606_v58, %v5472_v19 }
 0x5a4   :  { %4228 = vmatprep.subr.bf16.mxu1 %v4999_v12 }
 0x5a5   :  { %vm1588_vm6 = vcmp.gt.f32.partialorder %v1587_v43, 0.0 }
 0x5a6   :  { %v2731_v42 = vsel %vm1588_vm6, 1.0, %v6141_v31 }
 0x5a7   :  { %4230 = vmatpush3.bf16.msra.mxu1 %v5006_v17  ;;  %v1595_v37 = vmul.f32 %v2731_v42, %v1594_v28  ;;  %v1479_v28 = vrot.slane %v1475_v1, %v5044_v55 }
 0x5a8   :  { %4255 = vmatprep.subr.bf16.mxu1 %v6136_v63 }
 0x5a9   :  { %v1868_v18 = vmul.f32 %v1595_v37, %v5034_v39  ;;  %vm1480_vm8 = vcmp.eq.s32.totalorder %v1479_v28, 1 }
 0x5aa   :  { %1661 = vmatmul.mubr.f32.vlgmr.msra.gmra.mrb[12].mxu1 %v1595_v37 }
 0x5ab   :  { %4257 = vmatpush3.bf16.msra.mxu1 %v4917_v5  ;;  %3677 = vmatprep.mubr.msk.f32.mxu1 %vm4714_vm0, %v6141_v31  ;;  %v5614_v41 = vadd.f32 %v1868_v18, %v1867_v4 }
 0x5ac   :  { %4258 = vmatprep.subr.bf16.mxu1 %v6136_v63 }
 0x5ad   :  { %v1870_v47 = vmul.f32 1.8, %v5614_v41 }
 0x5af   :  { %4260 = vmatpush3.bf16.msra.mxu1 %v4920_v7  ;;  %v5619_v24 = vadd.f32 0.01, %v1870_v47 }
 0x5b0   :  { %4261 = vmatprep.subr.bf16.mxu1 %v6136_v63 }
 0x5b1   :  { %v5623_v19 = vmul.f32 %v5619_v24, %v1595_v37 }
 0x5b3   :  { %4263 = vmatpush3.bf16.msra.mxu1 %v4924_v15 }
 0x5b4   :  { %4264 = vmatprep.subr.bf16.mxu1 %v6136_v63 }
 0x5b7   :  { %4266 = vmatpush3.bf16.msra.mxu1 %v4938_v27 }
 0x5b8   :  { %4267 = vmatprep.subr.bf16.mxu1 %v6136_v63 }
 0x5bb   :  { %4269 = vmatpush3.bf16.msra.mxu1 %v4948_v36 }
 0x5bc   :  { %4270 = vmatprep.subr.bf16.mxu1 %v6136_v63 }
 0x5bf   :  { %4272 = vmatpush3.bf16.msra.mxu1 %v4958_v45 }
 0x5c0   :  { %4273 = vmatprep.subr.bf16.mxu1 %v6136_v63 }
 0x5c3   :  { %4275 = vmatpush3.bf16.msra.mxu1 %v4966_v49 }
 0x5c4   :  { %4276 = vmatprep.subr.bf16.mxu1 %v6136_v63 }
 0x5c7   :  { %4278 = vmatpush3.bf16.msra.mxu1 %v4971_v52 }
 0x5c8   :  { %4311 = vmatprep.subr.bf16.mxu1 %v6136_v63 }
 0x5ca   :  { %3678 = vmatmul.mubr.f32.vlgmr.msra.gmra.mrb[14].mxu1 %v1595_v37  ;;  %v1470_v37 = vmul.f32 %v6152_v9, %v5523_v40  ;;  %v6166_v9 = vld [vmem:[#allocation39_spill] sm:$0xff] }
 0x5cb   :  { %4313 = vmatpush3.bf16.msra.mxu1 %v6143_v23  ;;  %3712 = vmatprep.mubr.msk.f32.mxu1 %vm4714_vm0, %v6141_v31 }
 0x5cc   :  { %4314 = vmatprep.subr.bf16.mxu1 %v6136_v63 }
 0x5cf   :  { %4316 = vmatpush3.bf16.msra.mxu1 %v6153_v6 }
 0x5d0   :  { %4317 = vmatprep.subr.bf16.mxu1 %v6136_v63 }
 0x5d3   :  { %4319 = vmatpush3.bf16.msra.mxu1 %v6154_v2 }
 0x5d4   :  { %4320 = vmatprep.subr.bf16.mxu1 %v6136_v63 }
 0x5d7   :  { %4322 = vmatpush3.bf16.msra.mxu1 %v6155_v53 }
 0x5d8   :  { %4323 = vmatprep.subr.bf16.mxu1 %v6136_v63 }
 0x5db   :  { %4325 = vmatpush3.bf16.msra.mxu1 %v6156_v16 }
 0x5dc   :  { %4326 = vmatprep.subr.bf16.mxu1 %v6136_v63 }
 0x5df   :  { %4328 = vmatpush3.bf16.msra.mxu1 %v6162_v14 }
 0x5e0   :  { %4329 = vmatprep.subr.bf16.mxu1 %v6136_v63 }
 0x5e3   :  { %4331 = vmatpush3.bf16.msra.mxu1 %v6163_v33  ;;  %v1489_v33 = vrot.slane %v1198_v34, %v5044_v55  ;;  %v1494_v34 = vld [vmem:[#allocation16 + $0x4] sm:$0x1] }
 0x5e4   :  { %4332 = vmatprep.subr.bf16.mxu1 %v6136_v63  ;;  %vm1675_vm10 = vcmp.eq.f32.partialorder %v1494_v34, 0.0 }
 0x5e7   :  { %4334 = vmatpush3.bf16.msra.mxu1 %v6164_v60 }
 0x5e8   :  { %4360 = vmatprep.subr.bf16.mxu1 %v6165_v25 }
 0x65d   :  { %v1461_v43 = vpop.f32.mrb[10].mxu1 }
 0x65e   :  { %v1462_v42 = vadd.f32 %v5266_v0, %v1461_v43  ;;  %v3574_v4 = vpop.f32.mrb[11].mxu1  ;;  %v1762_v43 = vmul.f32 %v6166_v9, %v5532_v54 }
 0x660   :  { %v1471_v18 = vadd.f32 %v1470_v37, %v1462_v42  ;;  %v6167_v42 = vld [vmem:[#allocation40_spill] sm:$0xff] }
 0x662   :  { %v1473_v47 = vsub.f32 %v1471_v18, %v5538_v48 }
 0x664   :  { %v5665_v25 = vsel %vm1480_vm8, %v5523_v40, %v1473_v47  ;;  %v5687_v47 = vld [vmem:[%s6062_s7] ss:$0 sm:$0xff] }
 0x665   :  { %v1482_v60 = vsub.f32 %v5665_v25, %v5535_v57 }
 0x667   :  { %vm1483_vm9 = vcmp.gt.f32.partialorder %v1482_v60, 0.0 }
 0x668   :  { %v2730_v1 = vsel %vm1483_vm9, 1.0, %v6141_v31 }
 0x669   :  { %v1490_v0 = vmul.f32 %v2730_v1, %v1489_v33  ;;  %v1676_v33 = vsel %vm1675_vm10, 1, %v6142_v32 }
 0x66a   :  { %v1680_v54 = vrot.slane %v1676_v33, %v5044_v55  ;;  %v1690_v33 = vrot.slane %v1494_v34, %v5044_v55 }
 0x66b   :  { %1492 = vst [vmem:[#allocation23 + $0x18] sm:$0xff] %v1490_v0  ;;  %v1763_v28 = vmul.f32 %v1490_v0, %v6167_v42 }
 0x66c   :  { %vm1681_vm11 = vcmp.eq.s32.totalorder %v1680_v54, 1 }
 0x66d   :  { %v5674_v37 = vadd.f32 %v1763_v28, %v1762_v43 }
 0x66f   :  { %v1765_v40 = vmul.f32 1.8, %v5674_v37 }
 0x671   :  { %v5677_v48 = vadd.f32 0.01, %v1765_v40 }
 0x673   :  { %v5680_v57 = vmul.f32 %v5677_v48, %v1490_v0  ;;  %v5693_v0 = vld [vmem:[%s6067_s12] ss:$0 sm:$0xff] }
 0x674   :  { %v1671_v9 = vmul.f32 %v5693_v0, %v5547_v51 }
 0x67d   :  { %v3068_v60 = vpop.f32.mrb[12].mxu1 }
 0x67e   :  { %v3069_v4 = vpop.f32.mrb[13].mxu1 }
 0x67f   :  { %v3070_v18 = vadd.f32 %v3069_v4, %v3068_v60 }
 0x681   :  { %v1663_v1 = vadd.f32 %v5687_v47, %v3070_v18 }
 0x683   :  { %v1672_v43 = vadd.f32 %v1671_v9, %v1663_v1  ;;  %v5708_v1 = vld [vmem:[%s6068_s13] ss:$0 sm:$0xff]  ;;  %v1790_v9 = vld [vmem:[#allocation14 + $0x5] sm:$0x1] }
 0x684   :  { %vm1876_vm13 = vcmp.eq.f32.partialorder %v1790_v9, 0.0 }
 0x685   :  { %v1674_v28 = vsub.f32 %v1672_v43, %v5566_v10  ;;  %v1963_v10 = vmul.f32 %v5708_v1, %v5558_v50  ;;  %v1794_v43 = vld [vmem:[#allocation11 + $0x28] sm:$0xff] }
 0x687   :  { %v5699_v40 = vsel %vm1681_vm11, %v5547_v51, %v1674_v28  ;;  %v1877_v28 = vsel %vm1876_vm13, 1, %v6142_v32 }
 0x688   :  { %v1683_v60 = vsub.f32 %v5699_v40, %v5563_v13 }
 0x68a   :  { %vm1684_vm12 = vcmp.gt.f32.partialorder %v1683_v60, 0.0 }
 0x68b   :  { %v2732_v4 = vsel %vm1684_vm12, 1.0, %v6141_v31 }
 0x68c   :  { %v1691_v18 = vmul.f32 %v2732_v4, %v1690_v33 }
 0x68e   :  { %3643 = vmatmul.mubr.f32.vlgmr.msra.gmra.mrb[14].mxu0 %v1691_v18  ;;  %v1964_v51 = vmul.f32 %v1691_v18, %v5131_v11 }
 0x68f   :  { %4282 = vmatpush3.bf16.msra.mxu0 %v4929_v20  ;;  %1957 = vmatprep.mubr.f32.mxu0 %v1691_v18 }
 0x690   :  { %4284 = vmatprep.subr.bf16.mxu0 %v4931_v21  ;;  %v5715_v13 = vadd.f32 %v1964_v51, %v1963_v10  ;;  %v1872_v51 = vmul.f32 %v5584_v22, %v5593_v30 }
 0x692   :  { %v1966_v34 = vmul.f32 1.8, %v5715_v13 }
 0x693   :  { %4286 = vmatpush3.bf16.msra.mxu0 %v4935_v26 }
 0x694   :  { %4288 = vmatprep.subr.bf16.mxu0 %v4941_v29  ;;  %v5720_v54 = vadd.f32 0.01, %v1966_v34 }
 0x696   :  { %v5723_v50 = vmul.f32 %v5720_v54, %v1691_v18  ;;  %v1881_v18 = vrot.slane %v1877_v28, %v5044_v55 }
 0x697   :  { %4290 = vmatpush3.bf16.msra.mxu0 %v4945_v35 }
 0x698   :  { %4292 = vmatprep.subr.bf16.mxu0 %v4951_v38  ;;  %vm1882_vm14 = vcmp.eq.s32.totalorder %v1881_v18, 1  ;;  %v6168_v18 = vld [vmem:[#allocation37_spill] sm:$0xff] }
 0x69b   :  { %4294 = vmatpush3.bf16.msra.mxu0 %v4955_v44 }
 0x69c   :  { %4296 = vmatprep.subr.bf16.mxu0 %v4961_v46 }
 0x69d   :  { %v1861_v60 = vpop.f32.mrb[14].mxu1 }
 0x69e   :  { %v1865_v33 = vadd.f32 %v1861_v60, %v1794_v43  ;;  %v3679_v4 = vpop.f32.mrb[15].mxu1  ;;  %v1891_v60 = vrot.slane %v1790_v9, %v5044_v55 }
 0x69f   :  { %4298 = vmatpush3.bf16.msra.mxu0 %v4984_v56 }
 0x6a0   :  { %v1866_v10 = vadd.f32 %v5578_v61, %v1865_v33  ;;  %4300 = vmatprep.subr.bf16.mxu0 %v4987_v59 }
 0x6a2   :  { %v1873_v34 = vadd.f32 %v1872_v51, %v1866_v10  ;;  %v6169_v10 = vld [vmem:[#allocation38_spill] sm:$0xff]  ;;  %v6170_v51 = vld [vmem:[#allocation29_spill] sm:$0xff] }
 0x6a3   :  { %4302 = vmatpush3.bf16.msra.mxu0 %v4989_v62 }
 0x6a4   :  { %v1875_v46 = vsub.f32 %v1873_v34, %v5623_v19  ;;  %4304 = vmatprep.subr.bf16.mxu0 %v4993_v3  ;;  %v1495_v34 = vld [vmem:[%s6139_s16 + $0x4] sm:$0x1] }
 0x6a5   :  { %vm1771_vm1 = vcmp.eq.f32.partialorder %v1495_v34, 0.0 }
 0x6a6   :  { %v5740_v43 = vsel %vm1882_vm14, %v5593_v30, %v1875_v46  ;;  %v2164_v46 = vmul.f32 %v5606_v58, %v5614_v41 }
 0x6a7   :  { %4306 = vmatpush3.bf16.msra.mxu0 %v4995_v8  ;;  %v1884_v28 = vsub.f32 %v5740_v43, %v5619_v24 }
 0x6a8   :  { %4308 = vmatprep.subr.bf16.mxu0 %v4999_v12 }
 0x6a9   :  { %vm1885_vm15 = vcmp.gt.f32.partialorder %v1884_v28, 0.0  ;;  %v1772_v28 = vsel %vm1771_vm1, 1, %v6142_v32 }
 0x6aa   :  { %v2734_v33 = vsel %vm1885_vm15, 1.0, %v6141_v31 }
 0x6ab   :  { %4310 = vmatpush3.bf16.msra.mxu0 %v5006_v17  ;;  %v1892_v19 = vmul.f32 %v2734_v33, %v1891_v60  ;;  %v1776_v33 = vrot.slane %v1772_v28, %v5044_v55 }
 0x6ac   :  { %4335 = vmatprep.subr.bf16.mxu0 %v6136_v63 }
 0x6ad   :  { %v2165_v30 = vmul.f32 %v1892_v19, %v5034_v39  ;;  %vm1777_vm2 = vcmp.eq.s32.totalorder %v1776_v33, 1  ;;  %v1791_v33 = vld [vmem:[#allocation16 + $0x5] sm:$0x1] }
 0x6ae   :  { %1958 = vmatmul.mubr.f32.vlgmr.msra.gmra.mrb[16].mxu0 %v1892_v19  ;;  %vm1972_vm4 = vcmp.eq.f32.partialorder %v1791_v33, 0.0 }
 0x6af   :  { %4337 = vmatpush3.bf16.msra.mxu0 %v4917_v5  ;;  %3747 = vmatprep.mubr.msk.f32.mxu0 %vm4714_vm0, %v6141_v31  ;;  %v5756_v24 = vadd.f32 %v2165_v30, %v2164_v46  ;;  %v5808_v30 = vld [vmem:[%s6069_s14] ss:$0 sm:$0xff] }
 0x6b0   :  { %4338 = vmatprep.subr.bf16.mxu0 %v6136_v63 }
 0x6b1   :  { %v2167_v9 = vmul.f32 1.8, %v5756_v24 }
 0x6b3   :  { %4340 = vmatpush3.bf16.msra.mxu0 %v4920_v7  ;;  %v5761_v4 = vadd.f32 0.01, %v2167_v9  ;;  %v1767_v9 = vmul.f32 %v5808_v30, %v5665_v25 }
 0x6b4   :  { %4341 = vmatprep.subr.bf16.mxu0 %v6136_v63 }
 0x6b5   :  { %v5765_v41 = vmul.f32 %v5761_v4, %v1892_v19 }
 0x6b7   :  { %4343 = vmatpush3.bf16.msra.mxu0 %v4924_v15 }
 0x6b8   :  { %4344 = vmatprep.subr.bf16.mxu0 %v6136_v63 }
 0x6bb   :  { %4346 = vmatpush3.bf16.msra.mxu0 %v4938_v27 }
 0x6bc   :  { %4347 = vmatprep.subr.bf16.mxu0 %v6136_v63 }
 0x6bf   :  { %4349 = vmatpush3.bf16.msra.mxu0 %v4948_v36 }
 0x6c0   :  { %4350 = vmatprep.subr.bf16.mxu0 %v6136_v63 }
 0x6c3   :  { %4352 = vmatpush3.bf16.msra.mxu0 %v4958_v45 }
 0x6c4   :  { %4353 = vmatprep.subr.bf16.mxu0 %v6136_v63 }
 0x6c7   :  { %4355 = vmatpush3.bf16.msra.mxu0 %v4966_v49 }
 0x6c8   :  { %4356 = vmatprep.subr.bf16.mxu0 %v6136_v63 }
 0x6cb   :  { %4358 = vmatpush3.bf16.msra.mxu0 %v4971_v52 }
 0x6cc   :  { %4391 = vmatprep.subr.bf16.mxu0 %v6136_v63 }
 0x6ce   :  { %3748 = vmatmul.mubr.f32.vlgmr.msra.gmra.mrb[18].mxu0 %v1892_v19  ;;  %v5802_v19 = vld [vmem:[#allocation22] ss:$0 sm:$0xff] }
 0x6cf   :  { %4393 = vmatpush3.bf16.msra.mxu0 %v6143_v23  ;;  %3782 = vmatprep.mubr.msk.f32.mxu0 %vm4714_vm0, %v6141_v31  ;;  %6171 = vst [vmem:[#allocation31_spill] sm:$0xff] %v5802_v19 }
 0x6d0   :  { %4394 = vmatprep.subr.bf16.mxu0 %v6136_v63 }
 0x6d3   :  { %4396 = vmatpush3.bf16.msra.mxu0 %v6153_v6 }
 0x6d4   :  { %4397 = vmatprep.subr.bf16.mxu0 %v6136_v63 }
 0x6d7   :  { %4399 = vmatpush3.bf16.msra.mxu0 %v6154_v2 }
 0x6d8   :  { %4400 = vmatprep.subr.bf16.mxu0 %v6136_v63 }
 0x6db   :  { %4402 = vmatpush3.bf16.msra.mxu0 %v6155_v53 }
 0x6dc   :  { %4403 = vmatprep.subr.bf16.mxu0 %v6136_v63 }
 0x6df   :  { %4405 = vmatpush3.bf16.msra.mxu0 %v6156_v16 }
 0x6e0   :  { %4406 = vmatprep.subr.bf16.mxu0 %v6136_v63 }
 0x6e3   :  { %4408 = vmatpush3.bf16.msra.mxu0 %v6162_v14 }
 0x6e4   :  { %4409 = vmatprep.subr.bf16.mxu0 %v6136_v63 }
 0x6e7   :  { %4411 = vmatpush3.bf16.msra.mxu0 %v6168_v18 }
 0x6e8   :  { %4412 = vmatprep.subr.bf16.mxu0 %v6136_v63 }
 0x6eb   :  { %4414 = vmatpush3.bf16.msra.mxu0 %v6169_v10 }
 0x6ec   :  { %4440 = vmatprep.subr.bf16.mxu0 %v6170_v51 }
 0x761   :  { %v1758_v60 = vpop.f32.mrb[14].mxu0 }
 0x762   :  { %v1759_v46 = vadd.f32 %v5802_v19, %v1758_v60  ;;  %v3644_v51 = vpop.f32.mrb[15].mxu0  ;;  %v1786_v60 = vrot.slane %v1495_v34, %v5044_v55 }
 0x764   :  { %v1768_v10 = vadd.f32 %v1767_v9, %v1759_v46  ;;  %v5823_v46 = vld [vmem:[%s6070_s15] ss:$0 sm:$0xff]  ;;  %v1973_v9 = vsel %vm1972_vm4, 1, %v6142_v32 }
 0x765   :  { %6172 = vst [vmem:[#allocation41_spill] sm:$0xff] %v5823_v46 }
 0x766   :  { %v1770_v18 = vsub.f32 %v1768_v10, %v5680_v57  ;;  %v2059_v57 = vmul.f32 %v5823_v46, %v5674_v37  ;;  %v1977_v37 = vrot.slane %v1973_v9, %v5044_v55  ;;  %v1987_v46 = vrot.slane %v1791_v33, %v5044_v55  ;;  %v6173_v33 = vld [vmem:[#allocation30_spill] sm:$0xff] }
 0x768   :  { %v5814_v14 = vsel %vm1777_vm2, %v5665_v25, %v1770_v18  ;;  %vm1978_vm5 = vcmp.eq.s32.totalorder %v1977_v37, 1 }
 0x769   :  { %v1779_v28 = vsub.f32 %v5814_v14, %v5677_v48 }
 0x76b   :  { %vm1780_vm3 = vcmp.gt.f32.partialorder %v1779_v28, 0.0 }
 0x76c   :  { %v2733_v19 = vsel %vm1780_vm3, 1.0, %v6141_v31 }
 0x76d   :  { %v1787_v16 = vmul.f32 %v2733_v19, %v1786_v60 }
 0x76f   :  { %1789 = vst [vmem:[#allocation23 + $0x20] sm:$0xff] %v1787_v16  ;;  %v2060_v25 = vmul.f32 %v1787_v16, %v6167_v42 }
 0x771   :  { %v5828_v18 = vadd.f32 %v2060_v25, %v2059_v57  ;;  %v1968_v57 = vmul.f32 %v5693_v0, %v5699_v40 }
 0x773   :  { %v2062_v48 = vmul.f32 1.8, %v5828_v18 }
 0x775   :  { %v5831_v10 = vadd.f32 0.01, %v2062_v48 }
 0x777   :  { %v5834_v34 = vmul.f32 %v5831_v10, %v1787_v16 }
 0x781   :  { %v3137_v19 = vpop.f32.mrb[16].mxu0 }
 0x782   :  { %v3138_v51 = vpop.f32.mrb[17].mxu0 }
 0x783   :  { %v3139_v28 = vadd.f32 %v3138_v51, %v3137_v19  ;;  %v2260_v51 = vmul.f32 %v5708_v1, %v5715_v13 }
 0x785   :  { %v1960_v60 = vadd.f32 %v5687_v47, %v3139_v28 }
 0x787   :  { %v1969_v25 = vadd.f32 %v1968_v57, %v1960_v60 }
 0x789   :  { %v1971_v48 = vsub.f32 %v1969_v25, %v5723_v50  ;;  %v2087_v50 = vld [vmem:[#allocation14 + $0x6] sm:$0x1] }
 0x78a   :  { %vm2173_vm7 = vcmp.eq.f32.partialorder %v2087_v50, 0.0 }
 0x78b   :  { %v5843_v16 = vsel %vm1978_vm5, %v5699_v40, %v1971_v48  ;;  %v2174_v37 = vsel %vm2173_vm7, 1, %v6142_v32 }
 0x78c   :  { %v1980_v42 = vsub.f32 %v5843_v16, %v5720_v54  ;;  %v2178_v48 = vrot.slane %v2174_v37, %v5044_v55  ;;  %v2188_v37 = vrot.slane %v2087_v50, %v5044_v55 }
 0x78e   :  { %vm1981_vm6 = vcmp.gt.f32.partialorder %v1980_v42, 0.0  ;;  %vm2179_vm8 = vcmp.eq.s32.totalorder %v2178_v48, 1 }
 0x78f   :  { %v2735_v19 = vsel %vm1981_vm6, 1.0, %v6141_v31 }
 0x790   :  { %v1988_v9 = vmul.f32 %v2735_v19, %v1987_v46  ;;  %v2091_v46 = vld [vmem:[#allocation11 + $0x30] sm:$0xff] }
 0x792   :  { %3713 = vmatmul.mubr.f32.vlgmr.msra.gmra.mrb[16].mxu1 %v1988_v9  ;;  %v2261_v28 = vmul.f32 %v1988_v9, %v5131_v11 }
 0x793   :  { %4362 = vmatpush3.bf16.msra.mxu1 %v4929_v20  ;;  %2254 = vmatprep.mubr.f32.mxu1 %v1988_v9 }
 0x794   :  { %4364 = vmatprep.subr.bf16.mxu1 %v4931_v21  ;;  %v5854_v40 = vadd.f32 %v2261_v28, %v2260_v51 }
 0x796   :  { %v2263_v54 = vmul.f32 1.8, %v5854_v40 }
 0x797   :  { %4366 = vmatpush3.bf16.msra.mxu1 %v4935_v26 }
 0x798   :  { %4368 = vmatprep.subr.bf16.mxu1 %v4941_v29  ;;  %v5859_v42 = vadd.f32 0.01, %v2263_v54 }
 0x79a   :  { %v5862_v13 = vmul.f32 %v5859_v42, %v1988_v9  ;;  %v2169_v9 = vmul.f32 %v5584_v22, %v5740_v43 }
 0x79b   :  { %4370 = vmatpush3.bf16.msra.mxu1 %v4945_v35 }
 0x79c   :  { %4372 = vmatprep.subr.bf16.mxu1 %v4951_v38 }
 0x79f   :  { %4374 = vmatpush3.bf16.msra.mxu1 %v4955_v44 }
 0x7a0   :  { %4376 = vmatprep.subr.bf16.mxu1 %v6173_v33 }
 0x7a1   :  { %v2158_v60 = vpop.f32.mrb[18].mxu0 }
 0x7a2   :  { %v2162_v57 = vadd.f32 %v2158_v60, %v2091_v46  ;;  %v3749_v25 = vpop.f32.mrb[19].mxu0 }
 0x7a3   :  { %4378 = vmatpush3.bf16.msra.mxu1 %v4984_v56 }
 0x7a4   :  { %v2163_v19 = vadd.f32 %v5578_v61, %v2162_v57  ;;  %4380 = vmatprep.subr.bf16.mxu1 %v4987_v59 }
 0x7a6   :  { %v2170_v51 = vadd.f32 %v2169_v9, %v2163_v19 }
 0x7a7   :  { %4382 = vmatpush3.bf16.msra.mxu1 %v4989_v62 }
 0x7a8   :  { %v2172_v28 = vsub.f32 %v2170_v51, %v5765_v41  ;;  %4384 = vmatprep.subr.bf16.mxu1 %v4993_v3 }
 0x7aa   :  { %v5879_v54 = vsel %vm2179_vm8, %v5740_v43, %v2172_v28  ;;  %v2461_v43 = vmul.f32 %v5606_v58, %v5756_v24  ;;  %v6179_v28 = vld [vmem:[#allocation41_spill] sm:$0xff] }
 0x7ab   :  { %4386 = vmatpush3.bf16.msra.mxu1 %v4995_v8  ;;  %v2181_v46 = vsub.f32 %v5879_v54, %v5761_v4 }
 0x7ac   :  { %4388 = vmatprep.subr.bf16.mxu1 %v4999_v12 }
 0x7ad   :  { %vm2182_vm9 = vcmp.gt.f32.partialorder %v2181_v46, 0.0  ;;  %v2356_v46 = vmul.f32 %v6179_v28, %v5828_v18 }
 0x7ae   :  { %v2737_v60 = vsel %vm2182_vm9, 1.0, %v6141_v31 }
 0x7af   :  { %4390 = vmatpush3.bf16.msra.mxu1 %v5006_v17  ;;  %v2189_v41 = vmul.f32 %v2737_v60, %v2188_v37  ;;  %v6180_v37 = vld [vmem:[#allocation40_spill] sm:$0xff] }
 0x7b0   :  { %4415 = vmatprep.subr.bf16.mxu1 %v6136_v63 }
 0x7b1   :  { %v2462_v57 = vmul.f32 %v2189_v41, %v5034_v39  ;;  %v6178_v39 = vld [vmem:[#allocation31_spill] sm:$0xff] }
 0x7b2   :  { %2255 = vmatmul.mubr.f32.vlgmr.msra.gmra.mrb[18].mxu1 %v2189_v41 }
 0x7b3   :  { %4417 = vmatpush3.bf16.msra.mxu1 %v4917_v5  ;;  %3817 = vmatprep.mubr.msk.f32.mxu1 %vm4714_vm0, %v6141_v31  ;;  %v2463_v4 = vadd.f32 %v2462_v57, %v2461_v43  ;;  %v6174_v5 = vld [vmem:[#allocation35_spill] sm:$0xff]  ;;  %v2088_v43 = vld [vmem:[#allocation16 + $0x6] sm:$0x1] }
 0x7b4   :  { %4418 = vmatprep.subr.bf16.mxu1 %v6136_v63  ;;  %vm2269_vm12 = vcmp.eq.f32.partialorder %v2088_v43, 0.0 }
 0x7b5   :  { %v2464_v50 = vmul.f32 1.8, %v2463_v4  ;;  %v2270_v4 = vsel %vm2269_vm12, 1, %v6142_v32 }
 0x7b6   :  { %v2274_v18 = vrot.slane %v2270_v4, %v5044_v55 }
 0x7b7   :  { %4420 = vmatpush3.bf16.msra.mxu1 %v4920_v7  ;;  %v5897_v25 = vadd.f32 0.01, %v2464_v50  ;;  %v6175_v7 = vld [vmem:[#allocation36_spill] sm:$0xff] }
 0x7b8   :  { %4421 = vmatprep.subr.bf16.mxu1 %v6136_v63  ;;  %vm2275_vm13 = vcmp.eq.s32.totalorder %v2274_v18, 1  ;;  %v2385_v18 = vld [vmem:[#allocation16 + $0x7] sm:$0x1] }
 0x7b9   :  { %v5901_v58 = vmul.f32 %v5897_v25, %v2189_v41  ;;  %vm2566_vm6 = vcmp.eq.f32.partialorder %v2385_v18, 0.0 }
 0x7bb   :  { %4423 = vmatpush3.bf16.msra.mxu1 %v4924_v15  ;;  %v6176_v15 = vld [vmem:[#allocation37_spill] sm:$0xff] }
 0x7bc   :  { %4424 = vmatprep.subr.bf16.mxu1 %v6136_v63 }
 0x7bf   :  { %4426 = vmatpush3.bf16.msra.mxu1 %v4938_v27  ;;  %v6177_v27 = vld [vmem:[#allocation38_spill] sm:$0xff] }
 0x7c0   :  { %4427 = vmatprep.subr.bf16.mxu1 %v6136_v63 }
 0x7c3   :  { %4429 = vmatpush3.bf16.msra.mxu1 %v4948_v36  ;;  %v1792_v36 = vld [vmem:[%s6139_s16 + $0x5] sm:$0x1] }
 0x7c4   :  { %4430 = vmatprep.subr.bf16.mxu1 %v6136_v63  ;;  %v2083_v19 = vrot.slane %v1792_v36, %v5044_v55 }
 0x7c7   :  { %4432 = vmatpush3.bf16.msra.mxu1 %v4958_v45 }
 0x7c8   :  { %4433 = vmatprep.subr.bf16.mxu1 %v6136_v63 }
 0x7cb   :  { %4435 = vmatpush3.bf16.msra.mxu1 %v4966_v49 }
 0x7cc   :  { %4436 = vmatprep.subr.bf16.mxu1 %v6136_v63 }
 0x7cf   :  { %4438 = vmatpush3.bf16.msra.mxu1 %v4971_v52 }
 0x7d0   :  { %4471 = vmatprep.subr.bf16.mxu1 %v6136_v63 }
 0x7d2   :  { %3818 = vmatmul.mubr.f32.vlgmr.msra.gmra.mrb[20].mxu1 %v2189_v41 }
 0x7d3   :  { %4473 = vmatpush3.bf16.msra.mxu1 %v6143_v23  ;;  %3852 = vmatprep.mubr.msk.f32.mxu1 %vm4714_vm0, %v6141_v31  ;;  %vm2068_vm0 = vcmp.eq.f32.partialorder %v1792_v36, 0.0 }
 0x7d4   :  { %4474 = vmatprep.subr.bf16.mxu1 %v6136_v63  ;;  %v2069_v45 = vsel %vm2068_vm0, 1, %v6142_v32 }
 0x7d5   :  { %v2073_v52 = vrot.slane %v2069_v45, %v5044_v55 }
 0x7d7   :  { %4476 = vmatpush3.bf16.msra.mxu1 %v6153_v6  ;;  %v2064_v6 = vmul.f32 %v5808_v30, %v5814_v14  ;;  %vm2074_vm10 = vcmp.eq.s32.totalorder %v2073_v52, 1  ;;  %v2284_v52 = vrot.slane %v2088_v43, %v5044_v55 }
 0x7d8   :  { %4477 = vmatprep.subr.bf16.mxu1 %v6136_v63 }
 0x7db   :  { %4479 = vmatpush3.bf16.msra.mxu1 %v6154_v2 }
 0x7dc   :  { %4480 = vmatprep.subr.bf16.mxu1 %v6136_v63 }
 0x7df   :  { %4482 = vmatpush3.bf16.msra.mxu1 %v6155_v53 }
 0x7e0   :  { %4483 = vmatprep.subr.bf16.mxu1 %v6136_v63 }
 0x7e3   :  { %4485 = vmatpush3.bf16.msra.mxu1 %v6174_v5 }
 0x7e4   :  { %4486 = vmatprep.subr.bf16.mxu1 %v6136_v63 }
 0x7e7   :  { %4488 = vmatpush3.bf16.msra.mxu1 %v6175_v7 }
 0x7e8   :  { %4489 = vmatprep.subr.bf16.mxu1 %v6136_v63 }
 0x7eb   :  { %4491 = vmatpush3.bf16.msra.mxu1 %v6176_v15  ;;  %v2265_v15 = vmul.f32 %v5693_v0, %v5843_v16 }
 0x7ec   :  { %4492 = vmatprep.subr.bf16.mxu1 %v6136_v63 }
 0x7ef   :  { %4494 = vmatpush3.bf16.msra.mxu1 %v6177_v27 }
 0x865   :  { %v2055_v49 = vpop.f32.mrb[16].mxu1 }
 0x866   :  { %v2056_v23 = vadd.f32 %v6178_v39, %v2055_v49  ;;  %v3714_v2 = vpop.f32.mrb[17].mxu1 }
 0x867   :  { %v2557_v2 = vmul.f32 %v5708_v1, %v5854_v40 }
 0x868   :  { %v2065_v53 = vadd.f32 %v2064_v6, %v2056_v23 }
 0x86a   :  { %v2067_v63 = vsub.f32 %v2065_v53, %v5834_v34 }
 0x86c   :  { %v5942_v24 = vsel %vm2074_vm10, %v5814_v14, %v2067_v63  ;;  %v2384_v63 = vld [vmem:[#allocation14 + $0x7] sm:$0x1] }
 0x86d   :  { %v2076_v48 = vsub.f32 %v5942_v24, %v5831_v10  ;;  %vm2470_vm15 = vcmp.eq.f32.partialorder %v2384_v63, 0.0 }
 0x86f   :  { %vm2077_vm11 = vcmp.gt.f32.partialorder %v2076_v48, 0.0 }
 0x870   :  { %v2736_v9 = vsel %vm2077_vm11, 1.0, %v6141_v31 }
 0x871   :  { %v2084_v51 = vmul.f32 %v2736_v9, %v2083_v19 }
 0x873   :  { %2086 = vst [vmem:[#allocation23 + $0x28] sm:$0xff] %v2084_v51  ;;  %v2357_v60 = vmul.f32 %v2084_v51, %v6180_v37 }
 0x875   :  { %v5951_v41 = vadd.f32 %v2357_v60, %v2356_v46 }
 0x877   :  { %v2359_v14 = vmul.f32 1.8, %v5951_v41  ;;  %v2653_v43 = vmul.f32 %v6179_v28, %v5951_v41 }
 0x879   :  { %v5954_v34 = vadd.f32 0.01, %v2359_v14 }
 0x87b   :  { %v5957_v10 = vmul.f32 %v5954_v34, %v2084_v51 }
 0x885   :  { %v3206_v57 = vpop.f32.mrb[18].mxu1 }
 0x886   :  { %v3207_v50 = vpop.f32.mrb[19].mxu1 }
 0x887   :  { %v3208_v5 = vadd.f32 %v3207_v50, %v3206_v57 }
 0x889   :  { %v2257_v7 = vadd.f32 %v5687_v47, %v3208_v5 }
 0x88b   :  { %v2266_v27 = vadd.f32 %v2265_v15, %v2257_v7 }
 0x88d   :  { %v2268_v36 = vsub.f32 %v2266_v27, %v5862_v13 }
 0x88f   :  { %v5966_v45 = vsel %vm2275_vm13, %v5843_v16, %v2268_v36 }
 0x890   :  { %v2277_v49 = vsub.f32 %v5966_v45, %v5859_v42  ;;  %v2562_v28 = vmul.f32 %v5693_v0, %v5966_v45 }
 0x892   :  { %vm2278_vm14 = vcmp.gt.f32.partialorder %v2277_v49, 0.0 }
 0x893   :  { %v2738_v23 = vsel %vm2278_vm14, 1.0, %v6141_v31 }
 0x894   :  { %v2285_v6 = vmul.f32 %v2738_v23, %v2284_v52  ;;  %v2581_v23 = vrot.slane %v2385_v18, %v5044_v55 }
 0x896   :  { %3783 = vmatmul.mubr.f32.vlgmr.msra.gmra.mrb[20].mxu0 %v2285_v6  ;;  %v2558_v53 = vmul.f32 %v2285_v6, %v5131_v11 }
 0x897   :  { %4442 = vmatpush3.bf16.msra.mxu0 %v4929_v20  ;;  %2551 = vmatprep.mubr.f32.mxu0 %v2285_v6  ;;  %v2388_v20 = vld [vmem:[#allocation11 + $0x38] sm:$0xff] }
 0x898   :  { %4444 = vmatprep.subr.bf16.mxu0 %v4931_v21  ;;  %v2559_v16 = vadd.f32 %v2558_v53, %v2557_v2  ;;  %v2471_v21 = vsel %vm2470_vm15, 1, %v6142_v32 }
 0x899   :  { %v2475_v1 = vrot.slane %v2471_v21, %v5044_v55 }
 0x89a   :  { %v2560_v13 = vmul.f32 1.8, %v2559_v16 }
 0x89b   :  { %4446 = vmatpush3.bf16.msra.mxu0 %v4935_v26  ;;  %vm2476_vm1 = vcmp.eq.s32.totalorder %v2475_v1, 1 }
 0x89c   :  { %4448 = vmatprep.subr.bf16.mxu0 %v4941_v29  ;;  %v5979_v42 = vadd.f32 0.01, %v2560_v13 }
 0x89e   :  { %v5982_v48 = vmul.f32 %v5979_v42, %v2285_v6 }
 0x89f   :  { %4450 = vmatpush3.bf16.msra.mxu0 %v4945_v35  ;;  %v2466_v35 = vmul.f32 %v5584_v22, %v5879_v54 }
 0x8a0   :  { %4452 = vmatprep.subr.bf16.mxu0 %v4951_v38 }
 0x8a3   :  { %4454 = vmatpush3.bf16.msra.mxu0 %v4955_v44 }
 0x8a4   :  { %4456 = vmatprep.subr.bf16.mxu0 %v6173_v33 }
 0x8a5   :  { %v2455_v26 = vpop.f32.mrb[20].mxu1 }
 0x8a6   :  { %v2459_v29 = vadd.f32 %v2455_v26, %v2388_v20  ;;  %v3819_v11 = vpop.f32.mrb[21].mxu1 }
 0x8a7   :  { %4458 = vmatpush3.bf16.msra.mxu0 %v4984_v56 }
 0x8a8   :  { %v2460_v40 = vadd.f32 %v5578_v61, %v2459_v29  ;;  %4460 = vmatprep.subr.bf16.mxu0 %v4987_v59  ;;  %v2485_v61 = vrot.slane %v2384_v63, %v5044_v55 }
 0x8aa   :  { %v2467_v38 = vadd.f32 %v2466_v35, %v2460_v40 }
 0x8ab   :  { %4462 = vmatpush3.bf16.msra.mxu0 %v4989_v62 }
 0x8ac   :  { %v2469_v44 = vsub.f32 %v2467_v38, %v5901_v58  ;;  %4464 = vmatprep.subr.bf16.mxu0 %v4993_v3  ;;  %v2089_v3 = vld [vmem:[%s6139_s16 + $0x6] sm:$0x1] }
 0x8ad   :  { %vm2365_vm3 = vcmp.eq.f32.partialorder %v2089_v3, 0.0  ;;  %v2380_v46 = vrot.slane %v2089_v3, %v5044_v55 }
 0x8ae   :  { %v2477_v33 = vsel %vm2476_vm1, %v5879_v54, %v2469_v44 }
 0x8af   :  { %4466 = vmatpush3.bf16.msra.mxu0 %v4995_v8  ;;  %v2478_v56 = vsub.f32 %v2477_v33, %v5897_v25  ;;  %v2366_v8 = vsel %vm2365_vm3, 1, %v6142_v32 }
 0x8b0   :  { %4468 = vmatprep.subr.bf16.mxu0 %v4999_v12  ;;  %v2370_v54 = vrot.slane %v2366_v8, %v5044_v55  ;;  %v2361_v12 = vmul.f32 %v5808_v30, %v5942_v24 }
 0x8b1   :  { %vm2479_vm2 = vcmp.gt.f32.partialorder %v2478_v56, 0.0 }
 0x8b2   :  { %v2740_v59 = vsel %vm2479_vm2, 1.0, %v6141_v31  ;;  %vm2371_vm4 = vcmp.eq.s32.totalorder %v2370_v54, 1 }
 0x8b3   :  { %4470 = vmatpush3.bf16.msra.mxu0 %v5006_v17  ;;  %v2486_v62 = vmul.f32 %v2740_v59, %v2485_v61 }
 0x8b6   :  { %2552 = vmatmul.mubr.f32.vlgmr.msra.gmra.mrb[22].mxu0 %v2486_v62 }
 0x969   :  { %v2352_v22 = vpop.f32.mrb[20].mxu0 }
 0x96a   :  { %v2353_v25 = vadd.f32 %v6178_v39, %v2352_v22  ;;  %v3784_v58 = vpop.f32.mrb[21].mxu0 }
 0x96c   :  { %v2362_v19 = vadd.f32 %v2361_v12, %v2353_v25 }
 0x96e   :  { %v2364_v17 = vsub.f32 %v2362_v19, %v5957_v10 }
 0x970   :  { %v2372_v9 = vsel %vm2371_vm4, %v5942_v24, %v2364_v17 }
 0x971   :  { %v2373_v51 = vsub.f32 %v2372_v9, %v5954_v34  ;;  %v2567_v34 = vsel %vm2566_vm6, 1, %v6142_v32  ;;  %v2658_v13 = vmul.f32 %v5808_v30, %v2372_v9 }
 0x972   :  { %v2571_v27 = vrot.slane %v2567_v34, %v5044_v55 }
 0x973   :  { %vm2374_vm5 = vcmp.gt.f32.partialorder %v2373_v51, 0.0 }
 0x974   :  { %v2739_v60 = vsel %vm2374_vm5, 1.0, %v6141_v31  ;;  %vm2572_vm7 = vcmp.eq.s32.totalorder %v2571_v27, 1 }
 0x975   :  { %v2381_v14 = vmul.f32 %v2739_v60, %v2380_v46 }
 0x977   :  { %2383 = vst [vmem:[#allocation23 + $0x30] sm:$0xff] %v2381_v14  ;;  %v2654_v57 = vmul.f32 %v2381_v14, %v6180_v37 }
 0x979   :  { %v2655_v4 = vadd.f32 %v2654_v57, %v2653_v43 }
 0x97b   :  { %v2656_v50 = vmul.f32 1.8, %v2655_v4 }
 0x97d   :  { %v2657_v5 = vadd.f32 0.01, %v2656_v50 }
 0x97f   :  { %v2660_v10 = vmul.f32 %v2657_v5, %v2381_v14 }
 0x989   :  { %v3275_v24 = vpop.f32.mrb[22].mxu0 }
 0x98a   :  { %v3276_v7 = vpop.f32.mrb[23].mxu0 }
 0x98b   :  { %v3277_v15 = vadd.f32 %v3276_v7, %v3275_v24 }
 0x98d   :  { %v2554_v36 = vadd.f32 %v5687_v47, %v3277_v15  ;;  %v2386_v47 = vld [vmem:[%s6139_s16 + $0x7] sm:$0x1]  ;;  %s2695_s16 = sshll.u32 %s4717_s0, 4  ;;  %s2696_s16 = int_to_ptr.vmem [resolvable:$true] %s2695_s16 }
 0x98e   :  { %vm2662_vm9 = vcmp.eq.f32.partialorder %v2386_v47, 0.0  ;;  %v2677_v26 = vrot.slane %v2386_v47, %v5044_v55  ;;  %s4672_s30 = scalar_lea.vmem %s2696_s16, 1024  ;;  %p4677_p1 = scmp.lt.s32.totalorder %s2696_s16, %s2696_s16 }
 0x98f   :  { %v2563_v41 = vadd.f32 %v2562_v28, %v2554_v36  ;;  %v2663_v0 = vsel %vm2662_vm9, 1, %v6142_v32  ;;  %p4673_p0 = scmp.ne.s32.totalorder %s2696_s16, %s4672_s30  ;;  %p4678_p2 = scmp.lt.s32.totalorder %s4672_s30, %s4672_s30 }
 0x990   :  { %v2667_v16 = vrot.slane %v2663_v0, %v5044_v55 }
 0x991   :  { %v2565_v37 = vsub.f32 %v2563_v41, %v5982_v48  ;;  %p4679_p3 = por %p4678_p2, %p4677_p1 }
 0x992   :  { %vm2668_vm0 = vcmp.eq.s32.totalorder %v2667_v16, 1 }
 0x993   :  { %v2573_v49 = vsel %vm2572_vm7, %v5966_v45, %v2565_v37  ;;  %p4680_p4 = pnand %p4679_p3, %p4673_p0 }
 0x994   :  { %v2574_v52 = vsub.f32 %v2573_v49, %v5979_v42 }
 0x996   :  { %vm2575_vm8 = vcmp.gt.f32.partialorder %v2574_v52, 0.0 }
 0x997   :  { %v2741_v6 = vsel %vm2575_vm8, 1.0, %v6141_v31 }
 0x998   :  { %v2582_v2 = vmul.f32 %v2741_v6, %v2581_v23 }
 0x99a   :  { %3853 = vmatmul.mubr.f32.vlgmr.msra.gmra.mrb[22].mxu1 %v2582_v2 }
 0xa6d   :  { %v2649_v53 = vpop.f32.mrb[22].mxu1 }
 0xa6e   :  { %v2650_v45 = vadd.f32 %v6178_v39, %v2649_v53  ;;  %v3854_v42 = vpop.f32.mrb[23].mxu1 }
 0xa70   :  { %v2659_v63 = vadd.f32 %v2658_v13, %v2650_v45 }
 0xa72   :  { %v2661_v48 = vsub.f32 %v2659_v63, %v2660_v10 }
 0xa74   :  { %v2669_v20 = vsel %vm2668_vm0, %v2372_v9, %v2661_v48 }
 0xa75   :  { %v2670_v21 = vsub.f32 %v2669_v20, %v2657_v5 }
 0xa77   :  { %vm2671_vm10 = vcmp.gt.f32.partialorder %v2670_v21, 0.0 }
 0xa78   :  { %v2742_v32 = vsel %vm2671_vm10, 1.0, %v6141_v31 }
 0xa79   :  { %v2678_v29 = vmul.f32 %v2742_v32, %v2677_v26 }
 0xa7b   :  { %2680 = vst [vmem:[#allocation23 + $0x38] sm:$0xff] %v2678_v29 }
 0xa7c   :  { %4683 = shalt.err (!%p4680_p4)
}
 0xa7d   :  { %s6181_s2 = sld [smem:[#allocation46_spill]] }
 0xa83   :  { %s4684_s3 = scalar_lea.hbm %s6181_s2, 1024 }
 0xa84   :  { %p4685_p5 = scmp.ne.s32.totalorder %s6181_s2, %s4684_s3  ;;  %p4688_p6 = scmp.lt.u32.totalorder %s4684_s3, %s6181_s2 }
 0xa86   :  { %p4690_p7 = pnand %p4688_p6, %p4685_p5 }
 0xa88   :  { %4693 = shalt.err (!%p4690_p7)
}
 0xa89   :  { %2701 = dma.vmem_to_hbm [thread:$0]  %s2696_s16, 1024, %s6181_s2, [#allocation13], %s4707_s1, %s4707_s1, %s4708_s26  }
 0xa8a   :  { %4702 = dma.done.wait [#allocation13], 1024  }
 0xa8b   :  { %4703 = vsyncadd [#allocation13], 4294966272 }
 0xa8c   :  { %2705 = vsyncpa [#allocation12], 1 }
 0xa8d   :  { %2706 = vsyncpa [#allocation15], 1 }
 0xa8e   :  { %2707 = vsyncpa [#allocation18], 1 }
 0xa8f   :  { %2708 = vsyncpa [#allocation21], 1 }
 0xa90   :  { %2709 = vsyncpa [#allocation13], 1 }

</bundles_post_ra>
